<compile_context>
chip_gen: v6e
topology: v6e:2x2x1
jax: 0.10.0
libtpu: 0.0.40
codegen_flags: <defaults>
</compile_context>

<pallas_src>
import functools

import jax
import jax.numpy as jnp
from jax.experimental import pallas as pl
from jax.experimental.pallas import tpu as pltpu


def _round_up(x, m):
    return (x + m - 1) // m * m


def _attn_net_kernel(x_ref, w1_ref, b1_ref, w2_ref, b2_ref, a_ref, *,
                     c_is_one, use_bf16):
    # ---- Linear(L, D) + Tanh ------------------------------------------------
    x = x_ref[...]                                      # [TN, L]
    w1 = w1_ref[...]                                    # [L, D]
    if use_bf16:
        x = x.astype(jnp.bfloat16)
        w1 = w1.astype(jnp.bfloat16)
    h = jnp.dot(x, w1, preferred_element_type=jnp.float32)   # [TN, D] f32 acc
    h = jnp.tanh(h + b1_ref[...])                             # bias [1, D], f32

    # ---- Linear(D, n_classes) -----------------------------------------------
    if c_is_one:
        # w2 arrives transposed as [1, D]: VPU multiply + XLU lane reduce keeps
        # the single-column projection off the MXU (free slots on all gens).
        a = jnp.sum(h * w2_ref[...], axis=-1, keepdims=True)  # [TN, 1]
        a = a + b2_ref[...]                                    # [1, 1] bias
    else:
        w2 = w2_ref[...]                                       # [D, C]
        if use_bf16:
            h = h.astype(jnp.bfloat16)
            w2 = w2.astype(jnp.bfloat16)
        a = jnp.dot(h, w2, preferred_element_type=jnp.float32) + b2_ref[...]

    a_ref[...] = a.astype(a_ref.dtype)


def attn_net_forward(x, w1, b1, w2, b2, *, block_n=1024, use_bf16=True):
    """Pallas implementation of Attn_Net.forward (dropout disabled).

    x : [N, L];  w1: [L, D], b1: [1, D];  w2: [D, C], b2: [1, C]
    Returns (A, x) with A: [N, C], mirroring the PyTorch module.
    """
    N, L = x.shape
    D = w1.shape[1]
    C = w2.shape[1]
    c_is_one = (C == 1)

    # N tile: largest useful tile <= block_n, sublane (8) aligned.
    # block_n=1024 with L=1024 f32 -> 2 x 4 MiB double-buffered x tiles
    # + ~1 MiB resident weights + ~1 MiB h: comfortable on v5e/v6e/v7x.
    tn = min(block_n, _round_up(N, 8))
    grid = (pl.cdiv(N, tn),)

    if c_is_one:
        w2_arg = w2.T                                     # [1, D] (free reshape)
        w2_spec = pl.BlockSpec((1, D), lambda i: (0, 0))
    else:
        w2_arg = w2
        w2_spec = pl.BlockSpec((D, C), lambda i: (0, 0))

    # VMEM budget: double-buffered x/out tiles + resident params + intermediates
    # (bf16 copies + f32 h), with headroom; clamped to stay inside v7x VMEM.
    itemsize = jnp.dtype(x.dtype).itemsize
    est = (2 * tn * L * itemsize + 2 * tn * C * itemsize
           + (L * D + D + D * C + C) * 4 + 4 * tn * D * 4)
    vmem_limit = int(min(max(est + (8 << 20), 32 << 20), 48 << 20))

    kernel = functools.partial(_attn_net_kernel, c_is_one=c_is_one,
                               use_bf16=use_bf16)

    a = pl.pallas_call(
        kernel,
        out_shape=jax.ShapeDtypeStruct((N, C), x.dtype),
        grid=grid,
        in_specs=[
            pl.BlockSpec((tn, L), lambda i: (i, 0)),   # x: streamed over N
            pl.BlockSpec((L, D), lambda i: (0, 0)),    # w1: VMEM-resident
            pl.BlockSpec((1, D), lambda i: (0, 0)),    # b1: VMEM-resident
            w2_spec,                                   # w2: VMEM-resident
            pl.BlockSpec((1, C), lambda i: (0, 0)),    # b2: VMEM-resident
        ],
        out_specs=pl.BlockSpec((tn, C), lambda i: (i, 0)),
        compiler_params=pltpu.CompilerParams(
            dimension_semantics=("parallel",),
            vmem_limit_bytes=vmem_limit,
        ),
    )(x, w1, b1, w2_arg, b2)

    # Module returns the attention scores AND the (unchanged) input features.
    return a, x


if __name__ == "__main__":
    # Module-default feature sizes (L=1024, D=256, n_classes=1), small N.
    # block_n=256 -> grid of 2 steps, exercising the streamed-x pipeline.
    N, L, D, C = 512, 1024, 256, 1

    key = jax.random.PRNGKey(0)
    kx, kw1, kb1, kw2, kb2 = jax.random.split(key, 5)

    x = jax.random.normal(kx, (N, L), dtype=jnp.float32)
    w1 = jax.random.normal(kw1, (L, D), dtype=jnp.float32) * 0.05
    b1 = jax.random.normal(kb1, (1, D), dtype=jnp.float32) * 0.05
    w2 = jax.random.normal(kw2, (D, C), dtype=jnp.float32) * 0.05
    b2 = jax.random.normal(kb2, (1, C), dtype=jnp.float32) * 0.05

    a_out, x_out = attn_net_forward(x, w1, b1, w2, b2, block_n=256)
    jax.block_until_ready((a_out, x_out))

    # f32 reference (same math as the PyTorch module with dropout disabled).
    a_ref = jnp.tanh(x @ w1 + b1) @ w2 + b2
    assert a_out.shape == (N, C)
    assert x_out.shape == (N, L)
    # bf16 MXU inputs with f32 accumulation -> loosened tolerance vs f32 ref.
    max_err = float(jnp.max(jnp.abs(a_out - a_ref)))
    assert jnp.allclose(a_out, a_ref, atol=5e-2, rtol=5e-2), max_err
    assert jnp.array_equal(x_out, x)

    print("KERNEL_OK")
</pallas_src>

<mosaic_0001>
module attributes {stable_mosaic.version = 11 : i64} {
  func.func @_attn_net_kernel(%arg0: i32, %arg1: memref<256x1024xf32, #tpu.memory_space<vmem>>, %arg2: memref<1024x256xf32, #tpu.memory_space<vmem>>, %arg3: memref<1x256xf32, #tpu.memory_space<vmem>>, %arg4: memref<1x256xf32, #tpu.memory_space<vmem>>, %arg5: memref<1x1xf32, #tpu.memory_space<vmem>>, %arg6: memref<256x1xf32, #tpu.memory_space<vmem>>) attributes {dimension_semantics = [#tpu.dimension_semantics<parallel>], iteration_bounds = array<i64: 2>, scalar_prefetch = 0 : i64, scratch_operands = 0 : i64, tpu.core_type = #tpu.core_type<tc>, window_params = [{transform_indices = @transform_0, window_bounds = array<i64: 256, 1024>}, {pipeline_mode = #tpu.pipeline_mode<synchronous>, transform_indices = @transform_1, window_bounds = array<i64: 1024, 256>}, {pipeline_mode = #tpu.pipeline_mode<synchronous>, transform_indices = @transform_2, window_bounds = array<i64: 1, 256>}, {pipeline_mode = #tpu.pipeline_mode<synchronous>, transform_indices = @transform_3, window_bounds = array<i64: 1, 256>}, {pipeline_mode = #tpu.pipeline_mode<synchronous>, transform_indices = @transform_4, window_bounds = array<i64: 1, 1>}, {transform_indices = @transform_5, window_bounds = array<i64: 256, 1>}]} {
    %c0 = arith.constant 0 : index
    %c0_0 = arith.constant 0 : index
    %0 = vector.load %arg1[%c0, %c0_0] : memref<256x1024xf32, #tpu.memory_space<vmem>>, vector<256x1024xf32>
    %c0_1 = arith.constant 0 : index
    %c0_2 = arith.constant 0 : index
    %1 = vector.load %arg2[%c0_1, %c0_2] : memref<1024x256xf32, #tpu.memory_space<vmem>>, vector<1024x256xf32>
    %2 = arith.truncf %0 : vector<256x1024xf32> to vector<256x1024xbf16>
    %3 = arith.truncf %1 : vector<1024x256xf32> to vector<1024x256xbf16>
    %cst = arith.constant dense<0.000000e+00> : vector<256x256xf32>
    %4 = tpu.matmul %2, %3, %cst {dimension_numbers = #tpu.dot_dimension_numbers<[1], [0], [0], [1], [0, 0, 1, 1], [], []>} : vector<256x1024xbf16>, vector<1024x256xbf16>, vector<256x256xf32> -> vector<256x256xf32>
    %c0_3 = arith.constant 0 : index
    %c0_4 = arith.constant 0 : index
    %5 = vector.load %arg3[%c0_3, %c0_4] : memref<1x256xf32, #tpu.memory_space<vmem>>, vector<1x256xf32>
    %6 = vector.broadcast %5 : vector<1x256xf32> to vector<256x256xf32>
    %7 = arith.addf %4, %6 : vector<256x256xf32>
    %8 = math.tanh %7 : vector<256x256xf32>
    %c0_5 = arith.constant 0 : index
    %c0_6 = arith.constant 0 : index
    %9 = vector.load %arg4[%c0_5, %c0_6] : memref<1x256xf32, #tpu.memory_space<vmem>>, vector<1x256xf32>
    %10 = vector.broadcast %9 : vector<1x256xf32> to vector<256x256xf32>
    %11 = arith.mulf %8, %10 : vector<256x256xf32>
    %cst_7 = arith.constant dense<0.000000e+00> : vector<256xf32>
    %12 = vector.multi_reduction <add>, %11, %cst_7 [1] : vector<256x256xf32> to vector<256xf32>
    %13 = vector.shape_cast %12 : vector<256xf32> to vector<256x1xf32>
    %c0_8 = arith.constant 0 : index
    %c0_9 = arith.constant 0 : index
    %14 = vector.load %arg5[%c0_8, %c0_9] : memref<1x1xf32, #tpu.memory_space<vmem>>, vector<1x1xf32>
    %15 = vector.broadcast %14 : vector<1x1xf32> to vector<256x1xf32>
    %16 = arith.addf %13, %15 : vector<256x1xf32>
    %c0_10 = arith.constant 0 : index
    %c0_11 = arith.constant 0 : index
    %17 = vector.load %arg6[%c0_10, %c0_11] : memref<256x1xf32, #tpu.memory_space<vmem>>, vector<256x1xf32>
    tpu.vector_store %arg6[%c0_10, %c0_11], %16 {strides = array<i32>} : memref<256x1xf32, #tpu.memory_space<vmem>>, vector<256x1xf32>,
    return
  }
  func.func @transform_0(%arg0: i32) -> (i32, i32) {
    %c0_i32 = arith.constant 0 : i32
    %c0_i32_0 = arith.constant 0 : i32
    return %arg0, %c0_i32 : i32, i32
  }
  func.func @transform_1(%arg0: i32) -> (i32, i32) {
    %c0_i32 = arith.constant 0 : i32
    %c0_i32_0 = arith.constant 0 : i32
    %c0_i32_1 = arith.constant 0 : i32
    return %c0_i32, %c0_i32_0 : i32, i32
  }
  func.func @transform_2(%arg0: i32) -> (i32, i32) {
    %c0_i32 = arith.constant 0 : i32
    %c0_i32_0 = arith.constant 0 : i32
    %c0_i32_1 = arith.constant 0 : i32
    return %c0_i32, %c0_i32_0 : i32, i32
  }
  func.func @transform_3(%arg0: i32) -> (i32, i32) {
    %c0_i32 = arith.constant 0 : i32
    %c0_i32_0 = arith.constant 0 : i32
    %c0_i32_1 = arith.constant 0 : i32
    return %c0_i32, %c0_i32_0 : i32, i32
  }
  func.func @transform_4(%arg0: i32) -> (i32, i32) {
    %c0_i32 = arith.constant 0 : i32
    %c0_i32_0 = arith.constant 0 : i32
    %c0_i32_1 = arith.constant 0 : i32
    return %c0_i32, %c0_i32_0 : i32, i32
  }
  func.func @transform_5(%arg0: i32) -> (i32, i32) {
    %c0_i32 = arith.constant 0 : i32
    %c0_i32_0 = arith.constant 0 : i32
    return %arg0, %c0_i32 : i32, i32
  }
}

</mosaic_0001>

<bundles_post_ra>
// kernel: tpu_custom_call.1
= control target key start
LH: loop header
LB: loop body
LE: loop exit
PB: predicated region body
PF: predicated region fallthrough
CT: control target
= control target key end

     0   :  { %s3512_s0 = inlined_call_operand.hbm [shape: f32[512,1024], index: 0, kind: input, shape index: {}]   ;;  %s3513_s1 = inlined_call_operand.hbm [shape: f32[1024,256], index: 1, kind: input, shape index: {}]   ;;  %s3514_s2 = inlined_call_operand.hbm [shape: f32[1,256], index: 2, kind: input, shape index: {}]   ;;  %s3515_s3 = inlined_call_operand.hbm [shape: f32[1,256], index: 3, kind: input, shape index: {}]   ;;  %s3516_s4 = inlined_call_operand.<no memory space> [shape: f32[1,1], index: 4, kind: input, shape index: {}]   ;;  %s3517_s5 = inlined_call_operand.vmem [shape: f32[512,1], index: 5, kind: output, shape index: {}]  }
   0x1   :  { %v10_v0 = vstv %s3516_s4 }
   0x2   :  { %11 = vst [vmem:[#allocation2] sm:$0x1] %v10_v0 }
   0x3   :  { %12 = vsyncpa [#allocation4], 0 }
   0x4   :  { %14 = vsyncpa [#allocation4 + $0x1], 0 }
   0x5   :  { %15 = vsyncpa [#allocation6], 0 }
   0x6   :  { %16 = vsyncpa [#allocation9], 0  ;;  %s2662_s20 = smov 0   ;;  %s2664_s21 = smov 0  }
   0x7   :  { %s2666_s22 = smov 0   ;;  %s2668_s23 = smov 0  }
   0x8 LB: > { %s2246_s4 = sadd.s32 4294967295, %s2619_s23   ;;  %p42_p0 = scmp.ne.s32.totalorder %s2611_s21, %s2607_s20  ;;  %s2619_s23 = sphi %s2668_s23, %s3568_s23   ;;  %s2615_s22 = sphi %s2666_s22, %s3571_s22   ;;  %s2611_s21 = sphi %s2664_s21, %s3570_s21   ;;  %s2607_s20 = sphi %s2662_s20, %s3569_s20  }
   0x9   : > { %p2684_p1 = scmp.eq.s32.totalorder %s2246_s4, 0  ;;  %p2248_p2 = scmp.ge.s32.totalorder %s2619_s23, 1 }
   0xa   : > { %p163_p3 = scmp.lt.s32.totalorder %s2619_s23, 3  ;;  %s2621_s27 = smov [#allocation5]  }
   0xb   : > { %s3524_s24 = scalar_select %p2684_p1, 1, 0 }
   0xc   : > { %p2692_p4 = por %p2684_p1, %p42_p0  ;;  %p2696_p5 = pnand %p2248_p2, %p163_p3 }
   0xd   : > { %s175_s28 = sshll.u32 %s2621_s27, 4  ;;  %s2622_s30 = smov [#allocation7]   ;;  %s176_s28 = int_to_ptr.vmem [resolvable:$true] %s175_s28 }
   0xe   : > { %s3525_s25 = scalar_select %p2692_p4, 1, 0 }
   0xf   : > { %s3526_s26 = scalar_select %p2696_p5, 1, 0 }
  0x10   : > { %p2283_p6 = pneg %p2696_p5  ;;  %s189_s6 = sshll.u32 %s2622_s30, 4  ;;  %s190_s6 = int_to_ptr.vmem [resolvable:$true] %s189_s6 }
  0x11   : > { %s2623_s7 = smov [#allocation8]   ;;  %s2482_s9 = scalar_lea.vmem %s176_s28, 32768 }
  0x12   : > { %p2704_p7 = pnand %p2283_p6, %p2684_p1  ;;  %s200_s8 = sshll.u32 %s2623_s7, 4  ;;  %s201_s8 = int_to_ptr.vmem [resolvable:$true] %s200_s8 }
  0x13   : > { %p2483_p9 = scmp.ne.s32.totalorder %s176_s28, %s2482_s9  ;;  %p2490_p12 = scmp.lt.s32.totalorder %s176_s28, %s176_s28 }
  0x14   : > { %p2473_p8 = pneg %p2704_p7  ;;  %p2491_p13 = scmp.lt.s32.totalorder %s2482_s9, %s2482_s9 }
  0x16   : > { %p2485_p10 = pnand %p2483_p9, %p2473_p8  ;;  %p2492_p0 = por %p2491_p13, %p2490_p12 }
  0x18   : > { %p2486_p11 = pneg %p2485_p10 }
  0x1a   : > { %p2493_p2 = pnand %p2492_p0, %p2486_p11 }
  0x1c   : > { %2496 = shalt.err (!%p2493_p2)
}
  0x1d   : > { %s2624_s10 = smov 256   ;;  %s2625_s11 = smov 16  }
  0x1e   : > { %2286 = dma.hbm_to_vmem [thread:$0]  (!%p2704_p7), %s3513_s1, 32768, %s176_s28, [#allocation6], %s2624_s10, %s2624_s10, %s2625_s11  }
  0x1f   : > { %s2508_s14 = scalar_lea.vmem %s190_s6, 32  ;;  %p2516_p10 = scmp.lt.s32.totalorder %s190_s6, %s190_s6 }
  0x20   : > { %p2509_p3 = scmp.ne.s32.totalorder %s190_s6, %s2508_s14  ;;  %p2517_p1 = scmp.lt.s32.totalorder %s2508_s14, %s2508_s14 }
  0x22   : > { %p2511_p6 = pnand %p2509_p3, %p2473_p8  ;;  %p2518_p12 = por %p2517_p1, %p2516_p10 }
  0x24   : > { %p2512_p9 = pneg %p2511_p6 }
  0x26   : > { %p2519_p11 = pnand %p2518_p12, %p2512_p9 }
  0x28   : > { %2522 = shalt.err (!%p2519_p11)
}
  0x29   : > { %2289 = dma.hbm_to_vmem [thread:$0]  (!%p2704_p7), %s3514_s2, 32, %s190_s6, [#allocation6]  }
  0x2a   : > { %s2534_s17 = scalar_lea.vmem %s201_s8, 32  ;;  %p2542_p3 = scmp.lt.s32.totalorder %s201_s8, %s201_s8 }
  0x2b   : > { %p2535_p13 = scmp.ne.s32.totalorder %s201_s8, %s2534_s17  ;;  %p2543_p6 = scmp.lt.s32.totalorder %s2534_s17, %s2534_s17 }
  0x2d   : > { %p2537_p0 = pnand %p2535_p13, %p2473_p8  ;;  %p2544_p4 = por %p2543_p6, %p2542_p3 }
  0x2f   : > { %p2538_p2 = pneg %p2537_p0 }
  0x31   : > { %p2545_p1 = pnand %p2544_p4, %p2538_p2 }
  0x33   : > { %2548 = shalt.err (!%p2545_p1)
}
  0x34   : > { %2292 = dma.hbm_to_vmem [thread:$0]  (!%p2704_p7), %s3515_s3, 32, %s201_s8, [#allocation9]  }
  0x35   : > { %s2735_s20 = sadd.s32 1, %s2619_s23   ;;  %s29_s28 = sadd.s32 1, %s2615_s22 }
  0x36   : > { %s26_s27 = ssub.s32 %s2619_s23, %s2735_s20  ;;  %p36_p8 = scmp.ne.s32.totalorder %s2615_s22, %s2611_s21 }
  0x37   : > { %p27_p4 = scmp.eq.s32.totalorder %s26_s27, 0  ;;  %p37_p9 = scmp.eq.s32.totalorder %s2619_s23, 0 }
  0x38   : > { %p2300_p10 = scmp.lt.s32.totalorder %s2619_s23, 2  ;;  %s214_s30 = sand.u32 1, %s2615_s22  }
  0x39   : > { %s2745_s29 = scalar_select %p27_p4, %s2615_s22, %s29_s28  }
  0x3a   : > { %p38_p12 = por %p37_p9, %p36_p8  ;;  %s2253_s6 = sshll.u32 %s214_s30, 11 }
  0x3b   : > { %s2268_s7 = sshll.u32 %s2619_s23, 15  ;;  %s218_s8 = scalar_lea.vmem [#allocation3], %s2253_s6 }
  0x3c   : > { %s2752_s11 = scalar_lea.hbm %s3512_s0, %s2268_s7  ;;  %s226_s12 = sshll.u32 %s218_s8, 4  ;;  %s2754_s12 = int_to_ptr.vmem [resolvable:$true] %s226_s12 }
  0x3d   : > { %p2756_p7 = pnand %p2300_p10, %p38_p12  ;;  %s2760_s14 = scalar_lea.sflag [#allocation4], %s214_s30 }
  0x3e   : > { %s2549_s15 = scalar_lea.hbm %s2752_s11, 32768  ;;  %s2554_s18 = scalar_lea.hbm %s3512_s0, 65536 }
  0x3f   : > { %p2550_p11 = scmp.ne.s32.totalorder %s2752_s11, %s2549_s15  ;;  %p2551_p13 = pneg %p2756_p7 }
  0x40   : > { %p2555_p3 = scmp.lt.s32.totalorder %s2752_s11, %s3512_s0  ;;  %p2556_p6 = scmp.lt.s32.totalorder %s2554_s18, %s2549_s15 }
  0x41   : > { %p2552_p0 = pnand %p2551_p13, %p2550_p11 }
  0x42   : > { %p2557_p1 = por %p2556_p6, %p2555_p3 }
  0x43   : > { %p2553_p2 = pneg %p2552_p0 }
  0x45   : > { %p2558_p4 = pnand %p2557_p1, %p2553_p2 }
  0x47   : > { %2561 = shalt.err (!%p2558_p4)
}
  0x48   : > { %s2562_s28 = scalar_lea.vmem %s2754_s12, 32768  ;;  %s2626_s30 = smov [#allocation3]  }
  0x49   : > { %p2563_p8 = scmp.ne.s32.totalorder %s2754_s12, %s2562_s28  ;;  %s2567_s6 = sshll.u32 %s2626_s30, 4  ;;  %s2568_s6 = int_to_ptr.vmem [resolvable:$false] %s2567_s6 }
  0x4a   : > { %s2569_s7 = scalar_lea.vmem %s2568_s6, 65536  ;;  %p2570_p12 = scmp.lt.s32.totalorder %s2754_s12, %s2568_s6 }
  0x4b   : > { %p2565_p9 = pnand %p2563_p8, %p2551_p13  ;;  %p2571_p11 = scmp.lt.s32.totalorder %s2569_s7, %s2562_s28 }
  0x4d   : > { %p2566_p10 = pneg %p2565_p9  ;;  %p2572_p0 = por %p2571_p11, %p2570_p12 }
  0x4f   : > { %p2573_p5 = pnand %p2572_p0, %p2566_p10 }
  0x51   : > { %2576 = shalt.err (!%p2573_p5)
}
  0x52   : > { %s2627_s9 = smov 1024   ;;  %s2628_s10 = smov 64  }
  0x53   : > { %2296 = dma.hbm_to_vmem [thread:$0]  (!%p2756_p7), %s2752_s11, 32768, %s2754_s12, %s2760_s14, %s2627_s9, %s2627_s9, %s2628_s10  }
  0x54   : > { %p3529_p13 = scmp.ne.s32.totalorder %s3526_s26, 0 }
  0x56   : > { %238 = sbr.rel (%p3529_p13) target bundleno = 778 (0x30a), region = 40 }
  0x5b   : > { %s240_s8 = sand.u32 1, %s2611_s21   ;;  %p3530_p2 = scmp.ne.s32.totalorder %s3525_s25, 0 }
  0x5c   : > { %s2258_s15 = sshll.u32 %s240_s8, 11  ;;  %s241_s16 = scalar_lea.sflag [#allocation4], %s240_s8 }
  0x5d   : > { %s2784_s17 = scalar_lea.vmem [#allocation3], %s2258_s15 }
  0x5e   : > { %2594 = dma.done.wait (%p3530_p2), %s241_s16, 32768  }
  0x5f   : > { %2596 = vsyncadd (%p3530_p2), %s241_s16, 4294934528  ;;  %p3531_p5 = scmp.ne.s32.totalorder %s3524_s24, 0 }
  0x61   : > { %2598 = dma.done.wait (%p3531_p5), [#allocation6], 32800  }
  0x62   : > { %2600 = vsyncadd (%p3531_p5), [#allocation6], 4294934496 }
  0x63   : > { %2602 = dma.done.wait (%p3531_p5), [#allocation9], 32  }
  0x64   : > { %2604 = vsyncadd (%p3531_p5), [#allocation9], 4294967264  ;;  %v575_v1 = vld [vmem:[#allocation5 + $0xe8] sm:$0xff]  ;;  %v577_v2 = vld [vmem:[#allocation5 + $0xf8] sm:$0xff]  ;;  %s2262_s24 = sshll.u32 %s2246_s4, 5  ;;  %vm2117_vm0 = vcmask 7168  }
  0x65   : > { %v639_v3 = vld [vmem:[#allocation5 + $0x2e8] sm:$0xff]  ;;  %v945_v4 = vpack.c.bf16 %v577_v2, %v575_v1  ;;  %v641_v5 = vld [vmem:[#allocation5 + $0x2f8] sm:$0xff]  ;;  %v574_v6 = vld [vmem:[#allocation5 + $0xe0] sm:$0xff]  ;;  %p285_p7 = scmp.lt.s32.totalorder %s2262_s24, 63 }
  0x66   : > { %v576_v7 = vld [vmem:[#allocation5 + $0xf0] sm:$0xff]  ;;  %v977_v8 = vpack.c.bf16 %v641_v5, %v639_v3  ;;  %v638_v10 = vld [vmem:[#allocation5 + $0x2e0] sm:$0xff]  ;;  %v571_v12 = vld [vmem:[#allocation5 + $0xc8] sm:$0xff] }
  0x67   : > { %v944_v9 = vpack.c.bf16 %v576_v7, %v574_v6  ;;  %v640_v11 = vld [vmem:[#allocation5 + $0x2f0] sm:$0xff]  ;;  %1070 = vmatprep.subr.bf16.mxu0 %v945_v4  ;;  %v573_v14 = vld [vmem:[#allocation5 + $0xd8] sm:$0xff]  ;;  %v635_v15 = vld [vmem:[#allocation5 + $0x2c8] sm:$0xff]  ;;  %s3573_s24 = smov (!%p285_p7, %s2262_s24), 63 }
  0x68   : > { %v976_v13 = vpack.c.bf16 %v640_v11, %v638_v10  ;;  %v637_v16 = vld [vmem:[#allocation5 + $0x2d8] sm:$0xff]  ;;  %1263 = vmatprep.subr.bf16.mxu1 %v977_v8  ;;  %v943_v17 = vpack.c.bf16 %v573_v14, %v571_v12  ;;  %v570_v19 = vld [vmem:[#allocation5 + $0xc0] sm:$0xff]  ;;  %v572_v20 = vld [vmem:[#allocation5 + $0xd0] sm:$0xff]  ;;  %s2263_s25 = sshll.u32 %s3573_s24, 3 }
  0x69   : > { %1071 = vmatpush1.bf16.msra.mxu0 %v944_v9  ;;  %v975_v18 = vpack.c.bf16 %v637_v16, %v635_v15  ;;  %v634_v21 = vld [vmem:[#allocation5 + $0x2c0] sm:$0xff]  ;;  %v942_v22 = vpack.c.bf16 %v572_v20, %v570_v19  ;;  %v636_v23 = vld [vmem:[#allocation5 + $0x2d0] sm:$0xff]  ;;  %v567_v24 = vld [vmem:[#allocation5 + $0xa8] sm:$0xff]  ;;  %s3401_s12 = scalar_lea.vmem %s3517_s5, %s2263_s25 }
  0x6a   : > { %1264 = vmatpush1.bf16.msra.mxu1 %v976_v13  ;;  %v569_v25 = vld [vmem:[#allocation5 + $0xb8] sm:$0xff]  ;;  %1072 = vmatprep.subr.bf16.mxu0 %v943_v17  ;;  %v974_v26 = vpack.c.bf16 %v636_v23, %v634_v21  ;;  %v631_v28 = vld [vmem:[#allocation5 + $0x2a8] sm:$0xff]  ;;  %v566_v30 = vld [vmem:[#allocation5 + $0xa0] sm:$0xff] }
  0x6b   : > { %1265 = vmatprep.subr.bf16.mxu1 %v975_v18  ;;  %v941_v27 = vpack.c.bf16 %v569_v25, %v567_v24  ;;  %v633_v29 = vld [vmem:[#allocation5 + $0x2b8] sm:$0xff]  ;;  %v568_v32 = vld [vmem:[#allocation5 + $0xb0] sm:$0xff]  ;;  %v630_v33 = vld [vmem:[#allocation5 + $0x2a0] sm:$0xff] }
  0x6c   : > { %v973_v31 = vpack.c.bf16 %v633_v29, %v631_v28  ;;  %v632_v34 = vld [vmem:[#allocation5 + $0x2b0] sm:$0xff]  ;;  %v940_v35 = vpack.c.bf16 %v568_v32, %v566_v30  ;;  %v563_v36 = vld [vmem:[#allocation5 + $0x88] sm:$0xff]  ;;  %v565_v37 = vld [vmem:[#allocation5 + $0x98] sm:$0xff] }
  0x6d   : > { %1073 = vmatpush1.bf16.msra.mxu0 %v942_v22  ;;  %v627_v38 = vld [vmem:[#allocation5 + $0x288] sm:$0xff]  ;;  %v972_v39 = vpack.c.bf16 %v632_v34, %v630_v33  ;;  %v939_v40 = vpack.c.bf16 %v565_v37, %v563_v36  ;;  %v629_v41 = vld [vmem:[#allocation5 + $0x298] sm:$0xff]  ;;  %v562_v42 = vld [vmem:[#allocation5 + $0x80] sm:$0xff] }
  0x6e   : > { %1266 = vmatpush1.bf16.msra.mxu1 %v974_v26  ;;  %1074 = vmatprep.subr.bf16.mxu0 %v941_v27  ;;  %v564_v43 = vld [vmem:[#allocation5 + $0x90] sm:$0xff]  ;;  %v971_v44 = vpack.c.bf16 %v629_v41, %v627_v38  ;;  %v626_v45 = vld [vmem:[#allocation5 + $0x280] sm:$0xff]  ;;  %v559_v47 = vld [vmem:[#allocation5 + $0x68] sm:$0xff] }
  0x6f   : > { %1267 = vmatprep.subr.bf16.mxu1 %v973_v31  ;;  %v628_v46 = vld [vmem:[#allocation5 + $0x290] sm:$0xff]  ;;  %v561_v48 = vld [vmem:[#allocation5 + $0x78] sm:$0xff]  ;;  %v623_v49 = vld [vmem:[#allocation5 + $0x268] sm:$0xff]  ;;  %v938_v51 = vpack.c.bf16 %v564_v43, %v562_v42 }
  0x70   : > { %v625_v50 = vld [vmem:[#allocation5 + $0x278] sm:$0xff]  ;;  %v970_v52 = vpack.c.bf16 %v628_v46, %v626_v45  ;;  %v937_v53 = vpack.c.bf16 %v561_v48, %v559_v47  ;;  %v558_v54 = vld [vmem:[#allocation5 + $0x60] sm:$0xff]  ;;  %v560_v55 = vld [vmem:[#allocation5 + $0x70] sm:$0xff] }
  0x71   : > { %1075 = vmatpush1.bf16.msra.mxu0 %v940_v35  ;;  %v622_v56 = vld [vmem:[#allocation5 + $0x260] sm:$0xff]  ;;  %v969_v57 = vpack.c.bf16 %v625_v50, %v623_v49  ;;  %v624_v58 = vld [vmem:[#allocation5 + $0x270] sm:$0xff]  ;;  %v555_v59 = vld [vmem:[#allocation5 + $0x48] sm:$0xff]  ;;  %v936_v63 = vpack.c.bf16 %v560_v55, %v558_v54 }
  0x72   : > { %1268 = vmatpush1.bf16.msra.mxu1 %v972_v39  ;;  %1076 = vmatprep.subr.bf16.mxu0 %v939_v40  ;;  %v557_v60 = vld [vmem:[#allocation5 + $0x58] sm:$0xff]  ;;  %v619_v61 = vld [vmem:[#allocation5 + $0x248] sm:$0xff]  ;;  %v968_v0 = vpack.c.bf16 %v624_v58, %v622_v56  ;;  %v554_v2 = vld [vmem:[#allocation5 + $0x40] sm:$0xff] }
  0x73   : > { %1269 = vmatprep.subr.bf16.mxu1 %v971_v44  ;;  %v621_v62 = vld [vmem:[#allocation5 + $0x258] sm:$0xff]  ;;  %v935_v1 = vpack.c.bf16 %v557_v60, %v555_v59  ;;  %v556_v3 = vld [vmem:[#allocation5 + $0x50] sm:$0xff]  ;;  %v618_v4 = vld [vmem:[#allocation5 + $0x240] sm:$0xff] }
  0x74   : > { %v967_v5 = vpack.c.bf16 %v621_v62, %v619_v61  ;;  %v620_v6 = vld [vmem:[#allocation5 + $0x250] sm:$0xff]  ;;  %v551_v7 = vld [vmem:[#allocation5 + $0x28] sm:$0xff]  ;;  %v553_v8 = vld [vmem:[#allocation5 + $0x38] sm:$0xff]  ;;  %v934_v11 = vpack.c.bf16 %v556_v3, %v554_v2 }
  0x75   : > { %1077 = vmatpush1.bf16.msra.mxu0 %v938_v51  ;;  %v615_v9 = vld [vmem:[#allocation5 + $0x228] sm:$0xff]  ;;  %v617_v10 = vld [vmem:[#allocation5 + $0x238] sm:$0xff]  ;;  %v966_v12 = vpack.c.bf16 %v620_v6, %v618_v4  ;;  %v933_v13 = vpack.c.bf16 %v553_v8, %v551_v7  ;;  %v550_v14 = vld [vmem:[#allocation5 + $0x20] sm:$0xff] }
  0x76   : > { %1270 = vmatpush1.bf16.msra.mxu1 %v970_v52  ;;  %1078 = vmatprep.subr.bf16.mxu0 %v937_v53  ;;  %v552_v15 = vld [vmem:[#allocation5 + $0x30] sm:$0xff]  ;;  %v614_v16 = vld [vmem:[#allocation5 + $0x220] sm:$0xff]  ;;  %v965_v17 = vpack.c.bf16 %v617_v10, %v615_v9  ;;  %v547_v19 = vld [vmem:[#allocation5 + $0x8] sm:$0xff] }
  0x77   : > { %1271 = vmatprep.subr.bf16.mxu1 %v969_v57  ;;  %v616_v18 = vld [vmem:[#allocation5 + $0x230] sm:$0xff]  ;;  %v549_v20 = vld [vmem:[#allocation5 + $0x18] sm:$0xff]  ;;  %v611_v21 = vld [vmem:[#allocation5 + $0x208] sm:$0xff]  ;;  %v932_v23 = vpack.c.bf16 %v552_v15, %v550_v14 }
  0x78   : > { %v613_v22 = vld [vmem:[#allocation5 + $0x218] sm:$0xff]  ;;  %v964_v24 = vpack.c.bf16 %v616_v18, %v614_v16  ;;  %v931_v25 = vpack.c.bf16 %v549_v20, %v547_v19  ;;  %v546_v26 = vld [vmem:[#allocation5] sm:$0xff]  ;;  %v548_v27 = vld [vmem:[#allocation5 + $0x10] sm:$0xff] }
  0x79   : > { %1079 = vmatpush1.bf16.msra.mxu0 %v936_v63  ;;  %v610_v28 = vld [vmem:[#allocation5 + $0x200] sm:$0xff]  ;;  %v963_v29 = vpack.c.bf16 %v613_v22, %v611_v21  ;;  %v612_v30 = vld [vmem:[#allocation5 + $0x210] sm:$0xff]  ;;  %v607_v31 = vld [vmem:[#allocation5 + $0x1e8] sm:$0xff]  ;;  %v930_v35 = vpack.c.bf16 %v548_v27, %v546_v26 }
  0x7a   : > { %1272 = vmatpush1.bf16.msra.mxu1 %v968_v0  ;;  %1080 = vmatprep.subr.bf16.mxu0 %v935_v1  ;;  %v609_v32 = vld [vmem:[#allocation5 + $0x1f8] sm:$0xff]  ;;  %v671_v33 = vld [vmem:[#allocation5 + $0x3e8] sm:$0xff]  ;;  %v962_v36 = vpack.c.bf16 %v612_v30, %v610_v28  ;;  %v606_v38 = vld [vmem:[#allocation5 + $0x1e0] sm:$0xff] }
  0x7b   : > { %1273 = vmatprep.subr.bf16.mxu1 %v967_v5  ;;  %v673_v34 = vld [vmem:[#allocation5 + $0x3f8] sm:$0xff]  ;;  %v961_v37 = vpack.c.bf16 %v609_v32, %v607_v31  ;;  %v608_v39 = vld [vmem:[#allocation5 + $0x1f0] sm:$0xff]  ;;  %v670_v40 = vld [vmem:[#allocation5 + $0x3e0] sm:$0xff] }
  0x7c   : > { %v993_v41 = vpack.c.bf16 %v673_v34, %v671_v33  ;;  %v672_v42 = vld [vmem:[#allocation5 + $0x3f0] sm:$0xff]  ;;  %v603_v43 = vld [vmem:[#allocation5 + $0x1c8] sm:$0xff]  ;;  %v605_v44 = vld [vmem:[#allocation5 + $0x1d8] sm:$0xff]  ;;  %v960_v47 = vpack.c.bf16 %v608_v39, %v606_v38 }
  0x7d   : > { %1081 = vmatpush1.bf16.msra.mxu0 %v934_v11  ;;  %v667_v45 = vld [vmem:[#allocation5 + $0x3c8] sm:$0xff]  ;;  %v669_v46 = vld [vmem:[#allocation5 + $0x3d8] sm:$0xff]  ;;  %v992_v48 = vpack.c.bf16 %v672_v42, %v670_v40  ;;  %v959_v49 = vpack.c.bf16 %v605_v44, %v603_v43  ;;  %v602_v50 = vld [vmem:[#allocation5 + $0x1c0] sm:$0xff] }
  0x7e   : > { %1274 = vmatpush1.bf16.msra.mxu1 %v966_v12  ;;  %1082 = vmatprep.subr.bf16.mxu0 %v933_v13  ;;  %v604_v51 = vld [vmem:[#allocation5 + $0x1d0] sm:$0xff]  ;;  %v666_v52 = vld [vmem:[#allocation5 + $0x3c0] sm:$0xff]  ;;  %v991_v53 = vpack.c.bf16 %v669_v46, %v667_v45  ;;  %v599_v55 = vld [vmem:[#allocation5 + $0x1a8] sm:$0xff] }
  0x7f   : > { %1275 = vmatprep.subr.bf16.mxu1 %v965_v17  ;;  %v668_v54 = vld [vmem:[#allocation5 + $0x3d0] sm:$0xff]  ;;  %v601_v56 = vld [vmem:[#allocation5 + $0x1b8] sm:$0xff]  ;;  %v663_v57 = vld [vmem:[#allocation5 + $0x3a8] sm:$0xff]  ;;  %v958_v59 = vpack.c.bf16 %v604_v51, %v602_v50 }
  0x80   : > { %v665_v58 = vld [vmem:[#allocation5 + $0x3b8] sm:$0xff]  ;;  %v990_v60 = vpack.c.bf16 %v668_v54, %v666_v52  ;;  %v957_v61 = vpack.c.bf16 %v601_v56, %v599_v55  ;;  %v598_v62 = vld [vmem:[#allocation5 + $0x1a0] sm:$0xff]  ;;  %v600_v63 = vld [vmem:[#allocation5 + $0x1b0] sm:$0xff] }
  0x81   : > { %1083 = vmatpush1.bf16.msra.mxu0 %v932_v23  ;;  %v662_v0 = vld [vmem:[#allocation5 + $0x3a0] sm:$0xff]  ;;  %v989_v1 = vpack.c.bf16 %v665_v58, %v663_v57  ;;  %v664_v2 = vld [vmem:[#allocation5 + $0x3b0] sm:$0xff]  ;;  %v595_v3 = vld [vmem:[#allocation5 + $0x188] sm:$0xff]  ;;  %v956_v7 = vpack.c.bf16 %v600_v63, %v598_v62 }
  0x82   : > { %1276 = vmatpush1.bf16.msra.mxu1 %v964_v24  ;;  %1084 = vmatprep.subr.bf16.mxu0 %v931_v25  ;;  %v597_v4 = vld [vmem:[#allocation5 + $0x198] sm:$0xff]  ;;  %v659_v5 = vld [vmem:[#allocation5 + $0x388] sm:$0xff]  ;;  %v594_v8 = vld [vmem:[#allocation5 + $0x180] sm:$0xff]  ;;  %v988_v11 = vpack.c.bf16 %v664_v2, %v662_v0 }
  0x83   : > { %1277 = vmatprep.subr.bf16.mxu1 %v963_v29  ;;  %v661_v6 = vld [vmem:[#allocation5 + $0x398] sm:$0xff]  ;;  %v596_v9 = vld [vmem:[#allocation5 + $0x190] sm:$0xff]  ;;  %v658_v10 = vld [vmem:[#allocation5 + $0x380] sm:$0xff]  ;;  %v955_v12 = vpack.c.bf16 %v597_v4, %v595_v3 }
  0x84   : > { %v660_v13 = vld [vmem:[#allocation5 + $0x390] sm:$0xff]  ;;  %v591_v14 = vld [vmem:[#allocation5 + $0x168] sm:$0xff]  ;;  %v593_v15 = vld [vmem:[#allocation5 + $0x178] sm:$0xff]  ;;  %v987_v16 = vpack.c.bf16 %v661_v6, %v659_v5  ;;  %v954_v23 = vpack.c.bf16 %v596_v9, %v594_v8 }
  0x85   : > { %1085 = vmatpush1.bf16.msra.mxu0 %v930_v35  ;;  %v655_v17 = vld [vmem:[#allocation5 + $0x368] sm:$0xff]  ;;  %v657_v18 = vld [vmem:[#allocation5 + $0x378] sm:$0xff]  ;;  %v986_v26 = vpack.c.bf16 %v660_v13, %v658_v10  ;;  %v953_v27 = vpack.c.bf16 %v593_v15, %v591_v14  ;;  %v590_v28 = vld [vmem:[#allocation5 + $0x160] sm:$0xff] }
  0x86   : > { %1278 = vmatpush1.bf16.msra.mxu1 %v962_v36  ;;  %1086 = vmatprep.subr.bf16.mxu0 %v961_v37  ;;  %v291_v19 = vld [vmem:[%s2784_s17 + $0x8] sm:$0xff]  ;;  %v293_v21 = vld [vmem:[%s2784_s17 + $0x18] sm:$0xff]  ;;  %v592_v29 = vld [vmem:[#allocation5 + $0x170] sm:$0xff]  ;;  %v985_v31 = vpack.c.bf16 %v657_v18, %v655_v17 }
  0x87   : > { %1279 = vmatprep.subr.bf16.mxu1 %v993_v41  ;;  %v299_v20 = vld [vmem:[%s2784_s17 + $0x48] sm:$0xff]  ;;  %v301_v22 = vld [vmem:[%s2784_s17 + $0x58] sm:$0xff]  ;;  %v654_v30 = vld [vmem:[#allocation5 + $0x360] sm:$0xff]  ;;  %v952_v37 = vpack.c.bf16 %v592_v29, %v590_v28 }
  0x88   : > { %v803_v24 = vpack.c.bf16 %v299_v20, %v291_v19  ;;  %v805_v25 = vpack.c.bf16 %v301_v22, %v293_v21  ;;  %v656_v32 = vld [vmem:[#allocation5 + $0x370] sm:$0xff]  ;;  %v587_v33 = vld [vmem:[#allocation5 + $0x148] sm:$0xff]  ;;  %v589_v34 = vld [vmem:[#allocation5 + $0x158] sm:$0xff] }
  0x89   : > { %1087 = vmatpush2.bf16.msra.mxu0 %v960_v47  ;;  %v651_v35 = vld [vmem:[#allocation5 + $0x348] sm:$0xff]  ;;  %v653_v36 = vld [vmem:[#allocation5 + $0x358] sm:$0xff]  ;;  %v984_v38 = vpack.c.bf16 %v656_v32, %v654_v30  ;;  %v951_v39 = vpack.c.bf16 %v589_v34, %v587_v33  ;;  %v586_v40 = vld [vmem:[#allocation5 + $0x140] sm:$0xff] }
  0x8a   : > { %1280 = vmatpush2.bf16.msra.mxu1 %v992_v48  ;;  %1088 = vmatprep.subr.bf16.mxu0 %v959_v49  ;;  %v588_v41 = vld [vmem:[#allocation5 + $0x150] sm:$0xff]  ;;  %v650_v42 = vld [vmem:[#allocation5 + $0x340] sm:$0xff]  ;;  %v983_v43 = vpack.c.bf16 %v653_v36, %v651_v35  ;;  %v583_v45 = vld [vmem:[#allocation5 + $0x128] sm:$0xff] }
  0x8b   : > { %1281 = vmatprep.subr.bf16.mxu1 %v991_v53  ;;  %1102 = vmatprep.mubr.bf16.mxu0 %v803_v24  ;;  %v652_v44 = vld [vmem:[#allocation5 + $0x350] sm:$0xff]  ;;  %v585_v46 = vld [vmem:[#allocation5 + $0x138] sm:$0xff]  ;;  %v647_v47 = vld [vmem:[#allocation5 + $0x328] sm:$0xff]  ;;  %v950_v49 = vpack.c.bf16 %v588_v41, %v586_v40 }
  0x8c   : > { %1295 = vmatprep.mubr.bf16.mxu1 %v805_v25  ;;  %v649_v48 = vld [vmem:[#allocation5 + $0x338] sm:$0xff]  ;;  %v982_v50 = vpack.c.bf16 %v652_v44, %v650_v42  ;;  %v949_v51 = vpack.c.bf16 %v585_v46, %v583_v45  ;;  %v582_v52 = vld [vmem:[#allocation5 + $0x120] sm:$0xff]  ;;  %v584_v53 = vld [vmem:[#allocation5 + $0x130] sm:$0xff] }
  0x8d   : > { %1089 = vmatpush2.bf16.msra.mxu0 %v958_v59  ;;  %v646_v54 = vld [vmem:[#allocation5 + $0x320] sm:$0xff]  ;;  %v981_v55 = vpack.c.bf16 %v649_v48, %v647_v47  ;;  %v648_v56 = vld [vmem:[#allocation5 + $0x330] sm:$0xff]  ;;  %v579_v57 = vld [vmem:[#allocation5 + $0x108] sm:$0xff] }
  0x8e   : > { %1282 = vmatpush2.bf16.msra.mxu1 %v990_v60  ;;  %1090 = vmatprep.subr.bf16.mxu0 %v957_v61  ;;  %v581_v58 = vld [vmem:[#allocation5 + $0x118] sm:$0xff]  ;;  %v643_v59 = vld [vmem:[#allocation5 + $0x308] sm:$0xff]  ;;  %v948_v61 = vpack.c.bf16 %v584_v53, %v582_v52  ;;  %v578_v62 = vld [vmem:[#allocation5 + $0x100] sm:$0xff]  ;;  %v980_v63 = vpack.c.bf16 %v648_v56, %v646_v54 }
  0x8f   : > { %1283 = vmatprep.subr.bf16.mxu1 %v989_v1  ;;  %v645_v60 = vld [vmem:[#allocation5 + $0x318] sm:$0xff]  ;;  %v947_v0 = vpack.c.bf16 %v581_v58, %v579_v57  ;;  %v580_v1 = vld [vmem:[#allocation5 + $0x110] sm:$0xff]  ;;  %v642_v2 = vld [vmem:[#allocation5 + $0x300] sm:$0xff] }
  0x90   : > { %v644_v3 = vld [vmem:[#allocation5 + $0x310] sm:$0xff]  ;;  %v979_v4 = vpack.c.bf16 %v645_v60, %v643_v59  ;;  %v290_v5 = vld [vmem:[%s2784_s17] sm:$0xff]  ;;  %v703_v6 = vld [vmem:[#allocation5 + $0x4e8] sm:$0xff] }
  0x91   : > { %1091 = vmatpush2.bf16.msra.mxu0 %v956_v7  ;;  %v705_v7 = vld [vmem:[#allocation5 + $0x4f8] sm:$0xff]  ;;  %v298_v8 = vld [vmem:[%s2784_s17 + $0x40] sm:$0xff]  ;;  %v767_v9 = vld [vmem:[#allocation5 + $0x6e8] sm:$0xff]  ;;  %v978_v15 = vpack.c.bf16 %v644_v3, %v642_v2 }
  0x92   : > { %1284 = vmatpush2.bf16.msra.mxu1 %v988_v11  ;;  %1092 = vmatprep.subr.bf16.mxu0 %v955_v12  ;;  %v769_v10 = vld [vmem:[#allocation5 + $0x6f8] sm:$0xff]  ;;  %v946_v11 = vpack.c.bf16 %v580_v1, %v578_v62  ;;  %v292_v12 = vld [vmem:[%s2784_s17 + $0x10] sm:$0xff]  ;;  %v702_v14 = vld [vmem:[#allocation5 + $0x4e0] sm:$0xff]  ;;  %v802_v24 = vpack.c.bf16 %v298_v8, %v290_v5 }
  0x93   : > { %1285 = vmatprep.subr.bf16.mxu1 %v987_v16  ;;  %v300_v13 = vld [vmem:[%s2784_s17 + $0x50] sm:$0xff]  ;;  %v1009_v16 = vpack.c.bf16 %v705_v7, %v703_v6  ;;  %v766_v18 = vld [vmem:[#allocation5 + $0x6e0] sm:$0xff]  ;;  %v1041_v20 = vpack.c.bf16 %v769_v10, %v767_v9  ;;  %v307_v21 = vld [vmem:[%s2784_s17 + $0x88] sm:$0xff] }
  0x94   : > { %v704_v17 = vld [vmem:[#allocation5 + $0x4f0] sm:$0xff]  ;;  %v315_v22 = vld [vmem:[%s2784_s17 + $0xc8] sm:$0xff]  ;;  %v317_v25 = vld [vmem:[%s2784_s17 + $0xd8] sm:$0xff]  ;;  %v804_v28 = vpack.c.bf16 %v300_v13, %v292_v12 }
  0x95   : > { %1093 = vmatpush2.bf16.msra.mxu0 %v954_v23  ;;  %v768_v19 = vld [vmem:[#allocation5 + $0x6f0] sm:$0xff]  ;;  %v309_v23 = vld [vmem:[%s2784_s17 + $0x98] sm:$0xff]  ;;  %v1008_v29 = vpack.c.bf16 %v704_v17, %v702_v14  ;;  %v763_v30 = vld [vmem:[#allocation5 + $0x6c8] sm:$0xff]  ;;  %v811_v33 = vpack.c.bf16 %v315_v22, %v307_v21 }
  0x96   : > { %1286 = vmatpush2.bf16.msra.mxu1 %v986_v26  ;;  %1094 = vmatprep.subr.bf16.mxu0 %v953_v27  ;;  %v699_v26 = vld [vmem:[#allocation5 + $0x4c8] sm:$0xff]  ;;  %v701_v27 = vld [vmem:[#allocation5 + $0x4d8] sm:$0xff]  ;;  %v1040_v32 = vpack.c.bf16 %v768_v19, %v766_v18  ;;  %v698_v34 = vld [vmem:[#allocation5 + $0x4c0] sm:$0xff] }
  0x97   : > { %1287 = vmatprep.subr.bf16.mxu1 %v985_v31  ;;  %v765_v31 = vld [vmem:[#allocation5 + $0x6d8] sm:$0xff]  ;;  %v700_v35 = vld [vmem:[#allocation5 + $0x4d0] sm:$0xff]  ;;  %v762_v36 = vld [vmem:[#allocation5 + $0x6c0] sm:$0xff] }
  0x98   : > { %v764_v40 = vld [vmem:[#allocation5 + $0x6d0] sm:$0xff]  ;;  %v695_v41 = vld [vmem:[#allocation5 + $0x4a8] sm:$0xff]  ;;  %v697_v42 = vld [vmem:[#allocation5 + $0x4b8] sm:$0xff]  ;;  %v1039_v44 = vpack.c.bf16 %v765_v31, %v763_v30 }
  0x99   : > { %1095 = vmatpush2.bf16.msra.mxu0 %v952_v37  ;;  %v813_v37 = vpack.c.bf16 %v317_v25, %v309_v23  ;;  %v759_v45 = vld [vmem:[#allocation5 + $0x6a8] sm:$0xff]  ;;  %v761_v46 = vld [vmem:[#allocation5 + $0x6b8] sm:$0xff]  ;;  %v308_v47 = vld [vmem:[%s2784_s17 + $0x90] sm:$0xff] }
  0x9a   : > { %1288 = vmatpush2.bf16.msra.mxu1 %v984_v38  ;;  %1096 = vmatprep.subr.bf16.mxu0 %v951_v39  ;;  %v306_v38 = vld [vmem:[%s2784_s17 + $0x80] sm:$0xff]  ;;  %v1007_v39 = vpack.c.bf16 %v701_v27, %v699_v26  ;;  %v316_v48 = vld [vmem:[%s2784_s17 + $0xd0] sm:$0xff]  ;;  %v331_v52 = vld [vmem:[%s2784_s17 + $0x148] sm:$0xff]  ;;  %v1037_v58 = vpack.c.bf16 %v761_v46, %v759_v45 }
  0x9b   : > { %1289 = vmatprep.subr.bf16.mxu1 %v983_v43  ;;  %v314_v43 = vld [vmem:[%s2784_s17 + $0xc0] sm:$0xff]  ;;  %v325_v53 = vld [vmem:[%s2784_s17 + $0x118] sm:$0xff]  ;;  %v696_v57 = vld [vmem:[#allocation5 + $0x4b0] sm:$0xff] }
  0x9c   : > { %v333_v54 = vld [vmem:[%s2784_s17 + $0x158] sm:$0xff]  ;;  %v694_v56 = vld [vmem:[#allocation5 + $0x4a0] sm:$0xff]  ;;  %v810_v60 = vpack.c.bf16 %v314_v43, %v306_v38  ;;  %v691_v62 = vld [vmem:[#allocation5 + $0x488] sm:$0xff] }
  0x9d   : > { %1097 = vmatpush2.bf16.msra.mxu0 %v950_v49  ;;  %v1006_v49 = vpack.c.bf16 %v700_v35, %v698_v34  ;;  %v758_v59 = vld [vmem:[#allocation5 + $0x6a0] sm:$0xff]  ;;  %v755_v2 = vld [vmem:[#allocation5 + $0x688] sm:$0xff]  ;;  %v757_v3 = vld [vmem:[#allocation5 + $0x698] sm:$0xff]  ;;  %v1004_v5 = vpack.c.bf16 %v696_v57, %v694_v56 }
  0x9e   : > { %1290 = vmatpush2.bf16.msra.mxu1 %v982_v50  ;;  %1098 = vmatprep.subr.bf16.mxu0 %v949_v51  ;;  %v323_v50 = vld [vmem:[%s2784_s17 + $0x108] sm:$0xff]  ;;  %v1038_v51 = vpack.c.bf16 %v764_v40, %v762_v36  ;;  %v322_v6 = vld [vmem:[%s2784_s17 + $0x100] sm:$0xff]  ;;  %v324_v13 = vld [vmem:[%s2784_s17 + $0x110] sm:$0xff] }
  0x9f   : > { %1291 = vmatprep.subr.bf16.mxu1 %v981_v55  ;;  %v1005_v55 = vpack.c.bf16 %v697_v42, %v695_v41  ;;  %v819_v1 = vpack.c.bf16 %v331_v52, %v323_v50  ;;  %v330_v7 = vld [vmem:[%s2784_s17 + $0x140] sm:$0xff]  ;;  %v332_v14 = vld [vmem:[%s2784_s17 + $0x150] sm:$0xff]  ;;  %v687_v17 = vld [vmem:[#allocation5 + $0x468] sm:$0xff] }
  0xa0   : > { %v690_v10 = vld [vmem:[#allocation5 + $0x480] sm:$0xff]  ;;  %v689_v18 = vld [vmem:[#allocation5 + $0x478] sm:$0xff]  ;;  %v339_v19 = vld [vmem:[%s2784_s17 + $0x188] sm:$0xff]  ;;  %v818_v31 = vpack.c.bf16 %v330_v7, %v322_v6  ;;  %v820_v36 = vpack.c.bf16 %v332_v14, %v324_v13 }
  0xa1   : > { %1099 = vmatpush2.bf16.msra.mxu0 %v948_v61  ;;  %v760_v61 = vld [vmem:[#allocation5 + $0x6b0] sm:$0xff]  ;;  %v754_v12 = vld [vmem:[#allocation5 + $0x680] sm:$0xff]  ;;  %v753_v21 = vld [vmem:[#allocation5 + $0x678] sm:$0xff]  ;;  %v1001_v27 = vpack.c.bf16 %v689_v18, %v687_v17 }
  0xa2   : > { %1292 = vmatpush2.bf16.msra.mxu1 %v980_v63  ;;  %1100 = vmatprep.subr.bf16.mxu0 %v947_v0  ;;  %v693_v63 = vld [vmem:[#allocation5 + $0x498] sm:$0xff]  ;;  %v812_v0 = vpack.c.bf16 %v316_v48, %v308_v47  ;;  %v1036_v8 = vpack.c.bf16 %v760_v61, %v758_v59  ;;  %v347_v22 = vld [vmem:[%s2784_s17 + $0x1c8] sm:$0xff]  ;;  %v750_v30 = vld [vmem:[#allocation5 + $0x660] sm:$0xff] }
  0xa3   : > { %1293 = vmatprep.subr.bf16.mxu1 %v979_v4  ;;  %v821_v4 = vpack.c.bf16 %v333_v54, %v325_v53  ;;  %v1003_v9 = vpack.c.bf16 %v693_v63, %v691_v62  ;;  %v341_v23 = vld [vmem:[%s2784_s17 + $0x198] sm:$0xff]  ;;  %v683_v34 = vld [vmem:[#allocation5 + $0x448] sm:$0xff]  ;;  %v338_v42 = vld [vmem:[%s2784_s17 + $0x180] sm:$0xff] }
  0xa4   : > { %v685_v35 = vld [vmem:[#allocation5 + $0x458] sm:$0xff]  ;;  %v747_v38 = vld [vmem:[#allocation5 + $0x648] sm:$0xff]  ;;  %v346_v43 = vld [vmem:[%s2784_s17 + $0x1c0] sm:$0xff] }
  0xa5   : > { %1101 = vmatpush2.bf16.msra.mxu0 %v946_v11  ;;  %v692_v11 = vld [vmem:[#allocation5 + $0x490] sm:$0xff]  ;;  %v999_v45 = vpack.c.bf16 %v685_v35, %v683_v34  ;;  %v682_v46 = vld [vmem:[#allocation5 + $0x440] sm:$0xff]  ;;  %v679_v53 = vld [vmem:[#allocation5 + $0x428] sm:$0xff] }
  0xa6   : > { %1294 = vmatpush2.bf16.msra.mxu1 %v978_v15  ;;  %1456 = vmatprep.subr.bf16.mxu0 %v1009_v16  ;;  %v1035_v15 = vpack.c.bf16 %v757_v3, %v755_v2  ;;  %v756_v16 = vld [vmem:[#allocation5 + $0x690] sm:$0xff]  ;;  %v1002_v25 = vpack.c.bf16 %v692_v11, %v690_v10  ;;  %v746_v48 = vld [vmem:[#allocation5 + $0x640] sm:$0xff]  ;;  %v681_v54 = vld [vmem:[#allocation5 + $0x438] sm:$0xff]  ;;  %v826_v3 = vpack.c.bf16 %v346_v43, %v338_v42 }
  0xa7   : > { %1649 = vmatprep.subr.bf16.mxu1 %v1041_v20  ;;  %v751_v20 = vld [vmem:[#allocation5 + $0x668] sm:$0xff]  ;;  %v1034_v26 = vpack.c.bf16 %v756_v16, %v754_v12  ;;  %v684_v47 = vld [vmem:[#allocation5 + $0x450] sm:$0xff]  ;;  %v745_v57 = vld [vmem:[#allocation5 + $0x638] sm:$0xff]  ;;  %v997_v63 = vpack.c.bf16 %v681_v54, %v679_v53 }
  0xa8   : > { %1103 = vmatmul.mubr.bf16.vlgmr.msra.gmra.mxu0 %v802_v24  ;;  %v349_v24 = vld [vmem:[%s2784_s17 + $0x1d8] sm:$0xff]  ;;  %v348_v50 = vld [vmem:[%s2784_s17 + $0x1d0] sm:$0xff]  ;;  %v743_v56 = vld [vmem:[#allocation5 + $0x628] sm:$0xff]  ;;  %v998_v61 = vpack.c.bf16 %v684_v47, %v682_v46 }
  0xa9   : > { %1296 = vmatmul.mubr.bf16.vlgmr.msra.gmra.mxu1 %v804_v28  ;;  %1457 = vmatpush1.bf16.msra.mxu0 %v1008_v29  ;;  %v686_v28 = vld [vmem:[#allocation5 + $0x460] sm:$0xff]  ;;  %v688_v29 = vld [vmem:[#allocation5 + $0x470] sm:$0xff]  ;;  %v829_v40 = vpack.c.bf16 %v349_v24, %v341_v23  ;;  %v357_v59 = vld [vmem:[%s2784_s17 + $0x218] sm:$0xff] }
  0xaa   : > { %1650 = vmatpush1.bf16.msra.mxu1 %v1040_v32  ;;  %1112 = vmatprep.mubr.bf16.mxu0 %v811_v33  ;;  %v1033_v32 = vpack.c.bf16 %v753_v21, %v751_v20  ;;  %v752_v33 = vld [vmem:[#allocation5 + $0x670] sm:$0xff]  ;;  %v1000_v41 = vpack.c.bf16 %v688_v29, %v686_v28  ;;  %v742_v2 = vld [vmem:[#allocation5 + $0x620] sm:$0xff]  ;;  %v675_v6 = vld [vmem:[#allocation5 + $0x408] sm:$0xff] }
  0xab   : > { %1305 = vmatprep.mubr.bf16.mxu1 %v813_v37  ;;  %1458 = vmatprep.subr.bf16.mxu0 %v1007_v39  ;;  %v827_v37 = vpack.c.bf16 %v347_v22, %v339_v19  ;;  %v749_v39 = vld [vmem:[#allocation5 + $0x658] sm:$0xff]  ;;  %v748_v52 = vld [vmem:[#allocation5 + $0x650] sm:$0xff]  ;;  %v739_v10 = vld [vmem:[#allocation5 + $0x608] sm:$0xff] }
  0xac   : > { %1651 = vmatprep.subr.bf16.mxu1 %v1039_v44  ;;  %v1032_v44 = vpack.c.bf16 %v752_v33, %v750_v30  ;;  %v1030_v62 = vpack.c.bf16 %v748_v52, %v746_v48  ;;  %v677_v7 = vld [vmem:[#allocation5 + $0x418] sm:$0xff]  ;;  %v354_v14 = vld [vmem:[%s2784_s17 + $0x200] sm:$0xff]  ;;  %v676_v19 = vld [vmem:[#allocation5 + $0x410] sm:$0xff] }
  0xad   : > { %1459 = vmatpush1.bf16.msra.mxu0 %v1006_v49  ;;  %v340_v49 = vld [vmem:[%s2784_s17 + $0x190] sm:$0xff]  ;;  %v741_v11 = vld [vmem:[#allocation5 + $0x618] sm:$0xff]  ;;  %v995_v17 = vpack.c.bf16 %v677_v7, %v675_v6  ;;  %v674_v18 = vld [vmem:[#allocation5 + $0x400] sm:$0xff] }
  0xae   : > { %1652 = vmatpush1.bf16.msra.mxu1 %v1038_v51  ;;  %1460 = vmatprep.subr.bf16.mxu0 %v1005_v55  ;;  %v1031_v51 = vpack.c.bf16 %v749_v39, %v747_v38  ;;  %v355_v55 = vld [vmem:[%s2784_s17 + $0x208] sm:$0xff]  ;;  %v738_v20 = vld [vmem:[#allocation5 + $0x600] sm:$0xff]  ;;  %v356_v21 = vld [vmem:[%s2784_s17 + $0x210] sm:$0xff]  ;;  %v1027_v23 = vpack.c.bf16 %v741_v11, %v739_v10  ;;  %v994_v33 = vpack.c.bf16 %v676_v19, %v674_v18 }
  0xaf   : > { %1653 = vmatprep.subr.bf16.mxu1 %v1037_v58  ;;  %v363_v58 = vld [vmem:[%s2784_s17 + $0x248] sm:$0xff]  ;;  %v364_v22 = vld [vmem:[%s2784_s17 + $0x250] sm:$0xff]  ;;  %v801_v29 = vld [vmem:[#allocation5 + $0x7f8] sm:$0xff] }
  0xb0   : > { %1113 = vmatmul.mubr.bf16.gmra.mxu0 %v810_v60  ;;  %v365_v60 = vld [vmem:[%s2784_s17 + $0x258] sm:$0xff]  ;;  %v740_v24 = vld [vmem:[#allocation5 + $0x610] sm:$0xff]  ;;  %v799_v28 = vld [vmem:[#allocation5 + $0x7e8] sm:$0xff] }
  0xb1   : > { %1306 = vmatmul.mubr.bf16.gmra.mxu1 %v812_v0  ;;  %1122 = vmatprep.mubr.bf16.mxu0 %v819_v1  ;;  %v678_v0 = vld [vmem:[#allocation5 + $0x420] sm:$0xff]  ;;  %v680_v1 = vld [vmem:[#allocation5 + $0x430] sm:$0xff]  ;;  %v837_v12 = vpack.c.bf16 %v365_v60, %v357_v59  ;;  %v379_v30 = vld [vmem:[%s2784_s17 + $0x2c8] sm:$0xff]  ;;  %v1026_v34 = vpack.c.bf16 %v740_v24, %v738_v20 }
  0xb2   : > { %1315 = vmatprep.mubr.bf16.mxu1 %v821_v4  ;;  %1461 = vmatpush1.bf16.msra.mxu0 %v1004_v5  ;;  %v1029_v4 = vpack.c.bf16 %v745_v57, %v743_v56  ;;  %v744_v5 = vld [vmem:[#allocation5 + $0x630] sm:$0xff]  ;;  %v996_v13 = vpack.c.bf16 %v680_v1, %v678_v0  ;;  %v798_v38 = vld [vmem:[#allocation5 + $0x7e0] sm:$0xff]  ;;  %v731_v42 = vld [vmem:[#allocation5 + $0x5c8] sm:$0xff] }
  0xb3   : > { %1654 = vmatpush1.bf16.msra.mxu1 %v1036_v8  ;;  %1462 = vmatprep.subr.bf16.mxu0 %v1003_v9  ;;  %v828_v8 = vpack.c.bf16 %v348_v50, %v340_v49  ;;  %v835_v9 = vpack.c.bf16 %v363_v58, %v355_v55  ;;  %v1028_v16 = vpack.c.bf16 %v744_v5, %v742_v2  ;;  %v733_v43 = vld [vmem:[#allocation5 + $0x5d8] sm:$0xff]  ;;  %v795_v46 = vld [vmem:[#allocation5 + $0x7c8] sm:$0xff]  ;;  %v370_v50 = vld [vmem:[%s2784_s17 + $0x280] sm:$0xff] }
  0xb4   : > { %1655 = vmatprep.subr.bf16.mxu1 %v1035_v15  ;;  %v362_v15 = vld [vmem:[%s2784_s17 + $0x240] sm:$0xff]  ;;  %v797_v47 = vld [vmem:[#allocation5 + $0x7d8] sm:$0xff]  ;;  %v1023_v53 = vpack.c.bf16 %v733_v43, %v731_v42  ;;  %v732_v55 = vld [vmem:[#allocation5 + $0x5d0] sm:$0xff] }
  0xb5   : > { %v834_v39 = vpack.c.bf16 %v362_v15, %v354_v14  ;;  %v730_v54 = vld [vmem:[#allocation5 + $0x5c0] sm:$0xff]  ;;  %v372_v57 = vld [vmem:[%s2784_s17 + $0x290] sm:$0xff]  ;;  %v1055_v58 = vpack.c.bf16 %v797_v47, %v795_v46  ;;  %v727_v60 = vld [vmem:[#allocation5 + $0x5a8] sm:$0xff] }
  0xb6   : > { %1463 = vmatpush1.bf16.msra.mxu0 %v1002_v25  ;;  %v735_v25 = vld [vmem:[#allocation5 + $0x5e8] sm:$0xff]  ;;  %v794_v56 = vld [vmem:[#allocation5 + $0x7c0] sm:$0xff]  ;;  %v796_v59 = vld [vmem:[#allocation5 + $0x7d0] sm:$0xff] }
  0xb7   : > { %1656 = vmatpush1.bf16.msra.mxu1 %v1034_v26  ;;  %1464 = vmatprep.subr.bf16.mxu0 %v1001_v27  ;;  %v737_v26 = vld [vmem:[#allocation5 + $0x5f8] sm:$0xff]  ;;  %v371_v27 = vld [vmem:[%s2784_s17 + $0x288] sm:$0xff]  ;;  %v1054_v6 = vpack.c.bf16 %v796_v59, %v794_v56  ;;  %v718_v42 = vld [vmem:[#allocation5 + $0x560] sm:$0xff] }
  0xb8   : > { %1123 = vmatmul.mubr.bf16.gmra.mxu0 %v818_v31  ;;  %1657 = vmatprep.subr.bf16.mxu1 %v1033_v32  ;;  %v373_v31 = vld [vmem:[%s2784_s17 + $0x298] sm:$0xff]  ;;  %v1025_v35 = vpack.c.bf16 %v737_v26, %v735_v25  ;;  %v387_v1 = vld [vmem:[%s2784_s17 + $0x308] sm:$0xff]  ;;  %v722_v26 = vld [vmem:[#allocation5 + $0x580] sm:$0xff] }
  0xb9   : > { %1316 = vmatmul.mubr.bf16.gmra.mxu1 %v820_v36  ;;  %1132 = vmatprep.mubr.bf16.mxu0 %v827_v37  ;;  %v381_v32 = vld [vmem:[%s2784_s17 + $0x2d8] sm:$0xff]  ;;  %v734_v36 = vld [vmem:[#allocation5 + $0x5e0] sm:$0xff]  ;;  %v736_v37 = vld [vmem:[#allocation5 + $0x5f0] sm:$0xff] }
  0xba   : > { %1325 = vmatprep.mubr.bf16.mxu1 %v829_v40  ;;  %1465 = vmatpush1.bf16.msra.mxu0 %v1000_v41  ;;  %v1057_v40 = vpack.c.bf16 %v801_v29, %v799_v28  ;;  %v800_v41 = vld [vmem:[#allocation5 + $0x7f0] sm:$0xff]  ;;  %v845_v48 = vpack.c.bf16 %v381_v32, %v373_v31  ;;  %v1024_v49 = vpack.c.bf16 %v736_v37, %v734_v36  ;;  %v793_v0 = vld [vmem:[#allocation5 + $0x7b8] sm:$0xff]  ;;  %v395_v2 = vld [vmem:[%s2784_s17 + $0x348] sm:$0xff] }
  0xbb   : > { %1658 = vmatpush1.bf16.msra.mxu1 %v1032_v44  ;;  %1466 = vmatprep.subr.bf16.mxu0 %v999_v45  ;;  %v836_v44 = vpack.c.bf16 %v364_v22, %v356_v21  ;;  %v843_v45 = vpack.c.bf16 %v379_v30, %v371_v27  ;;  %v1056_v52 = vpack.c.bf16 %v800_v41, %v798_v38  ;;  %v397_v5 = vld [vmem:[%s2784_s17 + $0x358] sm:$0xff]  ;;  %v787_v20 = vld [vmem:[#allocation5 + $0x788] sm:$0xff]  ;;  %v386_v22 = vld [vmem:[%s2784_s17 + $0x300] sm:$0xff] }
  0xbc   : > { %1659 = vmatprep.subr.bf16.mxu1 %v1031_v51  ;;  %v378_v51 = vld [vmem:[%s2784_s17 + $0x2c0] sm:$0xff]  ;;  %v851_v15 = vpack.c.bf16 %v395_v2, %v387_v1  ;;  %v789_v21 = vld [vmem:[#allocation5 + $0x798] sm:$0xff]  ;;  %v724_v27 = vld [vmem:[#allocation5 + $0x590] sm:$0xff] }
  0xbd   : > { %v842_v10 = vpack.c.bf16 %v378_v51, %v370_v50  ;;  %v388_v28 = vld [vmem:[%s2784_s17 + $0x310] sm:$0xff]  ;;  %v1051_v30 = vpack.c.bf16 %v789_v21, %v787_v20  ;;  %v786_v31 = vld [vmem:[#allocation5 + $0x780] sm:$0xff]  ;;  %v413_v36 = vld [vmem:[%s2784_s17 + $0x3d8] sm:$0xff]  ;;  %v1018_v37 = vpack.c.bf16 %v724_v27, %v722_v26 }
  0xbe   : > { %1467 = vmatpush1.bf16.msra.mxu0 %v998_v61  ;;  %v729_v61 = vld [vmem:[#allocation5 + $0x5b8] sm:$0xff]  ;;  %v396_v29 = vld [vmem:[%s2784_s17 + $0x350] sm:$0xff]  ;;  %v719_v38 = vld [vmem:[#allocation5 + $0x568] sm:$0xff] }
  0xbf   : > { %1660 = vmatpush1.bf16.msra.mxu1 %v1030_v62  ;;  %1468 = vmatprep.subr.bf16.mxu0 %v997_v63  ;;  %v380_v62 = vld [vmem:[%s2784_s17 + $0x2d0] sm:$0xff]  ;;  %v791_v63 = vld [vmem:[#allocation5 + $0x7a8] sm:$0xff]  ;;  %v1021_v7 = vpack.c.bf16 %v729_v61, %v727_v60  ;;  %v785_v46 = vld [vmem:[#allocation5 + $0x778] sm:$0xff] }
  0xc0   : > { %1133 = vmatmul.mubr.bf16.gmra.mxu0 %v826_v3  ;;  %1661 = vmatprep.subr.bf16.mxu1 %v1029_v4  ;;  %v389_v3 = vld [vmem:[%s2784_s17 + $0x318] sm:$0xff]  ;;  %v1022_v4 = vpack.c.bf16 %v732_v55, %v730_v54  ;;  %v1053_v11 = vpack.c.bf16 %v793_v0, %v791_v63  ;;  %v844_v14 = vpack.c.bf16 %v380_v62, %v372_v57  ;;  %v788_v32 = vld [vmem:[#allocation5 + $0x790] sm:$0xff]  ;;  %v782_v47 = vld [vmem:[#allocation5 + $0x760] sm:$0xff] }
  0xc1   : > { %1326 = vmatmul.mubr.bf16.gmra.mxu1 %v828_v8  ;;  %1142 = vmatprep.mubr.bf16.mxu0 %v835_v9  ;;  %v726_v8 = vld [vmem:[#allocation5 + $0x5a0] sm:$0xff]  ;;  %v728_v9 = vld [vmem:[#allocation5 + $0x5b0] sm:$0xff]  ;;  %v853_v18 = vpack.c.bf16 %v397_v5, %v389_v3  ;;  %v715_v57 = vld [vmem:[#allocation5 + $0x548] sm:$0xff] }
  0xc2   : > { %1335 = vmatprep.mubr.bf16.mxu1 %v837_v12  ;;  %1469 = vmatpush1.bf16.msra.mxu0 %v996_v13  ;;  %v790_v12 = vld [vmem:[#allocation5 + $0x7a0] sm:$0xff]  ;;  %v792_v13 = vld [vmem:[#allocation5 + $0x7b0] sm:$0xff]  ;;  %v1020_v19 = vpack.c.bf16 %v728_v9, %v726_v8  ;;  %v717_v60 = vld [vmem:[#allocation5 + $0x558] sm:$0xff] }
  0xc3   : > { %1662 = vmatpush1.bf16.msra.mxu1 %v1028_v16  ;;  %1470 = vmatprep.subr.bf16.mxu0 %v995_v17  ;;  %v723_v16 = vld [vmem:[#allocation5 + $0x588] sm:$0xff]  ;;  %v725_v17 = vld [vmem:[#allocation5 + $0x598] sm:$0xff]  ;;  %v1052_v24 = vpack.c.bf16 %v792_v13, %v790_v12  ;;  %v720_v43 = vld [vmem:[#allocation5 + $0x570] sm:$0xff]  ;;  %v1015_v63 = vpack.c.bf16 %v717_v60, %v715_v57 }
  0xc4   : > { %1663 = vmatprep.subr.bf16.mxu1 %v1027_v23  ;;  %v394_v23 = vld [vmem:[%s2784_s17 + $0x340] sm:$0xff]  ;;  %v1019_v25 = vpack.c.bf16 %v725_v17, %v723_v16  ;;  %v412_v59 = vld [vmem:[%s2784_s17 + $0x3d0] sm:$0xff]  ;;  %v779_v0 = vld [vmem:[#allocation5 + $0x748] sm:$0xff] }
  0xc5   : > { %v402_v54 = vld [vmem:[%s2784_s17 + $0x380] sm:$0xff]  ;;  %v716_v62 = vld [vmem:[#allocation5 + $0x550] sm:$0xff]  ;;  %v781_v1 = vld [vmem:[#allocation5 + $0x758] sm:$0xff] }
  0xc6   : > { %1471 = vmatpush1.bf16.msra.mxu0 %v994_v33  ;;  %v403_v33 = vld [vmem:[%s2784_s17 + $0x388] sm:$0xff]  ;;  %v410_v55 = vld [vmem:[%s2784_s17 + $0x3c0] sm:$0xff]  ;;  %v421_v8 = vld [vmem:[%s2784_s17 + $0x418] sm:$0xff] }
  0xc7   : > { %1664 = vmatpush1.bf16.msra.mxu1 %v1026_v34  ;;  %1472 = vmatprep.subr.bf16.mxu0 %v1025_v35  ;;  %v411_v34 = vld [vmem:[%s2784_s17 + $0x3c8] sm:$0xff]  ;;  %v405_v35 = vld [vmem:[%s2784_s17 + $0x398] sm:$0xff]  ;;  %v714_v61 = vld [vmem:[#allocation5 + $0x540] sm:$0xff] }
  0xc8   : > { %1143 = vmatmul.mubr.bf16.gmra.mxu0 %v834_v39  ;;  %1665 = vmatprep.subr.bf16.mxu1 %v1057_v40  ;;  %v721_v39 = vld [vmem:[#allocation5 + $0x578] sm:$0xff]  ;;  %v1050_v40 = vpack.c.bf16 %v788_v32, %v786_v31  ;;  %v859_v50 = vpack.c.bf16 %v411_v34, %v403_v33  ;;  %v778_v2 = vld [vmem:[#allocation5 + $0x740] sm:$0xff]  ;;  %v419_v3 = vld [vmem:[%s2784_s17 + $0x408] sm:$0xff]  ;;  %v1014_v5 = vpack.c.bf16 %v716_v62, %v714_v61 }
  0xc9   : > { %1336 = vmatmul.mubr.bf16.gmra.mxu1 %v836_v44  ;;  %1152 = vmatprep.mubr.bf16.mxu0 %v843_v45  ;;  %v1017_v41 = vpack.c.bf16 %v721_v39, %v719_v38  ;;  %v783_v44 = vld [vmem:[#allocation5 + $0x768] sm:$0xff]  ;;  %v850_v45 = vpack.c.bf16 %v394_v23, %v386_v22  ;;  %v429_v9 = vld [vmem:[%s2784_s17 + $0x458] sm:$0xff]  ;;  %v710_v16 = vld [vmem:[#allocation5 + $0x520] sm:$0xff] }
  0xca   : > { %1345 = vmatprep.mubr.bf16.mxu1 %v845_v48  ;;  %1473 = vmatpush2.bf16.msra.mxu0 %v1024_v49  ;;  %v784_v48 = vld [vmem:[#allocation5 + $0x770] sm:$0xff]  ;;  %v852_v49 = vpack.c.bf16 %v396_v29, %v388_v28  ;;  %v1049_v51 = vpack.c.bf16 %v785_v46, %v783_v44  ;;  %v869_v17 = vpack.c.bf16 %v429_v9, %v421_v8  ;;  %v775_v20 = vld [vmem:[#allocation5 + $0x728] sm:$0xff]  ;;  %v777_v21 = vld [vmem:[#allocation5 + $0x738] sm:$0xff] }
  0xcb   : > { %1666 = vmatpush2.bf16.msra.mxu1 %v1056_v52  ;;  %1474 = vmatprep.subr.bf16.mxu0 %v1023_v53  ;;  %v861_v52 = vpack.c.bf16 %v413_v36, %v405_v35  ;;  %v1016_v53 = vpack.c.bf16 %v720_v43, %v718_v42  ;;  %v1048_v56 = vpack.c.bf16 %v784_v48, %v782_v47  ;;  %v418_v22 = vld [vmem:[%s2784_s17 + $0x400] sm:$0xff]  ;;  %v776_v26 = vld [vmem:[#allocation5 + $0x730] sm:$0xff]  ;;  %v435_v31 = vld [vmem:[%s2784_s17 + $0x488] sm:$0xff] }
  0xcc   : > { %1667 = vmatprep.subr.bf16.mxu1 %v1055_v58  ;;  %v404_v58 = vld [vmem:[%s2784_s17 + $0x390] sm:$0xff]  ;;  %v426_v27 = vld [vmem:[%s2784_s17 + $0x440] sm:$0xff]  ;;  %v443_v32 = vld [vmem:[%s2784_s17 + $0x4c8] sm:$0xff] }
  0xcd   : > { %v860_v12 = vpack.c.bf16 %v412_v59, %v404_v58  ;;  %v420_v28 = vld [vmem:[%s2784_s17 + $0x410] sm:$0xff]  ;;  %v437_v33 = vld [vmem:[%s2784_s17 + $0x498] sm:$0xff]  ;;  %v707_v35 = vld [vmem:[#allocation5 + $0x508] sm:$0xff]  ;;  %v875_v47 = vpack.c.bf16 %v443_v32, %v435_v31 }
  0xce   : > { %1475 = vmatpush2.bf16.msra.mxu0 %v1022_v4  ;;  %v427_v4 = vld [vmem:[%s2784_s17 + $0x448] sm:$0xff]  ;;  %v428_v29 = vld [vmem:[%s2784_s17 + $0x450] sm:$0xff]  ;;  %v445_v34 = vld [vmem:[%s2784_s17 + $0x4d8] sm:$0xff] }
  0xcf   : > { %1668 = vmatpush2.bf16.msra.mxu1 %v1054_v6  ;;  %1476 = vmatprep.subr.bf16.mxu0 %v1021_v7  ;;  %v1047_v6 = vpack.c.bf16 %v781_v1, %v779_v0  ;;  %v780_v7 = vld [vmem:[#allocation5 + $0x750] sm:$0xff]  ;;  %v867_v13 = vpack.c.bf16 %v427_v4, %v419_v3  ;;  %v709_v36 = vld [vmem:[#allocation5 + $0x518] sm:$0xff]  ;;  %v706_v38 = vld [vmem:[#allocation5 + $0x500] sm:$0xff]  ;;  %v868_v46 = vpack.c.bf16 %v428_v29, %v420_v28 }
  0xd0   : > { %1153 = vmatmul.mubr.bf16.gmra.mxu0 %v842_v10  ;;  %1669 = vmatprep.subr.bf16.mxu1 %v1053_v11  ;;  %v1046_v10 = vpack.c.bf16 %v780_v7, %v778_v2  ;;  %v858_v11 = vpack.c.bf16 %v410_v55, %v402_v54  ;;  %v708_v39 = vld [vmem:[#allocation5 + $0x510] sm:$0xff]  ;;  %v773_v43 = vld [vmem:[#allocation5 + $0x718] sm:$0xff]  ;;  %v770_v44 = vld [vmem:[#allocation5 + $0x700] sm:$0xff] }
  0xd1   : > { %1346 = vmatmul.mubr.bf16.gmra.mxu1 %v844_v14  ;;  %1162 = vmatprep.mubr.bf16.mxu0 %v851_v15  ;;  %v711_v14 = vld [vmem:[#allocation5 + $0x528] sm:$0xff]  ;;  %v713_v15 = vld [vmem:[#allocation5 + $0x538] sm:$0xff]  ;;  %v1010_v42 = vpack.c.bf16 %v708_v39, %v706_v38  ;;  %v444_v54 = vld [vmem:[%s2784_s17 + $0x4d0] sm:$0xff] }
  0xd2   : > { %1355 = vmatprep.mubr.bf16.mxu1 %v853_v18  ;;  %1477 = vmatpush2.bf16.msra.mxu0 %v1020_v19  ;;  %v1013_v18 = vpack.c.bf16 %v713_v15, %v711_v14  ;;  %v712_v19 = vld [vmem:[#allocation5 + $0x530] sm:$0xff]  ;;  %v451_v55 = vld [vmem:[%s2784_s17 + $0x508] sm:$0xff]  ;;  %v453_v57 = vld [vmem:[%s2784_s17 + $0x518] sm:$0xff] }
  0xd3   : > { %1670 = vmatpush2.bf16.msra.mxu1 %v1052_v24  ;;  %1478 = vmatprep.subr.bf16.mxu0 %v1019_v25  ;;  %v1012_v23 = vpack.c.bf16 %v712_v19, %v710_v16  ;;  %v1045_v24 = vpack.c.bf16 %v777_v21, %v775_v20  ;;  %v774_v25 = vld [vmem:[#allocation5 + $0x720] sm:$0xff]  ;;  %v461_v58 = vld [vmem:[%s2784_s17 + $0x558] sm:$0xff]  ;;  %v452_v1 = vld [vmem:[%s2784_s17 + $0x510] sm:$0xff] }
  0xd4   : > { %1671 = vmatprep.subr.bf16.mxu1 %v1051_v30  ;;  %v1044_v30 = vpack.c.bf16 %v776_v26, %v774_v25  ;;  %v885_v62 = vpack.c.bf16 %v461_v58, %v453_v57  ;;  %v458_v0 = vld [vmem:[%s2784_s17 + $0x540] sm:$0xff]  ;;  %v460_v2 = vld [vmem:[%s2784_s17 + $0x550] sm:$0xff]  ;;  %v467_v3 = vld [vmem:[%s2784_s17 + $0x588] sm:$0xff] }
  0xd5   : > { %v475_v4 = vld [vmem:[%s2784_s17 + $0x5c8] sm:$0xff]  ;;  %v884_v8 = vpack.c.bf16 %v460_v2, %v452_v1  ;;  %v476_v14 = vld [vmem:[%s2784_s17 + $0x5d0] sm:$0xff]  ;;  %v501_v29 = vld [vmem:[%s2784_s17 + $0x698] sm:$0xff] }
  0xd6   : > { %1479 = vmatpush2.bf16.msra.mxu0 %v1018_v37  ;;  %v1011_v37 = vpack.c.bf16 %v709_v36, %v707_v35  ;;  %v891_v9 = vpack.c.bf16 %v475_v4, %v467_v3  ;;  %v483_v15 = vld [vmem:[%s2784_s17 + $0x608] sm:$0xff]  ;;  %v484_v25 = vld [vmem:[%s2784_s17 + $0x610] sm:$0xff]  ;;  %v498_v35 = vld [vmem:[%s2784_s17 + $0x680] sm:$0xff] }
  0xd7   : > { %1672 = vmatpush2.bf16.msra.mxu1 %v1050_v40  ;;  %1480 = vmatprep.subr.bf16.mxu0 %v1017_v41  ;;  %v771_v40 = vld [vmem:[#allocation5 + $0x708] sm:$0xff]  ;;  %v866_v41 = vpack.c.bf16 %v426_v27, %v418_v22  ;;  %v492_v26 = vld [vmem:[%s2784_s17 + $0x650] sm:$0xff]  ;;  %v506_v36 = vld [vmem:[%s2784_s17 + $0x6c0] sm:$0xff] }
  0xd8   : > { %1163 = vmatmul.mubr.bf16.gmra.mxu0 %v850_v45  ;;  %1673 = vmatprep.subr.bf16.mxu1 %v1049_v51  ;;  %v772_v45 = vld [vmem:[#allocation5 + $0x710] sm:$0xff]  ;;  %v1043_v48 = vpack.c.bf16 %v773_v43, %v771_v40  ;;  %v434_v51 = vld [vmem:[%s2784_s17 + $0x480] sm:$0xff]  ;;  %v491_v16 = vld [vmem:[%s2784_s17 + $0x648] sm:$0xff]  ;;  %v900_v32 = vpack.c.bf16 %v492_v26, %v484_v25  ;;  %v906_v43 = vpack.c.bf16 %v506_v36, %v498_v35 }
  0xd9   : > { %1356 = vmatmul.mubr.bf16.gmra.mxu1 %v852_v49  ;;  %1172 = vmatprep.mubr.bf16.mxu0 %v859_v50  ;;  %v1042_v49 = vpack.c.bf16 %v772_v45, %v770_v44  ;;  %v877_v50 = vpack.c.bf16 %v445_v34, %v437_v33  ;;  %v899_v21 = vpack.c.bf16 %v491_v16, %v483_v15  ;;  %v499_v27 = vld [vmem:[%s2784_s17 + $0x688] sm:$0xff]  ;;  %v508_v38 = vld [vmem:[%s2784_s17 + $0x6d0] sm:$0xff]  ;;  %v297_v1 = vld [vmem:[%s2784_s17 + $0x38] sm:$0xff] }
  0xda   : > { %1365 = vmatprep.mubr.bf16.mxu1 %v861_v52  ;;  %1481 = vmatpush2.bf16.msra.mxu0 %v1016_v53  ;;  %v442_v52 = vld [vmem:[%s2784_s17 + $0x4c0] sm:$0xff]  ;;  %v436_v53 = vld [vmem:[%s2784_s17 + $0x490] sm:$0xff]  ;;  %v507_v28 = vld [vmem:[%s2784_s17 + $0x6c8] sm:$0xff] }
  0xdb   : > { %1674 = vmatpush2.bf16.msra.mxu1 %v1048_v56  ;;  %1482 = vmatprep.subr.bf16.mxu0 %v1015_v63  ;;  %v459_v56 = vld [vmem:[%s2784_s17 + $0x548] sm:$0xff]  ;;  %v874_v59 = vpack.c.bf16 %v442_v52, %v434_v51  ;;  %v876_v60 = vpack.c.bf16 %v444_v54, %v436_v53  ;;  %v450_v63 = vld [vmem:[%s2784_s17 + $0x500] sm:$0xff]  ;;  %v907_v33 = vpack.c.bf16 %v507_v28, %v499_v27  ;;  %v533_v53 = vld [vmem:[%s2784_s17 + $0x798] sm:$0xff] }
  0xdc   : > { %1675 = vmatprep.subr.bf16.mxu1 %v1047_v6  ;;  %v883_v61 = vpack.c.bf16 %v459_v56, %v451_v55  ;;  %v477_v6 = vld [vmem:[%s2784_s17 + $0x5d8] sm:$0xff]  ;;  %v882_v7 = vpack.c.bf16 %v458_v0, %v450_v63  ;;  %v515_v39 = vld [vmem:[%s2784_s17 + $0x708] sm:$0xff] }
  0xdd   : > { %v523_v40 = vld [vmem:[%s2784_s17 + $0x748] sm:$0xff]  ;;  %v541_v54 = vld [vmem:[%s2784_s17 + $0x7d8] sm:$0xff] }
  0xde   : > { %1483 = vmatpush2.bf16.msra.mxu0 %v1014_v5  ;;  %v469_v5 = vld [vmem:[%s2784_s17 + $0x598] sm:$0xff]  ;;  %v915_v45 = vpack.c.bf16 %v523_v40, %v515_v39  ;;  %v531_v51 = vld [vmem:[%s2784_s17 + $0x788] sm:$0xff]  ;;  %v925_v58 = vpack.c.bf16 %v541_v54, %v533_v53 }
  0xdf   : > { %1676 = vmatpush2.bf16.msra.mxu1 %v1046_v10  ;;  %1484 = vmatprep.subr.bf16.mxu0 %v1013_v18  ;;  %v893_v10 = vpack.c.bf16 %v477_v6, %v469_v5  ;;  %v493_v18 = vld [vmem:[%s2784_s17 + $0x658] sm:$0xff]  ;;  %v539_v52 = vld [vmem:[%s2784_s17 + $0x7c8] sm:$0xff] }
  0xe0   : > { %1173 = vmatmul.mubr.bf16.gmra.mxu0 %v858_v11  ;;  %1677 = vmatprep.subr.bf16.mxu1 %v1045_v24  ;;  %v466_v11 = vld [vmem:[%s2784_s17 + $0x580] sm:$0xff]  ;;  %v923_v57 = vpack.c.bf16 %v539_v52, %v531_v51  ;;  %v295_v63 = vld [vmem:[%s2784_s17 + $0x28] sm:$0xff]  ;;  %v305_v2 = vld [vmem:[%s2784_s17 + $0x78] sm:$0xff] }
  0xe1   : > { %1366 = vmatmul.mubr.bf16.gmra.mxu1 %v860_v12  ;;  %1182 = vmatprep.mubr.bf16.mxu0 %v867_v13  ;;  %v474_v12 = vld [vmem:[%s2784_s17 + $0x5c0] sm:$0xff]  ;;  %v468_v13 = vld [vmem:[%s2784_s17 + $0x590] sm:$0xff]  ;;  %v303_v0 = vld [vmem:[%s2784_s17 + $0x68] sm:$0xff]  ;;  %v809_v6 = vpack.c.bf16 %v305_v2, %v297_v1 }
  0xe2   : > { %1375 = vmatprep.mubr.bf16.mxu1 %v869_v17  ;;  %1485 = vmatpush2.bf16.msra.mxu0 %v1012_v23  ;;  %v485_v17 = vld [vmem:[%s2784_s17 + $0x618] sm:$0xff]  ;;  %v890_v19 = vpack.c.bf16 %v474_v12, %v466_v11  ;;  %v892_v20 = vpack.c.bf16 %v476_v14, %v468_v13  ;;  %v482_v23 = vld [vmem:[%s2784_s17 + $0x600] sm:$0xff]  ;;  %v807_v5 = vpack.c.bf16 %v303_v0, %v295_v63  ;;  %v311_v11 = vld [vmem:[%s2784_s17 + $0xa8] sm:$0xff] }
  0xe3   : > { %1678 = vmatpush2.bf16.msra.mxu1 %v1044_v30  ;;  %1486 = vmatprep.subr.bf16.mxu0 %v1011_v37  ;;  %v901_v22 = vpack.c.bf16 %v493_v18, %v485_v17  ;;  %v490_v24 = vld [vmem:[%s2784_s17 + $0x640] sm:$0xff]  ;;  %v509_v30 = vld [vmem:[%s2784_s17 + $0x6d8] sm:$0xff]  ;;  %v500_v37 = vld [vmem:[%s2784_s17 + $0x690] sm:$0xff] }
  0xe4   : > { %1679 = vmatprep.subr.bf16.mxu1 %v1043_v48  ;;  %v898_v31 = vpack.c.bf16 %v490_v24, %v482_v23  ;;  %v909_v34 = vpack.c.bf16 %v509_v30, %v501_v29  ;;  %v908_v44 = vpack.c.bf16 %v508_v38, %v500_v37  ;;  %v522_v48 = vld [vmem:[%s2784_s17 + $0x740] sm:$0xff]  ;;  %v319_v12 = vld [vmem:[%s2784_s17 + $0xe8] sm:$0xff]  ;;  %v313_v13 = vld [vmem:[%s2784_s17 + $0xb8] sm:$0xff] }
  0xe5   : > { %v321_v14 = vld [vmem:[%s2784_s17 + $0xf8] sm:$0xff]  ;;  %v815_v17 = vpack.c.bf16 %v319_v12, %v311_v11  ;;  %v327_v23 = vld [vmem:[%s2784_s17 + $0x128] sm:$0xff] }
  0xe6   : > { %1487 = vmatpush2.bf16.msra.mxu0 %v1010_v42  ;;  %v525_v42 = vld [vmem:[%s2784_s17 + $0x758] sm:$0xff]  ;;  %v817_v18 = vpack.c.bf16 %v321_v14, %v313_v13  ;;  %v335_v24 = vld [vmem:[%s2784_s17 + $0x168] sm:$0xff] }
  0xe7   : > { %1680 = vmatpush2.bf16.msra.mxu1 %v1042_v49  ;;  %v516_v49 = vld [vmem:[%s2784_s17 + $0x710] sm:$0xff]  ;;  %v329_v25 = vld [vmem:[%s2784_s17 + $0x138] sm:$0xff]  ;;  %v823_v29 = vpack.c.bf16 %v335_v24, %v327_v23  ;;  %v343_v35 = vld [vmem:[%s2784_s17 + $0x1a8] sm:$0xff] }
  0xe8   : > { %1183 = vmatmul.mubr.bf16.gmra.mxu0 %v866_v41  ;;  %v517_v41 = vld [vmem:[%s2784_s17 + $0x718] sm:$0xff]  ;;  %v351_v36 = vld [vmem:[%s2784_s17 + $0x1e8] sm:$0xff] }
  0xe9   : > { %1376 = vmatmul.mubr.bf16.gmra.mxu1 %v868_v46  ;;  %1192 = vmatprep.mubr.bf16.mxu0 %v875_v47  ;;  %v917_v46 = vpack.c.bf16 %v525_v42, %v517_v41  ;;  %v514_v47 = vld [vmem:[%s2784_s17 + $0x700] sm:$0xff]  ;;  %v337_v26 = vld [vmem:[%s2784_s17 + $0x178] sm:$0xff]  ;;  %v831_v41 = vpack.c.bf16 %v351_v36, %v343_v35 }
  0xea   : > { %1385 = vmatprep.mubr.bf16.mxu1 %v877_v50  ;;  %v524_v50 = vld [vmem:[%s2784_s17 + $0x750] sm:$0xff]  ;;  %v914_v55 = vpack.c.bf16 %v522_v48, %v514_v47  ;;  %v825_v30 = vpack.c.bf16 %v337_v26, %v329_v25  ;;  %v345_v37 = vld [vmem:[%s2784_s17 + $0x1b8] sm:$0xff]  ;;  %v359_v47 = vld [vmem:[%s2784_s17 + $0x228] sm:$0xff] }
  0xeb   : > { %v916_v56 = vpack.c.bf16 %v524_v50, %v516_v49  ;;  %v353_v38 = vld [vmem:[%s2784_s17 + $0x1f8] sm:$0xff]  ;;  %v367_v48 = vld [vmem:[%s2784_s17 + $0x268] sm:$0xff] }
  0xec   : > { %v833_v42 = vpack.c.bf16 %v353_v38, %v345_v37  ;;  %v361_v49 = vld [vmem:[%s2784_s17 + $0x238] sm:$0xff]  ;;  %v839_v53 = vpack.c.bf16 %v367_v48, %v359_v47  ;;  %v439_v47 = vld [vmem:[%s2784_s17 + $0x4a8] sm:$0xff] }
  0xed   : > { %v369_v50 = vld [vmem:[%s2784_s17 + $0x278] sm:$0xff]  ;;  %v447_v48 = vld [vmem:[%s2784_s17 + $0x4e8] sm:$0xff] }
  0xee   : > { %v841_v54 = vpack.c.bf16 %v369_v50, %v361_v49  ;;  %v433_v35 = vld [vmem:[%s2784_s17 + $0x478] sm:$0xff] }
  0xef   : > { %v441_v50 = vld [vmem:[%s2784_s17 + $0x4b8] sm:$0xff] }
  0xf0   : > { %1193 = vmatmul.mubr.bf16.gmra.mxu0 %v874_v59  ;;  %v530_v59 = vld [vmem:[%s2784_s17 + $0x780] sm:$0xff] }
  0xf1   : > { %1386 = vmatmul.mubr.bf16.gmra.mxu1 %v876_v60  ;;  %1202 = vmatprep.mubr.bf16.mxu0 %v883_v61  ;;  %v538_v60 = vld [vmem:[%s2784_s17 + $0x7c0] sm:$0xff]  ;;  %v532_v61 = vld [vmem:[%s2784_s17 + $0x790] sm:$0xff] }
  0xf2   : > { %1395 = vmatprep.mubr.bf16.mxu1 %v885_v62  ;;  %v540_v62 = vld [vmem:[%s2784_s17 + $0x7d0] sm:$0xff]  ;;  %v922_v3 = vpack.c.bf16 %v538_v60, %v530_v59  ;;  %v375_v59 = vld [vmem:[%s2784_s17 + $0x2a8] sm:$0xff] }
  0xf3   : > { %v924_v4 = vpack.c.bf16 %v540_v62, %v532_v61  ;;  %v383_v60 = vld [vmem:[%s2784_s17 + $0x2e8] sm:$0xff]  ;;  %v377_v61 = vld [vmem:[%s2784_s17 + $0x2b8] sm:$0xff] }
  0xf4   : > { %v385_v62 = vld [vmem:[%s2784_s17 + $0x2f8] sm:$0xff]  ;;  %v847_v1 = vpack.c.bf16 %v383_v60, %v375_v59 }
  0xf5   : > { %v849_v2 = vpack.c.bf16 %v385_v62, %v377_v61  ;;  %v438_v61 = vld [vmem:[%s2784_s17 + $0x4a0] sm:$0xff] }
  0xf6   : > { %v446_v62 = vld [vmem:[%s2784_s17 + $0x4e0] sm:$0xff] }
  0xf8   : > { %1203 = vmatmul.mubr.bf16.gmra.mxu0 %v882_v7  ;;  %v294_v7 = vld [vmem:[%s2784_s17 + $0x20] sm:$0xff] }
  0xf9   : > { %1396 = vmatmul.mubr.bf16.gmra.mxu1 %v884_v8  ;;  %1212 = vmatprep.mubr.bf16.mxu0 %v891_v9  ;;  %v302_v8 = vld [vmem:[%s2784_s17 + $0x60] sm:$0xff]  ;;  %v296_v9 = vld [vmem:[%s2784_s17 + $0x30] sm:$0xff] }
  0xfa   : > { %1405 = vmatprep.mubr.bf16.mxu1 %v893_v10  ;;  %v304_v10 = vld [vmem:[%s2784_s17 + $0x70] sm:$0xff]  ;;  %v806_v15 = vpack.c.bf16 %v302_v8, %v294_v7  ;;  %v391_v7 = vld [vmem:[%s2784_s17 + $0x328] sm:$0xff] }
  0xfb   : > { %v808_v16 = vpack.c.bf16 %v304_v10, %v296_v9  ;;  %v399_v8 = vld [vmem:[%s2784_s17 + $0x368] sm:$0xff]  ;;  %v393_v9 = vld [vmem:[%s2784_s17 + $0x338] sm:$0xff] }
  0xfc   : > { %v401_v10 = vld [vmem:[%s2784_s17 + $0x378] sm:$0xff]  ;;  %v855_v13 = vpack.c.bf16 %v399_v8, %v391_v7 }
  0xfd   : > { %v857_v14 = vpack.c.bf16 %v401_v10, %v393_v9  ;;  %v457_v7 = vld [vmem:[%s2784_s17 + $0x538] sm:$0xff]  ;;  %v878_v10 = vpack.c.bf16 %v446_v62, %v438_v61  ;;  %v480_v62 = vld [vmem:[%s2784_s17 + $0x5f0] sm:$0xff] }
  0xfe   : > { %v465_v8 = vld [vmem:[%s2784_s17 + $0x578] sm:$0xff] }
 0x100   : > { %1213 = vmatmul.mubr.bf16.gmra.mxu0 %v890_v19  ;;  %v310_v19 = vld [vmem:[%s2784_s17 + $0xa0] sm:$0xff] }
 0x101   : > { %1406 = vmatmul.mubr.bf16.gmra.mxu1 %v892_v20  ;;  %1222 = vmatprep.mubr.bf16.mxu0 %v899_v21  ;;  %v318_v20 = vld [vmem:[%s2784_s17 + $0xe0] sm:$0xff]  ;;  %v312_v21 = vld [vmem:[%s2784_s17 + $0xb0] sm:$0xff] }
 0x102   : > { %1415 = vmatprep.mubr.bf16.mxu1 %v901_v22  ;;  %v320_v22 = vld [vmem:[%s2784_s17 + $0xf0] sm:$0xff]  ;;  %v814_v27 = vpack.c.bf16 %v318_v20, %v310_v19  ;;  %v407_v19 = vld [vmem:[%s2784_s17 + $0x3a8] sm:$0xff] }
 0x103   : > { %v816_v28 = vpack.c.bf16 %v320_v22, %v312_v21  ;;  %v415_v20 = vld [vmem:[%s2784_s17 + $0x3e8] sm:$0xff]  ;;  %v409_v21 = vld [vmem:[%s2784_s17 + $0x3b8] sm:$0xff] }
 0x104   : > { %v417_v22 = vld [vmem:[%s2784_s17 + $0x3f8] sm:$0xff]  ;;  %v863_v25 = vpack.c.bf16 %v415_v20, %v407_v19 }
 0x105   : > { %v865_v26 = vpack.c.bf16 %v417_v22, %v409_v21 }
 0x108   : > { %1223 = vmatmul.mubr.bf16.gmra.mxu0 %v898_v31  ;;  %v326_v31 = vld [vmem:[%s2784_s17 + $0x120] sm:$0xff] }
 0x109   : > { %1416 = vmatmul.mubr.bf16.gmra.mxu1 %v900_v32  ;;  %1232 = vmatprep.mubr.bf16.mxu0 %v907_v33  ;;  %v334_v32 = vld [vmem:[%s2784_s17 + $0x160] sm:$0xff]  ;;  %v328_v33 = vld [vmem:[%s2784_s17 + $0x130] sm:$0xff] }
 0x10a   : > { %1425 = vmatprep.mubr.bf16.mxu1 %v909_v34  ;;  %v336_v34 = vld [vmem:[%s2784_s17 + $0x170] sm:$0xff]  ;;  %v822_v39 = vpack.c.bf16 %v334_v32, %v326_v31  ;;  %v423_v32 = vld [vmem:[%s2784_s17 + $0x428] sm:$0xff] }
 0x10b   : > { %v824_v40 = vpack.c.bf16 %v336_v34, %v328_v33  ;;  %v416_v31 = vld [vmem:[%s2784_s17 + $0x3f0] sm:$0xff]  ;;  %v431_v33 = vld [vmem:[%s2784_s17 + $0x468] sm:$0xff]  ;;  %v425_v34 = vld [vmem:[%s2784_s17 + $0x438] sm:$0xff] }
 0x10c   : > { %v871_v38 = vpack.c.bf16 %v431_v33, %v423_v32 }
 0x110   : > { %1233 = vmatmul.mubr.bf16.gmra.mxu0 %v906_v43  ;;  %v342_v43 = vld [vmem:[%s2784_s17 + $0x1a0] sm:$0xff] }
 0x111   : > { %1426 = vmatmul.mubr.bf16.gmra.mxu1 %v908_v44  ;;  %1242 = vmatprep.mubr.bf16.mxu0 %v915_v45  ;;  %v350_v44 = vld [vmem:[%s2784_s17 + $0x1e0] sm:$0xff]  ;;  %v344_v45 = vld [vmem:[%s2784_s17 + $0x1b0] sm:$0xff] }
 0x112   : > { %1435 = vmatprep.mubr.bf16.mxu1 %v917_v46  ;;  %v352_v46 = vld [vmem:[%s2784_s17 + $0x1f0] sm:$0xff]  ;;  %v830_v51 = vpack.c.bf16 %v350_v44, %v342_v43  ;;  %v422_v43 = vld [vmem:[%s2784_s17 + $0x420] sm:$0xff] }
 0x113   : > { %v832_v52 = vpack.c.bf16 %v352_v46, %v344_v45  ;;  %v430_v44 = vld [vmem:[%s2784_s17 + $0x460] sm:$0xff]  ;;  %v424_v45 = vld [vmem:[%s2784_s17 + $0x430] sm:$0xff] }
 0x114   : > { %v432_v46 = vld [vmem:[%s2784_s17 + $0x470] sm:$0xff] }
 0x118   : > { %1243 = vmatmul.mubr.bf16.gmra.mxu0 %v914_v55  ;;  %v358_v55 = vld [vmem:[%s2784_s17 + $0x220] sm:$0xff] }
 0x119   : > { %1436 = vmatmul.mubr.bf16.gmra.mxu1 %v916_v56  ;;  %1252 = vmatprep.mubr.bf16.mxu0 %v923_v57  ;;  %v366_v56 = vld [vmem:[%s2784_s17 + $0x260] sm:$0xff]  ;;  %v360_v57 = vld [vmem:[%s2784_s17 + $0x230] sm:$0xff] }
 0x11a   : > { %1445 = vmatprep.mubr.bf16.mxu1 %v925_v58  ;;  %v368_v58 = vld [vmem:[%s2784_s17 + $0x270] sm:$0xff]  ;;  %v838_v63 = vpack.c.bf16 %v366_v56, %v358_v55  ;;  %v879_v55 = vpack.c.bf16 %v447_v48, %v439_v47 }
 0x11b   : > { %v840_v0 = vpack.c.bf16 %v368_v58, %v360_v57 }
 0x120   : > { %1253 = vmatmul.mubr.bf16.gmra.mxu0 %v922_v3  ;;  %v374_v3 = vld [vmem:[%s2784_s17 + $0x2a0] sm:$0xff] }
 0x121   : > { %1446 = vmatmul.mubr.bf16.gmra.mxu1 %v924_v4  ;;  %1488 = vmatprep.mubr.bf16.mxu0 %v807_v5  ;;  %v382_v4 = vld [vmem:[%s2784_s17 + $0x2e0] sm:$0xff]  ;;  %v376_v5 = vld [vmem:[%s2784_s17 + $0x2b0] sm:$0xff] }
 0x122   : > { %1681 = vmatprep.mubr.bf16.mxu1 %v809_v6  ;;  %v384_v6 = vld [vmem:[%s2784_s17 + $0x2f0] sm:$0xff]  ;;  %v846_v11 = vpack.c.bf16 %v382_v4, %v374_v3  ;;  %v463_v3 = vld [vmem:[%s2784_s17 + $0x568] sm:$0xff] }
 0x123   : > { %v848_v12 = vpack.c.bf16 %v384_v6, %v376_v5 }
 0x128   : > { %1489 = vmatmul.mubr.bf16.vlgmr.msra.gmra.mxu0 %v806_v15  ;;  %v390_v15 = vld [vmem:[%s2784_s17 + $0x320] sm:$0xff] }
 0x129   : > { %1682 = vmatmul.mubr.bf16.vlgmr.msra.gmra.mxu1 %v808_v16  ;;  %1498 = vmatprep.mubr.bf16.mxu0 %v815_v17  ;;  %v398_v16 = vld [vmem:[%s2784_s17 + $0x360] sm:$0xff]  ;;  %v392_v17 = vld [vmem:[%s2784_s17 + $0x330] sm:$0xff] }
 0x12a   : > { %1691 = vmatprep.mubr.bf16.mxu1 %v817_v18  ;;  %v400_v18 = vld [vmem:[%s2784_s17 + $0x370] sm:$0xff]  ;;  %v854_v23 = vpack.c.bf16 %v398_v16, %v390_v15 }
 0x12b   : > { %v856_v24 = vpack.c.bf16 %v400_v18, %v392_v17  ;;  %v889_v17 = vpack.c.bf16 %v465_v8, %v457_v7 }
 0x130   : > { %1499 = vmatmul.mubr.bf16.gmra.mxu0 %v814_v27  ;;  %v406_v27 = vld [vmem:[%s2784_s17 + $0x3a0] sm:$0xff] }
 0x131   : > { %1692 = vmatmul.mubr.bf16.gmra.mxu1 %v816_v28  ;;  %1508 = vmatprep.mubr.bf16.mxu0 %v823_v29  ;;  %v414_v28 = vld [vmem:[%s2784_s17 + $0x3e0] sm:$0xff]  ;;  %v408_v29 = vld [vmem:[%s2784_s17 + $0x3b0] sm:$0xff] }
 0x132   : > { %1701 = vmatprep.mubr.bf16.mxu1 %v825_v30  ;;  %v1060_v30 = vlaneseq  ;;  %v862_v36 = vpack.c.bf16 %v414_v28, %v406_v27  ;;  %v864_v37 = vpack.c.bf16 %v416_v31, %v408_v29  ;;  %v456_v27 = vld [vmem:[%s2784_s17 + $0x530] sm:$0xff]  ;;  %v479_v31 = vld [vmem:[%s2784_s17 + $0x5e8] sm:$0xff] }
 0x133   : > { %v464_v29 = vld [vmem:[%s2784_s17 + $0x570] sm:$0xff] }
 0x138   : > { %1509 = vmatmul.mubr.bf16.gmra.mxu0 %v822_v39  ;;  %v2994_v39 = vshrl.u32 %v1060_v30, 7  ;;  %v471_v30 = vld [vmem:[%s2784_s17 + $0x5a8] sm:$0xff] }
 0x139   : > { %1702 = vmatmul.mubr.bf16.gmra.mxu1 %v824_v40  ;;  %1518 = vmatprep.mubr.bf16.mxu0 %v831_v41  ;;  %v873_v40 = vpack.c.bf16 %v433_v35, %v425_v34  ;;  %v1058_v41 = vld [vmem:[#allocation7] sm:$0x3]  ;;  %v473_v35 = vld [vmem:[%s2784_s17 + $0x5b8] sm:$0xff] }
 0x13a   : > { %1711 = vmatprep.mubr.bf16.mxu1 %v833_v42  ;;  %v3523_v42 = vsub.s32 0, %v2994_v39  ;;  %v3522_v49 = vsub.s32 1, %v2994_v39 }
 0x13c   : > { %v3012_v57 = vrot.slane %v1058_v41, %v3522_v49 }
 0x140   : > { %1519 = vmatmul.mubr.bf16.gmra.mxu0 %v830_v51  ;;  %v449_v51 = vld [vmem:[%s2784_s17 + $0x4f8] sm:$0xff] }
 0x141   : > { %1712 = vmatmul.mubr.bf16.gmra.mxu1 %v832_v52  ;;  %1528 = vmatprep.mubr.bf16.mxu0 %v839_v53  ;;  %v870_v52 = vpack.c.bf16 %v430_v44, %v422_v43  ;;  %v3008_v53 = vrot.slane %v1058_v41, %v3523_v42  ;;  %v881_v56 = vpack.c.bf16 %v449_v51, %v441_v50 }
 0x142   : > { %1721 = vmatprep.mubr.bf16.mxu1 %v841_v54  ;;  %v872_v54 = vpack.c.bf16 %v432_v46, %v424_v45  ;;  %v888_v44 = vpack.c.bf16 %v464_v29, %v456_v27  ;;  %v895_v45 = vpack.c.bf16 %v479_v31, %v471_v30  ;;  %v494_v27 = vld [vmem:[%s2784_s17 + $0x660] sm:$0xff]  ;;  %v496_v30 = vld [vmem:[%s2784_s17 + $0x670] sm:$0xff]  ;;  %v503_v31 = vld [vmem:[%s2784_s17 + $0x6a8] sm:$0xff] }
 0x148   : > { %1529 = vmatmul.mubr.bf16.gmra.mxu0 %v838_v63  ;;  %v440_v63 = vld [vmem:[%s2784_s17 + $0x4b0] sm:$0xff] }
 0x149   : > { %1722 = vmatmul.mubr.bf16.gmra.mxu1 %v840_v0  ;;  %1538 = vmatprep.mubr.bf16.mxu0 %v847_v1  ;;  %v448_v1 = vld [vmem:[%s2784_s17 + $0x4f0] sm:$0xff] }
 0x14a   : > { %1731 = vmatprep.mubr.bf16.mxu1 %v849_v2  ;;  %v455_v2 = vld [vmem:[%s2784_s17 + $0x528] sm:$0xff] }
 0x14b   : > { %v887_v15 = vpack.c.bf16 %v463_v3, %v455_v2 }
 0x150   : > { %1539 = vmatmul.mubr.bf16.gmra.mxu0 %v846_v11 }
 0x151   : > { %1732 = vmatmul.mubr.bf16.gmra.mxu1 %v848_v12  ;;  %1548 = vmatprep.mubr.bf16.mxu0 %v855_v13 }
 0x152   : > { %1741 = vmatprep.mubr.bf16.mxu1 %v857_v14  ;;  %v880_v14 = vpack.c.bf16 %v448_v1, %v440_v63  ;;  %v487_v63 = vld [vmem:[%s2784_s17 + $0x628] sm:$0xff] }
 0x158   : > { %1549 = vmatmul.mubr.bf16.gmra.mxu0 %v854_v23 }
 0x159   : > { %1742 = vmatmul.mubr.bf16.gmra.mxu1 %v856_v24  ;;  %1558 = vmatprep.mubr.bf16.mxu0 %v863_v25  ;;  %v454_v25 = vld [vmem:[%s2784_s17 + $0x520] sm:$0xff] }
 0x15a   : > { %1751 = vmatprep.mubr.bf16.mxu1 %v865_v26  ;;  %v462_v26 = vld [vmem:[%s2784_s17 + $0x560] sm:$0xff] }
 0x160   : > { %1559 = vmatmul.mubr.bf16.gmra.mxu0 %v862_v36  ;;  %v481_v36 = vld [vmem:[%s2784_s17 + $0x5f8] sm:$0xff] }
 0x161   : > { %1752 = vmatmul.mubr.bf16.gmra.mxu1 %v864_v37  ;;  %1568 = vmatprep.mubr.bf16.mxu0 %v871_v38  ;;  %v886_v38 = vpack.c.bf16 %v462_v26, %v454_v25  ;;  %v897_v47 = vpack.c.bf16 %v481_v36, %v473_v35  ;;  %v486_v26 = vld [vmem:[%s2784_s17 + $0x620] sm:$0xff] }
 0x162   : > { %1761 = vmatprep.mubr.bf16.mxu1 %v873_v40 }
 0x168   : > { %v1104_v58 = vpop.f32.mrf.mxu0  ;;  %1569 = vmatmul.mubr.bf16.gmra.mxu0 %v870_v52 }
 0x169   : > { %v1105_v59 = vadd.f32 %v1104_v58, %v3008_v53  ;;  %v1297_v60 = vpop.f32.mrf.mxu1  ;;  %1762 = vmatmul.mubr.bf16.gmra.mxu1 %v872_v54  ;;  %1578 = vmatprep.mubr.bf16.mxu0 %v879_v55  ;;  %v470_v58 = vld [vmem:[%s2784_s17 + $0x5a0] sm:$0xff] }
 0x16a   : > { %v1106_v0 = vpop.f32.mrf.mxu0  ;;  %1771 = vmatprep.mubr.bf16.mxu1 %v881_v56 }
 0x16b   : > { %v3021_v4 = vadd.f32 %v1297_v60, %v1105_v59  ;;  %v1107_v5 = vadd.f32 %v1106_v0, %v3012_v57  ;;  %v1299_v6 = vpop.f32.mrf.mxu1  ;;  %v478_v59 = vld [vmem:[%s2784_s17 + $0x5e0] sm:$0xff]  ;;  %v472_v60 = vld [vmem:[%s2784_s17 + $0x5b0] sm:$0xff]  ;;  %v495_v0 = vld [vmem:[%s2784_s17 + $0x668] sm:$0xff] }
 0x16c   : > { %v1108_v9 = vpop.f32.mrf.mxu0  ;;  %v894_v8 = vpack.c.bf16 %v478_v59, %v470_v58 }
 0x16d   : > { %v3026_v11 = vadd.f32 %v1299_v6, %v1107_v5  ;;  %v1109_v12 = vadd.f32 %v1108_v9, %v3008_v53  ;;  %v1301_v13 = vpop.f32.mrf.mxu1  ;;  %v489_v5 = vld [vmem:[%s2784_s17 + $0x638] sm:$0xff] }
 0x16e   : > { %v1110_v16 = vpop.f32.mrf.mxu0  ;;  %v497_v6 = vld [vmem:[%s2784_s17 + $0x678] sm:$0xff] }
 0x16f   : > { %v3029_v18 = vadd.f32 %v1301_v13, %v1109_v12  ;;  %v1111_v19 = vadd.f32 %v1110_v16, %v3012_v57  ;;  %v1303_v20 = vpop.f32.mrf.mxu1  ;;  %v896_v13 = vpack.c.bf16 %v480_v62, %v472_v60  ;;  %v905_v16 = vpack.c.bf16 %v497_v6, %v489_v5  ;;  %v512_v5 = vld [vmem:[%s2784_s17 + $0x6f0] sm:$0xff]  ;;  %v519_v6 = vld [vmem:[%s2784_s17 + $0x728] sm:$0xff] }
 0x170   : > { %v1114_v21 = vpop.f32.mrf.mxu0  ;;  %1579 = vmatmul.mubr.bf16.gmra.mxu0 %v878_v10 }
 0x171   : > { %v3032_v22 = vadd.f32 %v1303_v20, %v1111_v19  ;;  %v1115_v23 = vadd.f32 %v1114_v21, %v3008_v53  ;;  %v1307_v24 = vpop.f32.mrf.mxu1  ;;  %1772 = vmatmul.mubr.bf16.gmra.mxu1 %v880_v14  ;;  %1588 = vmatprep.mubr.bf16.mxu0 %v887_v15  ;;  %v903_v14 = vpack.c.bf16 %v495_v0, %v487_v63  ;;  %v502_v63 = vld [vmem:[%s2784_s17 + $0x6a0] sm:$0xff] }
 0x172   : > { %v1116_v28 = vpop.f32.mrf.mxu0  ;;  %1781 = vmatprep.mubr.bf16.mxu1 %v889_v17  ;;  %v510_v0 = vld [vmem:[%s2784_s17 + $0x6e0] sm:$0xff] }
 0x173   : > { %v3041_v32 = vadd.f32 %v1307_v24, %v1115_v23  ;;  %v1117_v33 = vadd.f32 %v1116_v28, %v3012_v57  ;;  %v1309_v34 = vpop.f32.mrf.mxu1  ;;  %v488_v28 = vld [vmem:[%s2784_s17 + $0x630] sm:$0xff] }
 0x174   : > { %v1118_v37 = vpop.f32.mrf.mxu0 }
 0x175   : > { %v3046_v40 = vadd.f32 %v1309_v34, %v1117_v33  ;;  %v1119_v41 = vadd.f32 %v1118_v37, %v3008_v53  ;;  %v1311_v43 = vpop.f32.mrf.mxu1  ;;  %v511_v33 = vld [vmem:[%s2784_s17 + $0x6e8] sm:$0xff]  ;;  %v505_v37 = vld [vmem:[%s2784_s17 + $0x6b8] sm:$0xff] }
 0x176   : > { %v1120_v46 = vpop.f32.mrf.mxu0 }
 0x177   : > { %v3049_v48 = vadd.f32 %v1311_v43, %v1119_v41  ;;  %v1121_v50 = vadd.f32 %v1120_v46, %v3012_v57  ;;  %v1313_v51 = vpop.f32.mrf.mxu1  ;;  %v902_v43 = vpack.c.bf16 %v494_v27, %v486_v26 }
 0x178   : > { %v1124_v52 = vpop.f32.mrf.mxu0  ;;  %1589 = vmatmul.mubr.bf16.gmra.mxu0 %v886_v38  ;;  %v513_v38 = vld [vmem:[%s2784_s17 + $0x6f8] sm:$0xff] }
 0x179   : > { %v3052_v54 = vadd.f32 %v1313_v51, %v1121_v50  ;;  %v1125_v55 = vadd.f32 %v1124_v52, %v3008_v53  ;;  %v1317_v56 = vpop.f32.mrf.mxu1  ;;  %1782 = vmatmul.mubr.bf16.gmra.mxu1 %v888_v44  ;;  %1598 = vmatprep.mubr.bf16.mxu0 %v895_v45  ;;  %v911_v50 = vpack.c.bf16 %v511_v33, %v503_v31 }
 0x17a   : > { %v1126_v61 = vpop.f32.mrf.mxu0  ;;  %1791 = vmatprep.mubr.bf16.mxu1 %v897_v47  ;;  %v904_v47 = vpack.c.bf16 %v496_v30, %v488_v28  ;;  %v913_v52 = vpack.c.bf16 %v513_v38, %v505_v37  ;;  %v518_v37 = vld [vmem:[%s2784_s17 + $0x720] sm:$0xff] }
 0x17b   : > { %v3061_v1 = vadd.f32 %v1317_v56, %v1125_v55  ;;  %v1127_v2 = vadd.f32 %v1126_v61, %v3012_v57  ;;  %v1319_v3 = vpop.f32.mrf.mxu1  ;;  %v526_v38 = vld [vmem:[%s2784_s17 + $0x760] sm:$0xff] }
 0x17c   : > { %v1128_v7 = vpop.f32.mrf.mxu0 }
 0x17d   : > { %v3066_v9 = vadd.f32 %v1319_v3, %v1127_v2  ;;  %v1129_v10 = vadd.f32 %v1128_v7, %v3008_v53  ;;  %v1321_v12 = vpop.f32.mrf.mxu1  ;;  %v504_v2 = vld [vmem:[%s2784_s17 + $0x6b0] sm:$0xff]  ;;  %v527_v7 = vld [vmem:[%s2784_s17 + $0x768] sm:$0xff] }
 0x17e   : > { %v1130_v15 = vpop.f32.mrf.mxu0 }
 0x17f   : > { %v3069_v17 = vadd.f32 %v1321_v12, %v1129_v10  ;;  %v1131_v19 = vadd.f32 %v1130_v15, %v3012_v57  ;;  %v1323_v20 = vpop.f32.mrf.mxu1 }
 0x180   : > { %v1134_v21 = vpop.f32.mrf.mxu0  ;;  %1599 = vmatmul.mubr.bf16.gmra.mxu0 %v894_v8 }
 0x181   : > { %v3072_v23 = vadd.f32 %v1323_v20, %v1131_v19  ;;  %v1135_v24 = vadd.f32 %v1134_v21, %v3008_v53  ;;  %v1327_v25 = vpop.f32.mrf.mxu1  ;;  %1792 = vmatmul.mubr.bf16.gmra.mxu1 %v896_v13  ;;  %1608 = vmatprep.mubr.bf16.mxu0 %v903_v14  ;;  %v521_v13 = vld [vmem:[%s2784_s17 + $0x738] sm:$0xff] }
 0x182   : > { %v1136_v29 = vpop.f32.mrf.mxu0  ;;  %1801 = vmatprep.mubr.bf16.mxu1 %v905_v16  ;;  %v529_v14 = vld [vmem:[%s2784_s17 + $0x778] sm:$0xff]  ;;  %v910_v16 = vpack.c.bf16 %v510_v0, %v502_v63 }
 0x183   : > { %v3081_v34 = vadd.f32 %v1327_v25, %v1135_v24  ;;  %v1137_v35 = vadd.f32 %v1136_v29, %v3012_v57  ;;  %v1329_v36 = vpop.f32.mrf.mxu1  ;;  %v912_v24 = vpack.c.bf16 %v512_v5, %v504_v2  ;;  %v919_v25 = vpack.c.bf16 %v527_v7, %v519_v6 }
 0x184   : > { %v1138_v41 = vpop.f32.mrf.mxu0  ;;  %v921_v27 = vpack.c.bf16 %v529_v14, %v521_v13 }
 0x185   : > { %v3086_v44 = vadd.f32 %v1329_v36, %v1137_v35  ;;  %v1139_v45 = vadd.f32 %v1138_v41, %v3008_v53  ;;  %v1331_v46 = vpop.f32.mrf.mxu1  ;;  %v520_v41 = vld [vmem:[%s2784_s17 + $0x730] sm:$0xff] }
 0x186   : > { %v1140_v51 = vpop.f32.mrf.mxu0 }
 0x187   : > { %v3089_v55 = vadd.f32 %v1331_v46, %v1139_v45  ;;  %v1141_v56 = vadd.f32 %v1140_v51, %v3012_v57  ;;  %v1333_v58 = vpop.f32.mrf.mxu1  ;;  %v528_v45 = vld [vmem:[%s2784_s17 + $0x770] sm:$0xff]  ;;  %v535_v46 = vld [vmem:[%s2784_s17 + $0x7a8] sm:$0xff] }
 0x188   : > { %v1144_v59 = vpop.f32.mrf.mxu0  ;;  %1609 = vmatmul.mubr.bf16.gmra.mxu0 %v902_v43  ;;  %v920_v2 = vpack.c.bf16 %v528_v45, %v520_v41 }
 0x189   : > { %v3092_v60 = vadd.f32 %v1333_v58, %v1141_v56  ;;  %v1145_v61 = vadd.f32 %v1144_v59, %v3008_v53  ;;  %v1337_v62 = vpop.f32.mrf.mxu1  ;;  %1802 = vmatmul.mubr.bf16.gmra.mxu1 %v904_v47  ;;  %1618 = vmatprep.mubr.bf16.mxu0 %v911_v50  ;;  %v543_v47 = vld [vmem:[%s2784_s17 + $0x7e8] sm:$0xff]  ;;  %v537_v56 = vld [vmem:[%s2784_s17 + $0x7b8] sm:$0xff] }
 0x18a   : > { %v1146_v3 = vpop.f32.mrf.mxu0  ;;  %1811 = vmatprep.mubr.bf16.mxu1 %v913_v52  ;;  %v545_v58 = vld [vmem:[%s2784_s17 + $0x7f8] sm:$0xff] }
 0x18b   : > { %v3101_v8 = vadd.f32 %v1337_v62, %v1145_v61  ;;  %v1147_v10 = vadd.f32 %v1146_v3, %v3012_v57  ;;  %v1339_v12 = vpop.f32.mrf.mxu1  ;;  %v918_v61 = vpack.c.bf16 %v526_v38, %v518_v37  ;;  %v927_v3 = vpack.c.bf16 %v543_v47, %v535_v46 }
 0x18c   : > { %v1148_v15 = vpop.f32.mrf.mxu0  ;;  %v929_v6 = vpack.c.bf16 %v545_v58, %v537_v56 }
 0x18d   : > { %v3106_v19 = vadd.f32 %v1339_v12, %v1147_v10  ;;  %v1149_v20 = vadd.f32 %v1148_v15, %v3008_v53  ;;  %v1341_v21 = vpop.f32.mrf.mxu1 }
 0x18e   : > { %v1150_v26 = vpop.f32.mrf.mxu0 }
 0x18f   : > { %v3109_v28 = vadd.f32 %v1341_v21, %v1149_v20  ;;  %v1151_v29 = vadd.f32 %v1150_v26, %v3012_v57  ;;  %v1343_v30 = vpop.f32.mrf.mxu1  ;;  %v534_v20 = vld [vmem:[%s2784_s17 + $0x7a0] sm:$0xff]  ;;  %v544_v26 = vld [vmem:[%s2784_s17 + $0x7f0] sm:$0xff] }
 0x190   : > { %v1154_v31 = vpop.f32.mrf.mxu0  ;;  %1619 = vmatmul.mubr.bf16.gmra.mxu0 %v910_v16  ;;  %v542_v21 = vld [vmem:[%s2784_s17 + $0x7e0] sm:$0xff] }
 0x191   : > { %v3112_v33 = vadd.f32 %v1343_v30, %v1151_v29  ;;  %v1155_v35 = vadd.f32 %v1154_v31, %v3008_v53  ;;  %v1347_v36 = vpop.f32.mrf.mxu1  ;;  %1812 = vmatmul.mubr.bf16.gmra.mxu1 %v912_v24  ;;  %1628 = vmatprep.mubr.bf16.mxu0 %v919_v25  ;;  %v536_v25 = vld [vmem:[%s2784_s17 + $0x7b0] sm:$0xff] }
 0x192   : > { %v1156_v43 = vpop.f32.mrf.mxu0  ;;  %1821 = vmatprep.mubr.bf16.mxu1 %v921_v27  ;;  %v928_v41 = vpack.c.bf16 %v544_v26, %v536_v25 }
 0x193   : > { %v3121_v50 = vadd.f32 %v1347_v36, %v1155_v35  ;;  %v1157_v51 = vadd.f32 %v1156_v43, %v3012_v57  ;;  %v1349_v52 = vpop.f32.mrf.mxu1  ;;  %v926_v35 = vpack.c.bf16 %v542_v21, %v534_v20 }
 0x194   : > { %v1158_v59 = vpop.f32.mrf.mxu0 }
 0x195   : > { %v3126_v62 = vadd.f32 %v1349_v52, %v1157_v51  ;;  %v1159_v63 = vadd.f32 %v1158_v59, %v3008_v53  ;;  %v1351_v0 = vpop.f32.mrf.mxu1 }
 0x196   : > { %v1160_v5 = vpop.f32.mrf.mxu0 }
 0x197   : > { %v3129_v7 = vadd.f32 %v1351_v0, %v1159_v63  ;;  %v1161_v10 = vadd.f32 %v1160_v5, %v3012_v57  ;;  %v1353_v12 = vpop.f32.mrf.mxu1 }
 0x198   : > { %v1164_v13 = vpop.f32.mrf.mxu0  ;;  %1629 = vmatmul.mubr.bf16.gmra.mxu0 %v918_v61 }
 0x199   : > { %v3132_v14 = vadd.f32 %v1353_v12, %v1161_v10  ;;  %v1165_v15 = vadd.f32 %v1164_v13, %v3008_v53  ;;  %v1357_v16 = vpop.f32.mrf.mxu1  ;;  %1822 = vmatmul.mubr.bf16.gmra.mxu1 %v920_v2  ;;  %1638 = vmatprep.mubr.bf16.mxu0 %v927_v3 }
 0x19a   : > { %v1166_v24 = vpop.f32.mrf.mxu0  ;;  %1831 = vmatprep.mubr.bf16.mxu1 %v929_v6 }
 0x19b   : > { %v3139_v27 = vadd.f32 %v1357_v16, %v1165_v15  ;;  %v1167_v29 = vadd.f32 %v1166_v24, %v3012_v57  ;;  %v1359_v30 = vpop.f32.mrf.mxu1 }
 0x19c   : > { %v1168_v31 = vpop.f32.mrf.mxu0 }
 0x19d   : > { %v3142_v36 = vadd.f32 %v1359_v30, %v1167_v29  ;;  %v1169_v37 = vadd.f32 %v1168_v31, %v3008_v53  ;;  %v1361_v38 = vpop.f32.mrf.mxu1 }
 0x19e   : > { %v1170_v43 = vpop.f32.mrf.mxu0 }
 0x19f   : > { %v3145_v45 = vadd.f32 %v1361_v38, %v1169_v37  ;;  %v1171_v46 = vadd.f32 %v1170_v43, %v3012_v57  ;;  %v1363_v47 = vpop.f32.mrf.mxu1 }
 0x1a0   : > { %v1174_v51 = vpop.f32.mrf.mxu0  ;;  %1639 = vmatmul.mubr.bf16.gmra.mxu0 %v926_v35 }
 0x1a1   : > { %v3148_v52 = vadd.f32 %v1363_v47, %v1171_v46  ;;  %v1175_v56 = vadd.f32 %v1174_v51, %v3008_v53  ;;  %v1367_v58 = vpop.f32.mrf.mxu1  ;;  %1832 = vmatmul.mubr.bf16.gmra.mxu1 %v928_v41 }
 0x1a2   : > { %v1176_v59 = vpop.f32.mrf.mxu0 }
 0x1a3   : > { %v3151_v61 = vadd.f32 %v1367_v58, %v1175_v56  ;;  %v1177_v63 = vadd.f32 %v1176_v59, %v3012_v57  ;;  %v1369_v0 = vpop.f32.mrf.mxu1 }
 0x1a4   : > { %v1178_v2 = vpop.f32.mrf.mxu0 }
 0x1a5   : > { %v3154_v3 = vadd.f32 %v1369_v0, %v1177_v63  ;;  %v1179_v5 = vadd.f32 %v1178_v2, %v3008_v53  ;;  %v1371_v6 = vpop.f32.mrf.mxu1 }
 0x1a6   : > { %v1180_v10 = vpop.f32.mrf.mxu0 }
 0x1a7   : > { %v3157_v12 = vadd.f32 %v1371_v6, %v1179_v5  ;;  %v1181_v13 = vadd.f32 %v1180_v10, %v3012_v57  ;;  %v1373_v15 = vpop.f32.mrf.mxu1 }
 0x1a8   : > { %v1184_v16 = vpop.f32.mrf.mxu0 }
 0x1a9   : > { %v3160_v20 = vadd.f32 %v1373_v15, %v1181_v13  ;;  %v1185_v21 = vadd.f32 %v1184_v16, %v3008_v53  ;;  %v1377_v24 = vpop.f32.mrf.mxu1 }
 0x1aa   : > { %v1186_v25 = vpop.f32.mrf.mxu0 }
 0x1ab   : > { %v3163_v26 = vadd.f32 %v1377_v24, %v1185_v21  ;;  %v1187_v29 = vadd.f32 %v1186_v25, %v3012_v57  ;;  %v1379_v30 = vpop.f32.mrf.mxu1 }
 0x1ac   : > { %v1188_v31 = vpop.f32.mrf.mxu0 }
 0x1ad   : > { %v3166_v35 = vadd.f32 %v1379_v30, %v1187_v29  ;;  %v1189_v37 = vadd.f32 %v1188_v31, %v3008_v53  ;;  %v1381_v38 = vpop.f32.mrf.mxu1 }
 0x1ae   : > { %v1190_v41 = vpop.f32.mrf.mxu0 }
 0x1af   : > { %v3169_v43 = vadd.f32 %v1381_v38, %v1189_v37  ;;  %v1191_v46 = vadd.f32 %v1190_v41, %v3012_v57  ;;  %v1383_v47 = vpop.f32.mrf.mxu1 }
 0x1b0   : > { %v1194_v51 = vpop.f32.mrf.mxu0 }
 0x1b1   : > { %v3172_v56 = vadd.f32 %v1383_v47, %v1191_v46  ;;  %v1195_v58 = vadd.f32 %v1194_v51, %v3008_v53  ;;  %v1387_v59 = vpop.f32.mrf.mxu1 }
 0x1b2   : > { %v1196_v63 = vpop.f32.mrf.mxu0 }
 0x1b3   : > { %v3175_v0 = vadd.f32 %v1387_v59, %v1195_v58  ;;  %v1197_v2 = vadd.f32 %v1196_v63, %v3012_v57  ;;  %v1389_v5 = vpop.f32.mrf.mxu1 }
 0x1b4   : > { %v1198_v6 = vpop.f32.mrf.mxu0 }
 0x1b5   : > { %v3178_v10 = vadd.f32 %v1389_v5, %v1197_v2  ;;  %v1199_v13 = vadd.f32 %v1198_v6, %v3008_v53  ;;  %v1391_v15 = vpop.f32.mrf.mxu1 }
 0x1b6   : > { %v1200_v16 = vpop.f32.mrf.mxu0 }
 0x1b7   : > { %v3181_v21 = vadd.f32 %v1391_v15, %v1199_v13  ;;  %v1201_v24 = vadd.f32 %v1200_v16, %v3012_v57  ;;  %v1393_v25 = vpop.f32.mrf.mxu1 }
 0x1b8   : > { %v1204_v29 = vpop.f32.mrf.mxu0 }
 0x1b9   : > { %v3184_v30 = vadd.f32 %v1393_v25, %v1201_v24  ;;  %v1205_v31 = vadd.f32 %v1204_v29, %v3008_v53  ;;  %v1397_v37 = vpop.f32.mrf.mxu1 }
 0x1ba   : > { %v1206_v38 = vpop.f32.mrf.mxu0 }
 0x1bb   : > { %v3187_v41 = vadd.f32 %v1397_v37, %v1205_v31  ;;  %v1207_v46 = vadd.f32 %v1206_v38, %v3012_v57  ;;  %v1399_v47 = vpop.f32.mrf.mxu1 }
 0x1bc   : > { %v1208_v51 = vpop.f32.mrf.mxu0 }
 0x1bd   : > { %v3190_v58 = vadd.f32 %v1399_v47, %v1207_v46  ;;  %v1209_v59 = vadd.f32 %v1208_v51, %v3008_v53  ;;  %v1401_v63 = vpop.f32.mrf.mxu1 }
 0x1be   : > { %v1210_v2 = vpop.f32.mrf.mxu0 }
 0x1bf   : > { %v3193_v5 = vadd.f32 %v1401_v63, %v1209_v59  ;;  %v1211_v6 = vadd.f32 %v1210_v2, %v3012_v57  ;;  %v1403_v13 = vpop.f32.mrf.mxu1 }
 0x1c0   : > { %v1214_v15 = vpop.f32.mrf.mxu0 }
 0x1c1   : > { %v3196_v16 = vadd.f32 %v1403_v13, %v1211_v6  ;;  %v1215_v24 = vadd.f32 %v1214_v15, %v3008_v53  ;;  %v1407_v25 = vpop.f32.mrf.mxu1 }
 0x1c2   : > { %v1216_v29 = vpop.f32.mrf.mxu0 }
 0x1c3   : > { %v3199_v31 = vadd.f32 %v1407_v25, %v1215_v24  ;;  %v1217_v37 = vadd.f32 %v1216_v29, %v3012_v57  ;;  %v1409_v38 = vpop.f32.mrf.mxu1 }
 0x1c4   : > { %v1218_v46 = vpop.f32.mrf.mxu0 }
 0x1c5   : > { %v3202_v47 = vadd.f32 %v1409_v38, %v1217_v37  ;;  %v1219_v51 = vadd.f32 %v1218_v46, %v3008_v53  ;;  %v1411_v59 = vpop.f32.mrf.mxu1 }
 0x1c6   : > { %v1220_v63 = vpop.f32.mrf.mxu0 }
 0x1c7   : > { %3532 = vst [vmem:[#allocation13_spill] sm:$0xff] %v3202_v47  ;;  %v3205_v2 = vadd.f32 %v1411_v59, %v1219_v51  ;;  %v1221_v6 = vadd.f32 %v1220_v63, %v3012_v57  ;;  %v1413_v13 = vpop.f32.mrf.mxu1 }
 0x1c8   : > { %v1224_v15 = vpop.f32.mrf.mxu0 }
 0x1c9   : > { %3533 = vst [vmem:[#allocation14_spill] sm:$0xff] %v3205_v2  ;;  %v3208_v49 = vadd.f32 %v1413_v13, %v1221_v6  ;;  %v1225_v24 = vadd.f32 %v1224_v15, %v3008_v53  ;;  %v1417_v25 = vpop.f32.mrf.mxu1 }
 0x1ca   : > { %v1226_v29 = vpop.f32.mrf.mxu0 }
 0x1cb   : > { %3534 = vst [vmem:[#allocation15_spill] sm:$0xff] %v3208_v49  ;;  %v3211_v42 = vadd.f32 %v1417_v25, %v1225_v24  ;;  %v1227_v37 = vadd.f32 %v1226_v29, %v3012_v57  ;;  %v1419_v38 = vpop.f32.mrf.mxu1 }
 0x1cc   : > { %v1228_v46 = vpop.f32.mrf.mxu0 }
 0x1cd   : > { %3535 = vst [vmem:[#allocation16_spill] sm:$0xff] %v3211_v42  ;;  %v3214_v47 = vadd.f32 %v1419_v38, %v1227_v37  ;;  %v1229_v51 = vadd.f32 %v1228_v46, %v3008_v53  ;;  %v1421_v59 = vpop.f32.mrf.mxu1 }
 0x1ce   : > { %v1230_v63 = vpop.f32.mrf.mxu0 }
 0x1cf   : > { %3536 = vst [vmem:[#allocation17_spill] sm:$0xff] %v3214_v47  ;;  %v3217_v2 = vadd.f32 %v1421_v59, %v1229_v51  ;;  %v1231_v6 = vadd.f32 %v1230_v63, %v3012_v57  ;;  %v1423_v13 = vpop.f32.mrf.mxu1 }
 0x1d0   : > { %v1234_v15 = vpop.f32.mrf.mxu0 }
 0x1d1   : > { %3537 = vst [vmem:[#allocation18_spill] sm:$0xff] %v3217_v2  ;;  %v3220_v49 = vadd.f32 %v1423_v13, %v1231_v6  ;;  %v1235_v24 = vadd.f32 %v1234_v15, %v3008_v53  ;;  %v1427_v25 = vpop.f32.mrf.mxu1 }
 0x1d2   : > { %v1236_v29 = vpop.f32.mrf.mxu0 }
 0x1d3   : > { %3538 = vst [vmem:[#allocation19_spill] sm:$0xff] %v3220_v49  ;;  %v3223_v42 = vadd.f32 %v1427_v25, %v1235_v24  ;;  %v1237_v37 = vadd.f32 %v1236_v29, %v3012_v57  ;;  %v1429_v38 = vpop.f32.mrf.mxu1 }
 0x1d4   : > { %v1238_v46 = vpop.f32.mrf.mxu0 }
 0x1d5   : > { %3539 = vst [vmem:[#allocation20_spill] sm:$0xff] %v3223_v42  ;;  %v3226_v47 = vadd.f32 %v1429_v38, %v1237_v37  ;;  %v1239_v51 = vadd.f32 %v1238_v46, %v3008_v53  ;;  %v1431_v59 = vpop.f32.mrf.mxu1 }
 0x1d6   : > { %v1240_v63 = vpop.f32.mrf.mxu0 }
 0x1d7   : > { %3540 = vst [vmem:[#allocation21_spill] sm:$0xff] %v3226_v47  ;;  %v3229_v2 = vadd.f32 %v1431_v59, %v1239_v51  ;;  %v1241_v6 = vadd.f32 %v1240_v63, %v3012_v57  ;;  %v1433_v13 = vpop.f32.mrf.mxu1 }
 0x1d8   : > { %v1244_v15 = vpop.f32.mrf.mxu0 }
 0x1d9   : > { %3541 = vst [vmem:[#allocation22_spill] sm:$0xff] %v3229_v2  ;;  %v3232_v49 = vadd.f32 %v1433_v13, %v1241_v6  ;;  %v1245_v24 = vadd.f32 %v1244_v15, %v3008_v53  ;;  %v1437_v25 = vpop.f32.mrf.mxu1 }
 0x1da   : > { %v1246_v29 = vpop.f32.mrf.mxu0 }
 0x1db   : > { %3542 = vst [vmem:[#allocation23_spill] sm:$0xff] %v3232_v49  ;;  %v3235_v42 = vadd.f32 %v1437_v25, %v1245_v24  ;;  %v1247_v37 = vadd.f32 %v1246_v29, %v3012_v57  ;;  %v1439_v38 = vpop.f32.mrf.mxu1 }
 0x1dc   : > { %v1248_v46 = vpop.f32.mrf.mxu0 }
 0x1dd   : > { %3543 = vst [vmem:[#allocation24_spill] sm:$0xff] %v3235_v42  ;;  %v3238_v47 = vadd.f32 %v1439_v38, %v1247_v37  ;;  %v1249_v51 = vadd.f32 %v1248_v46, %v3008_v53  ;;  %v1441_v59 = vpop.f32.mrf.mxu1 }
 0x1de   : > { %v1250_v63 = vpop.f32.mrf.mxu0 }
 0x1df   : > { %3544 = vst [vmem:[#allocation25_spill] sm:$0xff] %v3238_v47  ;;  %v3241_v2 = vadd.f32 %v1441_v59, %v1249_v51  ;;  %v1251_v6 = vadd.f32 %v1250_v63, %v3012_v57  ;;  %v1443_v13 = vpop.f32.mrf.mxu1 }
 0x1e0   : > { %v1254_v15 = vpop.f32.mrf.mxu0 }
 0x1e1   : > { %3545 = vst [vmem:[#allocation26_spill] sm:$0xff] %v3241_v2  ;;  %v3244_v49 = vadd.f32 %v1443_v13, %v1251_v6  ;;  %v1255_v24 = vadd.f32 %v1254_v15, %v3008_v53  ;;  %v1447_v25 = vpop.f32.mrf.mxu1 }
 0x1e2   : > { %v1256_v29 = vpop.f32.mrf.mxu0 }
 0x1e3   : > { %3546 = vst [vmem:[#allocation27_spill] sm:$0xff] %v3244_v49  ;;  %v3247_v42 = vadd.f32 %v1447_v25, %v1255_v24  ;;  %v1257_v37 = vadd.f32 %v1256_v29, %v3012_v57  ;;  %v1449_v38 = vpop.f32.mrf.mxu1 }
 0x1e4   : > { %v1258_v46 = vpop.f32.mrf.mxu0 }
 0x1e5   : > { %3547 = vst [vmem:[#allocation28_spill] sm:$0xff] %v3247_v42  ;;  %v3250_v47 = vadd.f32 %v1449_v38, %v1257_v37  ;;  %v1259_v51 = vadd.f32 %v1258_v46, %v3008_v53  ;;  %v1451_v59 = vpop.f32.mrf.mxu1 }
 0x1e6   : > { %v1260_v63 = vpop.f32.mrf.mxu0 }
 0x1e7   : > { %3548 = vst [vmem:[#allocation29_spill] sm:$0xff] %v3250_v47  ;;  %v3253_v2 = vadd.f32 %v1451_v59, %v1259_v51  ;;  %v1261_v6 = vadd.f32 %v1260_v63, %v3012_v57  ;;  %v1453_v13 = vpop.f32.mrf.mxu1 }
 0x1e8   : > { %v1490_v15 = vpop.f32.mrf.mxu0 }
 0x1e9   : > { %v3256_v49 = vadd.f32 %v1453_v13, %v1261_v6  ;;  %v1491_v24 = vadd.f32 %v1490_v15, %v3021_v4  ;;  %v1683_v25 = vpop.f32.mrf.mxu1 }
 0x1ea   : > { %v1492_v29 = vpop.f32.mrf.mxu0 }
 0x1eb   : > { %v1684_v42 = vadd.f32 %v1683_v25, %v1491_v24  ;;  %v1493_v37 = vadd.f32 %v1492_v29, %v3026_v11  ;;  %v1685_v38 = vpop.f32.mrf.mxu1 }
 0x1ec   : > { %v1494_v47 = vpop.f32.mrf.mxu0 }
 0x1ed   : > { %2343 = vtanh.f32 %v1684_v42  ;;  %v1686_v53 = vadd.f32 %v1685_v38, %v1493_v37  ;;  %v1495_v46 = vadd.f32 %v1494_v47, %v3029_v18  ;;  %v1687_v51 = vpop.f32.mrf.mxu1 }
 0x1ee   : > { %v1496_v59 = vpop.f32.mrf.mxu0 }
 0x1ef   : > { %2345 = vtanh.f32 %v1686_v53  ;;  %v1688_v57 = vadd.f32 %v1687_v51, %v1495_v46  ;;  %v1497_v63 = vadd.f32 %v1496_v59, %v3032_v22  ;;  %v1689_v6 = vpop.f32.mrf.mxu1  ;;  %v1906_v22 = vld [vmem:[#allocation8] sm:$0x3] }
 0x1f0   : > { %v1500_v13 = vpop.f32.mrf.mxu0 }
 0x1f1   : > { %2347 = vtanh.f32 %v1688_v57  ;;  %v1690_v4 = vadd.f32 %v1689_v6, %v1497_v63  ;;  %v1501_v15 = vadd.f32 %v1500_v13, %v3041_v32  ;;  %v1693_v24 = vpop.f32.mrf.mxu1  ;;  %v3549_v57 = vsub.s32 0, %v2994_v39 }
 0x1f2   : > { %v1502_v11 = vpop.f32.mrf.mxu0 }
 0x1f3   : > { %2349 = vtanh.f32 %v1690_v4  ;;  %v1694_v25 = vadd.f32 %v1693_v24, %v1501_v15  ;;  %v1503_v42 = vadd.f32 %v1502_v11, %v3046_v40  ;;  %v1695_v29 = vpop.f32.mrf.mxu1  ;;  %v3268_v63 = vrot.slane %v1906_v22, %v3549_v57 }
 0x1f4   : > { %v1504_v18 = vpop.f32.mrf.mxu0 }
 0x1f5   : > { %2351 = vtanh.f32 %v1694_v25  ;;  %v1696_v47 = vadd.f32 %v1695_v29, %v1503_v42  ;;  %v1505_v37 = vadd.f32 %v1504_v18, %v3049_v48  ;;  %v1697_v38 = vpop.f32.mrf.mxu1  ;;  %v3550_v48 = vsub.s32 1, %v2994_v39 }
 0x1f6   : > { %v1506_v53 = vpop.f32.mrf.mxu0 }
 0x1f7   : > { %2353 = vtanh.f32 %v1696_v47  ;;  %v1698_v46 = vadd.f32 %v1697_v38, %v1505_v37  ;;  %v1507_v51 = vadd.f32 %v1506_v53, %v3052_v54  ;;  %v1699_v32 = vpop.f32.mrf.mxu1  ;;  %v3273_v4 = vrot.slane %v1906_v22, %v3550_v48 }
 0x1f8   : > { %v1510_v59 = vpop.f32.mrf.mxu0 }
 0x1f9   : > { %2355 = vtanh.f32 %v1698_v46  ;;  %v1700_v40 = vadd.f32 %v1699_v32, %v1507_v51  ;;  %v1511_v6 = vadd.f32 %v1510_v59, %v3061_v1  ;;  %v1703_v13 = vpop.f32.mrf.mxu1 }
 0x1fa   : > { %v2344_v15 = vpop.eup %2343  ;;  %v1512_v24 = vpop.f32.mrf.mxu0 }
 0x1fb   : > { %2357 = vtanh.f32 %v1700_v40  ;;  %v1704_v11 = vadd.f32 %v1703_v13, %v1511_v6  ;;  %v1513_v54 = vadd.f32 %v1512_v24, %v3066_v9  ;;  %v1705_v25 = vpop.f32.mrf.mxu1  ;;  %v1918_v18 = vmul.f32 %v2344_v15, %v3268_v63 }
 0x1fc   : > { %v2346_v42 = vpop.eup %2345  ;;  %v1514_v29 = vpop.f32.mrf.mxu0 }
 0x1fd   : > { %2359 = vtanh.f32 %v1704_v11  ;;  %v1706_v47 = vadd.f32 %v1705_v25, %v1513_v54  ;;  %v1515_v1 = vadd.f32 %v1514_v29, %v3069_v17  ;;  %v1707_v37 = vpop.f32.mrf.mxu1  ;;  %v1919_v39 = vmul.f32 %v2346_v42, %v3273_v4 }
 0x1fe   : > { %v2348_v38 = vpop.eup %2347  ;;  %v1516_v22 = vpop.f32.mrf.mxu0 }
 0x1ff   : > { %2361 = vtanh.f32 %v1706_v47  ;;  %v1708_v53 = vadd.f32 %v1707_v37, %v1515_v1  ;;  %v1517_v46 = vadd.f32 %v1516_v22, %v3072_v23  ;;  %v1709_v51 = vpop.f32.mrf.mxu1  ;;  %v1982_v9 = vadd.f32 %v1919_v39, %v1918_v18 }
 0x200   : > { %v2350_v32 = vpop.eup %2349  ;;  %v1520_v59 = vpop.f32.mrf.mxu0  ;;  %v1920_v57 = vmul.f32 %v2348_v38, %v3268_v63 }
 0x201   : > { %2363 = vtanh.f32 %v1708_v53  ;;  %v1710_v40 = vadd.f32 %v1709_v51, %v1517_v46  ;;  %v1521_v6 = vadd.f32 %v1520_v59, %v3081_v34  ;;  %v1713_v17 = vpop.f32.mrf.mxu1  ;;  %1983 = vadd.xlane.f32.xlu0 %v1982_v9  ;;  %v1921_v13 = vmul.f32 %v2350_v32, %v3273_v4 }
 0x202   : > { %v2352_v48 = vpop.eup %2351  ;;  %v1522_v15 = vpop.f32.mrf.mxu0 }
 0x203   : > { %2365 = vtanh.f32 %v1710_v40  ;;  %v1714_v24 = vadd.f32 %v1713_v17, %v1521_v6  ;;  %v1523_v23 = vadd.f32 %v1522_v15, %v3086_v44  ;;  %v1715_v11 = vpop.f32.mrf.mxu1  ;;  %v1985_v54 = vadd.f32 %v1921_v13, %v1920_v57 }
 0x204   : > { %v2354_v25 = vpop.eup %2353  ;;  %v1524_v42 = vpop.f32.mrf.mxu0  ;;  %v1922_v29 = vmul.f32 %v2352_v48, %v3268_v63 }
 0x205   : > { %2367 = vtanh.f32 %v1714_v24  ;;  %v1716_v18 = vadd.f32 %v1715_v11, %v1523_v23  ;;  %v1525_v34 = vadd.f32 %v1524_v42, %v3089_v55  ;;  %v1717_v47 = vpop.f32.mrf.mxu1  ;;  %1986 = vadd.xlane.f32.xlu0 %v1985_v54  ;;  %v1923_v1 = vmul.f32 %v2354_v25, %v3273_v4 }
 0x206   : > { %v2356_v37 = vpop.eup %2355  ;;  %v1526_v39 = vpop.f32.mrf.mxu0 }
 0x207   : > { %2369 = vtanh.f32 %v1716_v18  ;;  %v1718_v38 = vadd.f32 %v1717_v47, %v1525_v34  ;;  %v1527_v44 = vadd.f32 %v1526_v39, %v3092_v60  ;;  %v1719_v22 = vpop.f32.mrf.mxu1  ;;  %v1988_v53 = vadd.f32 %v1923_v1, %v1922_v29 }
 0x208   : > { %v2358_v46 = vpop.eup %2357  ;;  %v1530_v51 = vpop.f32.mrf.mxu0  ;;  %v1924_v9 = vmul.f32 %v2356_v37, %v3268_v63 }
 0x209   : > { %2371 = vtanh.f32 %v1718_v38  ;;  %v1720_v32 = vadd.f32 %v1719_v22, %v1527_v44  ;;  %v1531_v55 = vadd.f32 %v1530_v51, %v3101_v8  ;;  %v1723_v59 = vpop.f32.mrf.mxu1  ;;  %1989 = vadd.xlane.f32.xlu1 %v1988_v53  ;;  %v1925_v57 = vmul.f32 %v2358_v46, %v3273_v4 }
 0x20a   : > { %v2360_v40 = vpop.eup %2359  ;;  %v1532_v6 = vpop.f32.mrf.mxu0 }
 0x20b   : > { %2373 = vtanh.f32 %v1720_v32  ;;  %v1724_v17 = vadd.f32 %v1723_v59, %v1531_v55  ;;  %v1533_v60 = vadd.f32 %v1532_v6, %v3106_v19  ;;  %v1725_v13 = vpop.f32.mrf.mxu1  ;;  %v1991_v48 = vadd.f32 %v1925_v57, %v1924_v9 }
 0x20c   : > { %v2362_v15 = vpop.eup %2361  ;;  %v1534_v24 = vpop.f32.mrf.mxu0  ;;  %v1926_v23 = vmul.f32 %v2360_v40, %v3268_v63 }
 0x20d   : > { %2375 = vtanh.f32 %v1724_v17  ;;  %v1726_v11 = vadd.f32 %v1725_v13, %v1533_v60  ;;  %v1535_v8 = vadd.f32 %v1534_v24, %v3109_v28  ;;  %v1727_v54 = vpop.f32.mrf.mxu1  ;;  %1992 = vadd.xlane.f32.xlu1 %v1991_v48  ;;  %v1927_v25 = vmul.f32 %v2362_v15, %v3273_v4 }
 0x20e   : > { %v2364_v42 = vpop.eup %2363  ;;  %v1536_v29 = vpop.f32.mrf.mxu0 }
 0x20f   : > { %2377 = vtanh.f32 %v1726_v11  ;;  %v1728_v18 = vadd.f32 %v1727_v54, %v1535_v8  ;;  %v1537_v19 = vadd.f32 %v1536_v29, %v3112_v33  ;;  %v1729_v34 = vpop.f32.mrf.mxu1  ;;  %v1994_v47 = vadd.f32 %v1927_v25, %v1926_v23 }
 0x210   : > { %v2366_v1 = vpop.eup %2365  ;;  %v1540_v37 = vpop.f32.mrf.mxu0  ;;  %v1928_v39 = vmul.f32 %v2364_v42, %v3268_v63 }
 0x211   : > { %2379 = vtanh.f32 %v1728_v18  ;;  %v1730_v38 = vadd.f32 %v1729_v34, %v1537_v19  ;;  %v1541_v28 = vadd.f32 %v1540_v37, %v3121_v50  ;;  %v1733_v44 = vpop.f32.mrf.mxu1  ;;  %1995 = vadd.xlane.f32.xlu0 %v1994_v47  ;;  %v1929_v22 = vmul.f32 %v2366_v1, %v3273_v4 }
 0x212   : > { %v2368_v53 = vpop.eup %2367  ;;  %v1542_v46 = vpop.f32.mrf.mxu0 }
 0x213   : > { %2381 = vtanh.f32 %v1730_v38  ;;  %v1734_v51 = vadd.f32 %v1733_v44, %v1541_v28  ;;  %v1543_v33 = vadd.f32 %v1542_v46, %v3126_v62  ;;  %v1735_v9 = vpop.f32.mrf.mxu1  ;;  %v1997_v32 = vadd.f32 %v1929_v22, %v1928_v39 }
 0x214   : > { %v2370_v55 = vpop.eup %2369  ;;  %v1544_v59 = vpop.f32.mrf.mxu0  ;;  %v1930_v57 = vmul.f32 %v2368_v53, %v3268_v63 }
 0x215   : > { %2383 = vtanh.f32 %v1734_v51  ;;  %v1736_v40 = vadd.f32 %v1735_v9, %v1543_v33  ;;  %v1545_v50 = vadd.f32 %v1544_v59, %v3129_v7  ;;  %v1737_v6 = vpop.f32.mrf.mxu1  ;;  %1998 = vadd.xlane.f32.xlu1 %v1997_v32  ;;  %v1931_v17 = vmul.f32 %v2370_v55, %v3273_v4 }
 0x216   : > { %v2372_v60 = vpop.eup %2371  ;;  %v1546_v13 = vpop.f32.mrf.mxu0 }
 0x217   : > { %2385 = vtanh.f32 %v1736_v40  ;;  %v1738_v48 = vadd.f32 %v1737_v6, %v1545_v50  ;;  %v1547_v62 = vadd.f32 %v1546_v13, %v3132_v14  ;;  %v1739_v15 = vpop.f32.mrf.mxu1  ;;  %v2000_v24 = vadd.f32 %v1931_v17, %v1930_v57 }
 0x218   : > { %v2374_v23 = vpop.eup %2373  ;;  %v1550_v11 = vpop.f32.mrf.mxu0  ;;  %v1932_v8 = vmul.f32 %v2372_v60, %v3268_v63 }
 0x219   : > { %2387 = vtanh.f32 %v1738_v48  ;;  %v1740_v54 = vadd.f32 %v1739_v15, %v1547_v62  ;;  %v1551_v7 = vadd.f32 %v1550_v11, %v3139_v27  ;;  %v1743_v25 = vpop.f32.mrf.mxu1  ;;  %2001 = vadd.xlane.f32.xlu0 %v2000_v24  ;;  %v1933_v42 = vmul.f32 %v2374_v23, %v3273_v4 }
 0x21a   : > { %v2376_v29 = vpop.eup %2375  ;;  %v1552_v18 = vpop.f32.mrf.mxu0 }
 0x21b   : > { %2389 = vtanh.f32 %v1740_v54  ;;  %v1744_v19 = vadd.f32 %v1743_v25, %v1551_v7  ;;  %v1553_v14 = vadd.f32 %v1552_v18, %v3142_v36  ;;  %v1745_v34 = vpop.f32.mrf.mxu1  ;;  %v2003_v47 = vadd.f32 %v1933_v42, %v1932_v8 }
 0x21c   : > { %v2378_v1 = vpop.eup %2377  ;;  %v1554_v37 = vpop.f32.mrf.mxu0  ;;  %v1934_v39 = vmul.f32 %v2376_v29, %v3268_v63 }
 0x21d   : > { %2391 = vtanh.f32 %v1744_v19  ;;  %v1746_v38 = vadd.f32 %v1745_v34, %v1553_v14  ;;  %v1555_v27 = vadd.f32 %v1554_v37, %v3145_v45  ;;  %v1747_v28 = vpop.f32.mrf.mxu1  ;;  %2004 = vadd.xlane.f32.xlu1 %v2003_v47  ;;  %v1935_v44 = vmul.f32 %v2378_v1, %v3273_v4 }
 0x21e   : > { %v2380_v22 = vpop.eup %2379  ;;  %v1556_v53 = vpop.f32.mrf.mxu0 }
 0x21f   : > { %2393 = vtanh.f32 %v1746_v38  ;;  %v1748_v46 = vadd.f32 %v1747_v28, %v1555_v27  ;;  %v1557_v36 = vadd.f32 %v1556_v53, %v3148_v52  ;;  %v1749_v51 = vpop.f32.mrf.mxu1  ;;  %v2006_v33 = vadd.f32 %v1935_v44, %v1934_v39 }
 0x220   : > { %v2382_v9 = vpop.eup %2381  ;;  %v1560_v32 = vpop.f32.mrf.mxu0  ;;  %v1936_v55 = vmul.f32 %v2380_v22, %v3268_v63 }
 0x221   : > { %2395 = vtanh.f32 %v1748_v46  ;;  %v1750_v59 = vadd.f32 %v1749_v51, %v1557_v36  ;;  %v1561_v45 = vadd.f32 %v1560_v32, %v3151_v61  ;;  %v1753_v57 = vpop.f32.mrf.mxu1  ;;  %2007 = vadd.xlane.f32.xlu0 %v2006_v33  ;;  %v1937_v40 = vmul.f32 %v2382_v9, %v3273_v4 }
 0x222   : > { %v2384_v50 = vpop.eup %2383  ;;  %v1562_v6 = vpop.f32.mrf.mxu0 }
 0x223   : > { %2397 = vtanh.f32 %v1750_v59  ;;  %v1754_v17 = vadd.f32 %v1753_v57, %v1561_v45  ;;  %v1563_v52 = vadd.f32 %v1562_v6, %v3154_v3  ;;  %v1755_v60 = vpop.f32.mrf.mxu1  ;;  %v2009_v13 = vadd.f32 %v1937_v40, %v1936_v55 }
 0x224   : > { %v2386_v48 = vpop.eup %2385  ;;  %v1564_v62 = vpop.f32.mrf.mxu0  ;;  %v1938_v15 = vmul.f32 %v2384_v50, %v3268_v63 }
 0x225   : > { %2399 = vtanh.f32 %v1754_v17  ;;  %v1756_v24 = vadd.f32 %v1755_v60, %v1563_v52  ;;  %v1565_v61 = vadd.f32 %v1564_v62, %v3157_v12  ;;  %v1757_v23 = vpop.f32.mrf.mxu1  ;;  %2010 = vadd.xlane.f32.xlu1 %v2009_v13  ;;  %v1939_v11 = vmul.f32 %v2386_v48, %v3273_v4 }
 0x226   : > { %v2388_v8 = vpop.eup %2387  ;;  %v1566_v54 = vpop.f32.mrf.mxu0 }
 0x227   : > { %2401 = vtanh.f32 %v1756_v24  ;;  %v1758_v7 = vadd.f32 %v1757_v23, %v1565_v61  ;;  %v1567_v3 = vadd.f32 %v1566_v54, %v3160_v20  ;;  %v1759_v25 = vpop.f32.mrf.mxu1  ;;  %v2012_v42 = vadd.f32 %v1939_v11, %v1938_v15 }
 0x228   : > { %v2390_v29 = vpop.eup %2389  ;;  %v1570_v18 = vpop.f32.mrf.mxu0  ;;  %v1940_v19 = vmul.f32 %v2388_v8, %v3268_v63 }
 0x229   : > { %2403 = vtanh.f32 %v1758_v7  ;;  %v1760_v14 = vadd.f32 %v1759_v25, %v1567_v3  ;;  %v1571_v12 = vadd.f32 %v1570_v18, %v3163_v26  ;;  %v1763_v34 = vpop.f32.mrf.mxu1  ;;  %2013 = vadd.xlane.f32.xlu0 %v2012_v42  ;;  %v1941_v47 = vmul.f32 %v2390_v29, %v3273_v4 }
 0x22a   : > { %v2392_v1 = vpop.eup %2391  ;;  %v1572_v37 = vpop.f32.mrf.mxu0 }
 0x22b   : > { %2405 = vtanh.f32 %v1760_v14  ;;  %v1764_v39 = vadd.f32 %v1763_v34, %v1571_v12  ;;  %v1573_v20 = vadd.f32 %v1572_v37, %v3166_v35  ;;  %v1765_v38 = vpop.f32.mrf.mxu1  ;;  %v2015_v27 = vadd.f32 %v1941_v47, %v1940_v19 }
 0x22c   : > { %v2394_v28 = vpop.eup %2393  ;;  %v1574_v44 = vpop.f32.mrf.mxu0  ;;  %v1942_v22 = vmul.f32 %v2392_v1, %v3268_v63 }
 0x22d   : > { %2407 = vtanh.f32 %v1764_v39  ;;  %v1766_v53 = vadd.f32 %v1765_v38, %v1573_v20  ;;  %v1575_v26 = vadd.f32 %v1574_v44, %v3169_v43  ;;  %v1767_v46 = vpop.f32.mrf.mxu1  ;;  %2016 = vadd.xlane.f32.xlu1 %v2015_v27  ;;  %v1943_v36 = vmul.f32 %v2394_v28, %v3273_v4 }
 0x22e   : > { %v2396_v51 = vpop.eup %2395  ;;  %v1576_v33 = vpop.f32.mrf.mxu0 }
 0x22f   : > { %2409 = vtanh.f32 %v1766_v53  ;;  %v1768_v9 = vadd.f32 %v1767_v46, %v1575_v26  ;;  %v1577_v35 = vadd.f32 %v1576_v33, %v3172_v56  ;;  %v1769_v32 = vpop.f32.mrf.mxu1  ;;  %v2018_v55 = vadd.f32 %v1943_v36, %v1942_v22 }
 0x230   : > { %v2398_v59 = vpop.eup %2397  ;;  %v1580_v45 = vpop.f32.mrf.mxu0  ;;  %v1944_v57 = vmul.f32 %v2396_v51, %v3268_v63 }
 0x231   : > { %2411 = vtanh.f32 %v1768_v9  ;;  %v1770_v40 = vadd.f32 %v1769_v32, %v1577_v35  ;;  %v1581_v43 = vadd.f32 %v1580_v45, %v3175_v0  ;;  %v1773_v50 = vpop.f32.mrf.mxu1  ;;  %2019 = vadd.xlane.f32.xlu0 %v2018_v55  ;;  %v1945_v6 = vmul.f32 %v2398_v59, %v3273_v4 }
 0x232   : > { %v2400_v17 = vpop.eup %2399  ;;  %v1582_v52 = vpop.f32.mrf.mxu0 }
 0x233   : > { %2413 = vtanh.f32 %v1770_v40  ;;  %v1774_v60 = vadd.f32 %v1773_v50, %v1581_v43  ;;  %v1583_v56 = vadd.f32 %v1582_v52, %v3178_v10  ;;  %v1775_v13 = vpop.f32.mrf.mxu1  ;;  %v2021_v48 = vadd.f32 %v1945_v6, %v1944_v57  ;;  %v3551_v43 = vld [vmem:[#allocation13_spill] sm:$0xff] }
 0x234   : > { %v2402_v62 = vpop.eup %2401  ;;  %v1584_v15 = vpop.f32.mrf.mxu0  ;;  %v1946_v24 = vmul.f32 %v2400_v17, %v3268_v63 }
 0x235   : > { %2415 = vtanh.f32 %v1774_v60  ;;  %v1776_v61 = vadd.f32 %v1775_v13, %v1583_v56  ;;  %v1585_v0 = vadd.f32 %v1584_v15, %v3181_v21  ;;  %v1777_v23 = vpop.f32.mrf.mxu1  ;;  %2022 = vadd.xlane.f32.xlu1 %v2021_v48  ;;  %v1947_v11 = vmul.f32 %v2402_v62, %v3273_v4  ;;  %v3552_v13 = vld [vmem:[#allocation14_spill] sm:$0xff] }
 0x236   : > { %v2404_v8 = vpop.eup %2403  ;;  %v1586_v54 = vpop.f32.mrf.mxu0 }
 0x237   : > { %2417 = vtanh.f32 %v1776_v61  ;;  %v1778_v7 = vadd.f32 %v1777_v23, %v1585_v0  ;;  %v1587_v10 = vadd.f32 %v1586_v54, %v3184_v30  ;;  %v1779_v3 = vpop.f32.mrf.mxu1  ;;  %v2024_v25 = vadd.f32 %v1947_v11, %v1946_v24  ;;  %v3553_v0 = vld [vmem:[#allocation15_spill] sm:$0xff] }
 0x238   : > { %v2406_v42 = vpop.eup %2405  ;;  %v1590_v29 = vpop.f32.mrf.mxu0  ;;  %v1948_v18 = vmul.f32 %v2404_v8, %v3268_v63 }
 0x239   : > { %2419 = vtanh.f32 %v1778_v7  ;;  %v1780_v19 = vadd.f32 %v1779_v3, %v1587_v10  ;;  %v1591_v21 = vadd.f32 %v1590_v29, %v3187_v41  ;;  %v1783_v14 = vpop.f32.mrf.mxu1  ;;  %2025 = vadd.xlane.f32.xlu0 %v2024_v25  ;;  %v1949_v12 = vmul.f32 %v2406_v42, %v3273_v4  ;;  %v3554_v25 = vld [vmem:[#allocation16_spill] sm:$0xff] }
 0x23a   : > { %v2408_v34 = vpop.eup %2407  ;;  %v1592_v47 = vpop.f32.mrf.mxu0 }
 0x23b   : > { %2421 = vtanh.f32 %v1780_v19  ;;  %v1784_v1 = vadd.f32 %v1783_v14, %v1591_v21  ;;  %v1593_v30 = vadd.f32 %v1592_v47, %v3190_v58  ;;  %v1785_v37 = vpop.f32.mrf.mxu1  ;;  %v2027_v39 = vadd.f32 %v1949_v12, %v1948_v18  ;;  %v3555_v12 = vld [vmem:[#allocation17_spill] sm:$0xff] }
 0x23c   : > { %v2410_v20 = vpop.eup %2409  ;;  %v1594_v38 = vpop.f32.mrf.mxu0  ;;  %v1950_v27 = vmul.f32 %v2408_v34, %v3268_v63 }
 0x23d   : > { %2423 = vtanh.f32 %v1784_v1  ;;  %v1786_v28 = vadd.f32 %v1785_v37, %v1593_v30  ;;  %v1595_v41 = vadd.f32 %v1594_v38, %v3193_v5  ;;  %v1787_v44 = vpop.f32.mrf.mxu1  ;;  %2028 = vadd.xlane.f32.xlu1 %v2027_v39  ;;  %v1951_v22 = vmul.f32 %v2410_v20, %v3273_v4  ;;  %v3556_v38 = vld [vmem:[#allocation18_spill] sm:$0xff] }
 0x23e   : > { %v2412_v53 = vpop.eup %2411  ;;  %v1596_v26 = vpop.f32.mrf.mxu0 }
 0x23f   : > { %2425 = vtanh.f32 %v1786_v28  ;;  %v1788_v46 = vadd.f32 %v1787_v44, %v1595_v41  ;;  %v1597_v58 = vadd.f32 %v1596_v26, %v3196_v16  ;;  %v1789_v36 = vpop.f32.mrf.mxu1  ;;  %v2030_v51 = vadd.f32 %v1951_v22, %v1950_v27  ;;  %v3557_v26 = vld [vmem:[#allocation19_spill] sm:$0xff] }
 0x240   : > { %v2414_v33 = vpop.eup %2413  ;;  %v1600_v9 = vpop.f32.mrf.mxu0  ;;  %v1952_v35 = vmul.f32 %v2412_v53, %v3268_v63 }
 0x241   : > { %2427 = vtanh.f32 %v1788_v46  ;;  %v1790_v32 = vadd.f32 %v1789_v36, %v1597_v58  ;;  %v1601_v5 = vadd.f32 %v1600_v9, %v3199_v31  ;;  %v1793_v55 = vpop.f32.mrf.mxu1  ;;  %2031 = vadd.xlane.f32.xlu0 %v2030_v51  ;;  %v1953_v59 = vmul.f32 %v2414_v33, %v3273_v4 }
 0x242   : > { %v2416_v45 = vpop.eup %2415  ;;  %v1602_v57 = vpop.f32.mrf.mxu0 }
 0x243   : > { %2429 = vtanh.f32 %v1790_v32  ;;  %v1794_v40 = vadd.f32 %v1793_v55, %v1601_v5  ;;  %v1603_v16 = vadd.f32 %v1602_v57, %v3551_v43  ;;  %v1795_v50 = vpop.f32.mrf.mxu1  ;;  %v2033_v6 = vadd.f32 %v1953_v59, %v1952_v35  ;;  %v3558_v32 = vld [vmem:[#allocation20_spill] sm:$0xff]  ;;  %v3559_v43 = vld [vmem:[#allocation21_spill] sm:$0xff] }
 0x244   : > { %v2418_v17 = vpop.eup %2417  ;;  %v1604_v52 = vpop.f32.mrf.mxu0  ;;  %v1954_v60 = vmul.f32 %v2416_v45, %v3268_v63 }
 0x245   : > { %2431 = vtanh.f32 %v1794_v40  ;;  %v1796_v56 = vadd.f32 %v1795_v50, %v1603_v16  ;;  %v1605_v31 = vadd.f32 %v1604_v52, %v3552_v13  ;;  %v1797_v48 = vpop.f32.mrf.mxu1  ;;  %2034 = vadd.xlane.f32.xlu1 %v2033_v6  ;;  %v1955_v62 = vmul.f32 %v2418_v17, %v3273_v4  ;;  %v3560_v13 = vld [vmem:[#allocation22_spill] sm:$0xff] }
 0x246   : > { %v2420_v15 = vpop.eup %2419  ;;  %v1606_v24 = vpop.f32.mrf.mxu0 }
 0x247   : > { %2433 = vtanh.f32 %v1796_v56  ;;  %v1798_v61 = vadd.f32 %v1797_v48, %v1605_v31  ;;  %v1607_v23 = vadd.f32 %v1606_v24, %v3553_v0  ;;  %v1799_v11 = vpop.f32.mrf.mxu1  ;;  %v2036_v8 = vadd.f32 %v1955_v62, %v1954_v60  ;;  %v3561_v0 = vld [vmem:[#allocation23_spill] sm:$0xff] }
 0x248   : > { %v2422_v54 = vpop.eup %2421  ;;  %v1610_v7 = vpop.f32.mrf.mxu0  ;;  %v1956_v10 = vmul.f32 %v2420_v15, %v3268_v63 }
 0x249   : > { %2435 = vtanh.f32 %v1798_v61  ;;  %v1800_v3 = vadd.f32 %v1799_v11, %v1607_v23  ;;  %v1611_v42 = vadd.f32 %v1610_v7, %v3554_v25  ;;  %v1803_v29 = vpop.f32.mrf.mxu1  ;;  %2037 = vadd.xlane.f32.xlu0 %v2036_v8  ;;  %v1957_v18 = vmul.f32 %v2422_v54, %v3273_v4  ;;  %v3562_v25 = vld [vmem:[#allocation24_spill] sm:$0xff] }
 0x24a   : > { %v2424_v19 = vpop.eup %2423  ;;  %v1612_v21 = vpop.f32.mrf.mxu0 }
 0x24b   : > { %2437 = vtanh.f32 %v1800_v3  ;;  %v1804_v14 = vadd.f32 %v1803_v29, %v1611_v42  ;;  %v1613_v34 = vadd.f32 %v1612_v21, %v3555_v12  ;;  %v1805_v47 = vpop.f32.mrf.mxu1  ;;  %v2039_v1 = vadd.f32 %v1957_v18, %v1956_v10  ;;  %v3563_v12 = vld [vmem:[#allocation25_spill] sm:$0xff] }
 0x24c   : > { %v2426_v30 = vpop.eup %2425  ;;  %v1614_v37 = vpop.f32.mrf.mxu0  ;;  %v1958_v39 = vmul.f32 %v2424_v19, %v3268_v63 }
 0x24d   : > { %2439 = vtanh.f32 %v1804_v14  ;;  %v1806_v20 = vadd.f32 %v1805_v47, %v1613_v34  ;;  %v1615_v27 = vadd.f32 %v1614_v37, %v3556_v38  ;;  %v1807_v28 = vpop.f32.mrf.mxu1  ;;  %2040 = vadd.xlane.f32.xlu1 %v2039_v1  ;;  %v1959_v41 = vmul.f32 %v2426_v30, %v3273_v4  ;;  %v3564_v38 = vld [vmem:[#allocation26_spill] sm:$0xff] }
 0x24e   : > { %v2428_v44 = vpop.eup %2427  ;;  %v1616_v22 = vpop.f32.mrf.mxu0 }
 0x24f   : > { %2441 = vtanh.f32 %v1806_v20  ;;  %v1808_v53 = vadd.f32 %v1807_v28, %v1615_v27  ;;  %v1617_v46 = vadd.f32 %v1616_v22, %v3557_v26  ;;  %v1809_v58 = vpop.f32.mrf.mxu1  ;;  %v2042_v36 = vadd.f32 %v1959_v41, %v1958_v39  ;;  %v3565_v26 = vld [vmem:[#allocation27_spill] sm:$0xff] }
 0x250   : > { %v2430_v51 = vpop.eup %2429  ;;  %v1620_v33 = vpop.f32.mrf.mxu0  ;;  %v1960_v9 = vmul.f32 %v2428_v44, %v3268_v63 }
 0x251   : > { %2443 = vtanh.f32 %v1808_v53  ;;  %v1810_v35 = vadd.f32 %v1809_v58, %v1617_v46  ;;  %v1621_v5 = vadd.f32 %v1620_v33, %v3558_v32  ;;  %v1813_v55 = vpop.f32.mrf.mxu1  ;;  %2043 = vadd.xlane.f32.xlu0 %v2042_v36  ;;  %v1961_v59 = vmul.f32 %v2430_v51, %v3273_v4  ;;  %v3566_v32 = vld [vmem:[#allocation28_spill] sm:$0xff] }
 0x252   : > { %v2432_v45 = vpop.eup %2431  ;;  %v1622_v57 = vpop.f32.mrf.mxu0 }
 0x253   : > { %2445 = vtanh.f32 %v1810_v35  ;;  %v1814_v40 = vadd.f32 %v1813_v55, %v1621_v5  ;;  %v1623_v16 = vadd.f32 %v1622_v57, %v3559_v43  ;;  %v1815_v50 = vpop.f32.mrf.mxu1  ;;  %v2045_v6 = vadd.f32 %v1961_v59, %v1960_v9  ;;  %v3567_v43 = vld [vmem:[#allocation29_spill] sm:$0xff] }
 0x254   : > { %v2434_v17 = vpop.eup %2433  ;;  %v1624_v52 = vpop.f32.mrf.mxu0  ;;  %v1962_v60 = vmul.f32 %v2432_v45, %v3268_v63 }
 0x255   : > { %2447 = vtanh.f32 %v1814_v40  ;;  %v1816_v56 = vadd.f32 %v1815_v50, %v1623_v16  ;;  %v1625_v31 = vadd.f32 %v1624_v52, %v3560_v13  ;;  %v1817_v48 = vpop.f32.mrf.mxu1  ;;  %2046 = vadd.xlane.f32.xlu1 %v2045_v6  ;;  %v1963_v62 = vmul.f32 %v2434_v17, %v3273_v4 }
 0x256   : > { %v2436_v15 = vpop.eup %2435  ;;  %v1626_v24 = vpop.f32.mrf.mxu0 }
 0x257   : > { %2449 = vtanh.f32 %v1816_v56  ;;  %v1818_v61 = vadd.f32 %v1817_v48, %v1625_v31  ;;  %v1627_v23 = vadd.f32 %v1626_v24, %v3561_v0  ;;  %v1819_v11 = vpop.f32.mrf.mxu1  ;;  %v2048_v8 = vadd.f32 %v1963_v62, %v1962_v60 }
 0x258   : > { %v2438_v54 = vpop.eup %2437  ;;  %v1630_v7 = vpop.f32.mrf.mxu0  ;;  %v1964_v10 = vmul.f32 %v2436_v15, %v3268_v63 }
 0x259   : > { %2451 = vtanh.f32 %v1818_v61  ;;  %v1820_v3 = vadd.f32 %v1819_v11, %v1627_v23  ;;  %v1631_v42 = vadd.f32 %v1630_v7, %v3562_v25  ;;  %v1823_v29 = vpop.f32.mrf.mxu1  ;;  %2049 = vadd.xlane.f32.xlu0 %v2048_v8  ;;  %v1965_v18 = vmul.f32 %v2438_v54, %v3273_v4 }
 0x25a   : > { %v2440_v19 = vpop.eup %2439  ;;  %v1632_v21 = vpop.f32.mrf.mxu0 }
 0x25b   : > { %2453 = vtanh.f32 %v1820_v3  ;;  %v1824_v14 = vadd.f32 %v1823_v29, %v1631_v42  ;;  %v1633_v34 = vadd.f32 %v1632_v21, %v3563_v12  ;;  %v1825_v47 = vpop.f32.mrf.mxu1  ;;  %v2051_v1 = vadd.f32 %v1965_v18, %v1964_v10 }
 0x25c   : > { %v2442_v30 = vpop.eup %2441  ;;  %v1634_v37 = vpop.f32.mrf.mxu0  ;;  %v1966_v39 = vmul.f32 %v2440_v19, %v3268_v63 }
 0x25d   : > { %2455 = vtanh.f32 %v1824_v14  ;;  %v1826_v20 = vadd.f32 %v1825_v47, %v1633_v34  ;;  %v1635_v27 = vadd.f32 %v1634_v37, %v3564_v38  ;;  %v1827_v28 = vpop.f32.mrf.mxu1  ;;  %2052 = vadd.xlane.f32.xlu1 %v2051_v1  ;;  %v1967_v41 = vmul.f32 %v2442_v30, %v3273_v4 }
 0x25e   : > { %v2444_v44 = vpop.eup %2443  ;;  %v1636_v22 = vpop.f32.mrf.mxu0 }
 0x25f   : > { %2457 = vtanh.f32 %v1826_v20  ;;  %v1828_v53 = vadd.f32 %v1827_v28, %v1635_v27  ;;  %v1637_v46 = vadd.f32 %v1636_v22, %v3565_v26  ;;  %v1829_v58 = vpop.f32.mrf.mxu1  ;;  %v2054_v36 = vadd.f32 %v1967_v41, %v1966_v39  ;;  %v3396_v28 = vld [vmem:[#allocation2] ss:$0 sm:$0xff] }
 0x260   : > { %v2446_v51 = vpop.eup %2445  ;;  %v1640_v33 = vpop.f32.mrf.mxu0  ;;  %v1968_v9 = vmul.f32 %v2444_v44, %v3268_v63 }
 0x261   : > { %2459 = vtanh.f32 %v1828_v53  ;;  %v1830_v35 = vadd.f32 %v1829_v58, %v1637_v46  ;;  %v1641_v5 = vadd.f32 %v1640_v33, %v3566_v32  ;;  %v1833_v55 = vpop.f32.mrf.mxu1  ;;  %2055 = vadd.xlane.f32.xlu0 %v2054_v36  ;;  %v1969_v59 = vmul.f32 %v2446_v51, %v3273_v4 }
 0x262   : > { %v2448_v45 = vpop.eup %2447  ;;  %v1642_v57 = vpop.f32.mrf.mxu0 }
 0x263   : > { %2461 = vtanh.f32 %v1830_v35  ;;  %v1834_v40 = vadd.f32 %v1833_v55, %v1641_v5  ;;  %v1643_v16 = vadd.f32 %v1642_v57, %v3567_v43  ;;  %v1835_v50 = vpop.f32.mrf.mxu1  ;;  %v2057_v6 = vadd.f32 %v1969_v59, %v1968_v9 }
 0x264   : > { %v2450_v17 = vpop.eup %2449  ;;  %v1644_v52 = vpop.f32.mrf.mxu0  ;;  %v1970_v60 = vmul.f32 %v2448_v45, %v3268_v63 }
 0x265   : > { %2463 = vtanh.f32 %v1834_v40  ;;  %v1836_v56 = vadd.f32 %v1835_v50, %v1643_v16  ;;  %v1645_v13 = vadd.f32 %v1644_v52, %v3253_v2  ;;  %v1837_v31 = vpop.f32.mrf.mxu1  ;;  %2058 = vadd.xlane.f32.xlu1 %v2057_v6  ;;  %v1971_v48 = vmul.f32 %v2450_v17, %v3273_v4 }
 0x266   : > { %v2452_v62 = vpop.eup %2451  ;;  %v1646_v15 = vpop.f32.mrf.mxu0 }
 0x267   : > { %2465 = vtanh.f32 %v1836_v56  ;;  %v1838_v24 = vadd.f32 %v1837_v31, %v1645_v13  ;;  %v1647_v61 = vadd.f32 %v1646_v15, %v3256_v49  ;;  %v2060_v0 = vadd.f32 %v1971_v48, %v1970_v60  ;;  %v1839_v11 = vpop.f32.mrf.mxu1 }
 0x268   : > { %v2454_v23 = vpop.eup %2453  ;;  %v1972_v54 = vmul.f32 %v2452_v62, %v3268_v63 }
 0x269   : > { %2467 = vtanh.f32 %v1838_v24  ;;  %v1840_v8 = vadd.f32 %v1839_v11, %v1647_v61  ;;  %2061 = vadd.xlane.f32.xlu0 %v2060_v0  ;;  %v1973_v2 = vmul.f32 %v2454_v23, %v3273_v4 }
 0x26a   : > { %v2456_v7 = vpop.eup %2455 }
 0x26b   : > { %2469 = vtanh.f32 %v1840_v8  ;;  %v2063_v10 = vadd.f32 %v1973_v2, %v1972_v54  ;;  %v1974_v25 = vmul.f32 %v2456_v7, %v3268_v63 }
 0x26c   : > { %v2458_v3 = vpop.eup %2457 }
 0x26d   : > { %2064 = vadd.xlane.f32.xlu1 %v2063_v10  ;;  %v1975_v42 = vmul.f32 %v2458_v3, %v3273_v4 }
 0x26e   : > { %v2460_v49 = vpop.eup %2459 }
 0x26f   : > { %v2066_v29 = vadd.f32 %v1975_v42, %v1974_v25  ;;  %v1976_v19 = vmul.f32 %v2460_v49, %v3268_v63 }
 0x270   : > { %v2462_v18 = vpop.eup %2461 }
 0x271   : > { %2067 = vadd.xlane.f32.xlu0 %v2066_v29  ;;  %v1977_v21 = vmul.f32 %v2462_v18, %v3273_v4 }
 0x272   : > { %v2464_v14 = vpop.eup %2463 }
 0x273   : > { %v2069_v12 = vadd.f32 %v1977_v21, %v1976_v19  ;;  %v1978_v47 = vmul.f32 %v2464_v14, %v3268_v63 }
 0x274   : > { %v2466_v34 = vpop.eup %2465 }
 0x275   : > { %2070 = vadd.xlane.f32.xlu1 %v2069_v12  ;;  %v1979_v1 = vmul.f32 %v2466_v34, %v3273_v4 }
 0x276   : > { %v2468_v30 = vpop.eup %2467 }
 0x277   : > { %v2072_v37 = vadd.f32 %v1979_v1, %v1978_v47  ;;  %v1980_v20 = vmul.f32 %v2468_v30, %v3268_v63 }
 0x278   : > { %v2470_v39 = vpop.eup %2469 }
 0x279   : > { %2073 = vadd.xlane.f32.xlu0 %v2072_v37  ;;  %v1981_v38 = vmul.f32 %v2470_v39, %v3273_v4 }
 0x27b   : > { %v2075_v27 = vadd.f32 %v1981_v38, %v1980_v20 }
 0x27d   : > { %2076 = vadd.xlane.f32.xlu1 %v2075_v27 }
 0x28a   : > { %v1984_v63 = vpop.xlane.xlu0 %1983 }
 0x28b   : > { %v2085_v4 = vadd.f32 %v3396_v28, %v1984_v63 }
 0x28d   : > { %2118 = vst.msk [vmem:[%s3401_s12] sm:$0xff] %vm2117_vm0, %v2085_v4 }
 0x28e   : > { %v1987_v41 = vpop.xlane.xlu0 %1986 }
 0x28f   : > { %v2086_v44 = vadd.f32 %v3396_v28, %v1987_v41 }
 0x291   : > { %2119 = vst.msk [vmem:[%s3401_s12 + $0x8] sm:$0xff] %vm2117_vm0, %v2086_v44 }
 0x292   : > { %v1990_v22 = vpop.xlane.xlu1 %1989 }
 0x293   : > { %v2087_v53 = vadd.f32 %v3396_v28, %v1990_v22 }
 0x295   : > { %2120 = vst.msk [vmem:[%s3401_s12 + $0x10] sm:$0xff] %vm2117_vm0, %v2087_v53 }
 0x296   : > { %v1993_v26 = vpop.xlane.xlu1 %1992 }
 0x297   : > { %v2088_v46 = vadd.f32 %v3396_v28, %v1993_v26 }
 0x299   : > { %2121 = vst.msk [vmem:[%s3401_s12 + $0x18] sm:$0xff] %vm2117_vm0, %v2088_v46 }
 0x29a   : > { %v1996_v58 = vpop.xlane.xlu0 %1995 }
 0x29b   : > { %v2089_v36 = vadd.f32 %v3396_v28, %v1996_v58 }
 0x29d   : > { %2122 = vst.msk [vmem:[%s3401_s12 + $0x20] sm:$0xff] %vm2117_vm0, %v2089_v36 }
 0x29e   : > { %v1999_v51 = vpop.xlane.xlu1 %1998 }
 0x29f   : > { %v2090_v33 = vadd.f32 %v3396_v28, %v1999_v51 }
 0x2a1   : > { %2123 = vst.msk [vmem:[%s3401_s12 + $0x28] sm:$0xff] %vm2117_vm0, %v2090_v33 }
 0x2a2   : > { %v2002_v9 = vpop.xlane.xlu0 %2001 }
 0x2a3   : > { %v2091_v35 = vadd.f32 %v3396_v28, %v2002_v9 }
 0x2a5   : > { %2124 = vst.msk [vmem:[%s3401_s12 + $0x30] sm:$0xff] %vm2117_vm0, %v2091_v35 }
 0x2a6   : > { %v2005_v32 = vpop.xlane.xlu1 %2004 }
 0x2a7   : > { %v2092_v5 = vadd.f32 %v3396_v28, %v2005_v32 }
 0x2a9   : > { %2125 = vst.msk [vmem:[%s3401_s12 + $0x38] sm:$0xff] %vm2117_vm0, %v2092_v5 }
 0x2aa   : > { %v2008_v55 = vpop.xlane.xlu0 %2007 }
 0x2ab   : > { %v2093_v59 = vadd.f32 %v3396_v28, %v2008_v55 }
 0x2ad   : > { %2126 = vst.msk [vmem:[%s3401_s12 + $0x40] sm:$0xff] %vm2117_vm0, %v2093_v59 }
 0x2ae   : > { %v2011_v45 = vpop.xlane.xlu1 %2010 }
 0x2af   : > { %v2094_v57 = vadd.f32 %v3396_v28, %v2011_v45 }
 0x2b1   : > { %2127 = vst.msk [vmem:[%s3401_s12 + $0x48] sm:$0xff] %vm2117_vm0, %v2094_v57 }
 0x2b2   : > { %v2014_v40 = vpop.xlane.xlu0 %2013 }
 0x2b3   : > { %v2095_v43 = vadd.f32 %v3396_v28, %v2014_v40 }
 0x2b5   : > { %2128 = vst.msk [vmem:[%s3401_s12 + $0x50] sm:$0xff] %vm2117_vm0, %v2095_v43 }
 0x2b6   : > { %v2017_v16 = vpop.xlane.xlu1 %2016 }
 0x2b7   : > { %v2096_v50 = vadd.f32 %v3396_v28, %v2017_v16 }
 0x2b9   : > { %2129 = vst.msk [vmem:[%s3401_s12 + $0x58] sm:$0xff] %vm2117_vm0, %v2096_v50 }
 0x2ba   : > { %v2020_v6 = vpop.xlane.xlu0 %2019 }
 0x2bb   : > { %v2097_v17 = vadd.f32 %v3396_v28, %v2020_v6 }
 0x2bd   : > { %2130 = vst.msk [vmem:[%s3401_s12 + $0x60] sm:$0xff] %vm2117_vm0, %v2097_v17 }
 0x2be   : > { %v2023_v52 = vpop.xlane.xlu1 %2022 }
 0x2bf   : > { %v2098_v60 = vadd.f32 %v3396_v28, %v2023_v52 }
 0x2c1   : > { %2131 = vst.msk [vmem:[%s3401_s12 + $0x68] sm:$0xff] %vm2117_vm0, %v2098_v60 }
 0x2c2   : > { %v2026_v56 = vpop.xlane.xlu0 %2025 }
 0x2c3   : > { %v2099_v13 = vadd.f32 %v3396_v28, %v2026_v56 }
 0x2c5   : > { %2132 = vst.msk [vmem:[%s3401_s12 + $0x70] sm:$0xff] %vm2117_vm0, %v2099_v13 }
 0x2c6   : > { %v2029_v31 = vpop.xlane.xlu1 %2028 }
 0x2c7   : > { %v2100_v48 = vadd.f32 %v3396_v28, %v2029_v31 }
 0x2c9   : > { %2133 = vst.msk [vmem:[%s3401_s12 + $0x78] sm:$0xff] %vm2117_vm0, %v2100_v48 }
 0x2ca   : > { %v2032_v62 = vpop.xlane.xlu0 %2031 }
 0x2cb   : > { %v2101_v15 = vadd.f32 %v3396_v28, %v2032_v62 }
 0x2cd   : > { %2134 = vst.msk [vmem:[%s3401_s12 + $0x80] sm:$0xff] %vm2117_vm0, %v2101_v15 }
 0x2ce   : > { %v2035_v24 = vpop.xlane.xlu1 %2034 }
 0x2cf   : > { %v2102_v61 = vadd.f32 %v3396_v28, %v2035_v24 }
 0x2d1   : > { %2135 = vst.msk [vmem:[%s3401_s12 + $0x88] sm:$0xff] %vm2117_vm0, %v2102_v61 }
 0x2d2   : > { %v2038_v0 = vpop.xlane.xlu0 %2037 }
 0x2d3   : > { %v2103_v23 = vadd.f32 %v3396_v28, %v2038_v0 }
 0x2d5   : > { %2136 = vst.msk [vmem:[%s3401_s12 + $0x90] sm:$0xff] %vm2117_vm0, %v2103_v23 }
 0x2d6   : > { %v2041_v11 = vpop.xlane.xlu1 %2040 }
 0x2d7   : > { %v2104_v8 = vadd.f32 %v3396_v28, %v2041_v11 }
 0x2d9   : > { %2137 = vst.msk [vmem:[%s3401_s12 + $0x98] sm:$0xff] %vm2117_vm0, %v2104_v8 }
 0x2da   : > { %v2044_v54 = vpop.xlane.xlu0 %2043 }
 0x2db   : > { %v2105_v2 = vadd.f32 %v3396_v28, %v2044_v54 }
 0x2dd   : > { %2138 = vst.msk [vmem:[%s3401_s12 + $0xa0] sm:$0xff] %vm2117_vm0, %v2105_v2 }
 0x2de   : > { %v2047_v7 = vpop.xlane.xlu1 %2046 }
 0x2df   : > { %v2106_v10 = vadd.f32 %v3396_v28, %v2047_v7 }
 0x2e1   : > { %2139 = vst.msk [vmem:[%s3401_s12 + $0xa8] sm:$0xff] %vm2117_vm0, %v2106_v10 }
 0x2e2   : > { %v2050_v3 = vpop.xlane.xlu0 %2049 }
 0x2e3   : > { %v2107_v25 = vadd.f32 %v3396_v28, %v2050_v3 }
 0x2e5   : > { %2140 = vst.msk [vmem:[%s3401_s12 + $0xb0] sm:$0xff] %vm2117_vm0, %v2107_v25 }
 0x2e6   : > { %v2053_v42 = vpop.xlane.xlu1 %2052 }
 0x2e7   : > { %v2108_v49 = vadd.f32 %v3396_v28, %v2053_v42 }
 0x2e9   : > { %2141 = vst.msk [vmem:[%s3401_s12 + $0xb8] sm:$0xff] %vm2117_vm0, %v2108_v49 }
 0x2ea   : > { %v2056_v29 = vpop.xlane.xlu0 %2055 }
 0x2eb   : > { %v2109_v18 = vadd.f32 %v3396_v28, %v2056_v29 }
 0x2ed   : > { %2142 = vst.msk [vmem:[%s3401_s12 + $0xc0] sm:$0xff] %vm2117_vm0, %v2109_v18 }
 0x2ee   : > { %v2059_v19 = vpop.xlane.xlu1 %2058 }
 0x2ef   : > { %v2110_v21 = vadd.f32 %v3396_v28, %v2059_v19 }
 0x2f1   : > { %2143 = vst.msk [vmem:[%s3401_s12 + $0xc8] sm:$0xff] %vm2117_vm0, %v2110_v21 }
 0x2f2   : > { %v2062_v14 = vpop.xlane.xlu0 %2061 }
 0x2f3   : > { %v2111_v12 = vadd.f32 %v3396_v28, %v2062_v14 }
 0x2f5   : > { %2144 = vst.msk [vmem:[%s3401_s12 + $0xd0] sm:$0xff] %vm2117_vm0, %v2111_v12 }
 0x2f6   : > { %v2065_v34 = vpop.xlane.xlu1 %2064 }
 0x2f7   : > { %v2112_v47 = vadd.f32 %v3396_v28, %v2065_v34 }
 0x2f9   : > { %2145 = vst.msk [vmem:[%s3401_s12 + $0xd8] sm:$0xff] %vm2117_vm0, %v2112_v47 }
 0x2fa   : > { %v2068_v1 = vpop.xlane.xlu0 %2067 }
 0x2fb   : > { %v2113_v30 = vadd.f32 %v3396_v28, %v2068_v1 }
 0x2fd   : > { %2146 = vst.msk [vmem:[%s3401_s12 + $0xe0] sm:$0xff] %vm2117_vm0, %v2113_v30 }
 0x2fe   : > { %v2071_v37 = vpop.xlane.xlu1 %2070 }
 0x2ff   : > { %v2114_v39 = vadd.f32 %v3396_v28, %v2071_v37 }
 0x301   : > { %2147 = vst.msk [vmem:[%s3401_s12 + $0xe8] sm:$0xff] %vm2117_vm0, %v2114_v39 }
 0x302   : > { %v2074_v20 = vpop.xlane.xlu0 %2073 }
 0x303   : > { %v2115_v38 = vadd.f32 %v3396_v28, %v2074_v20 }
 0x305   : > { %2148 = vst.msk [vmem:[%s3401_s12 + $0xf0] sm:$0xff] %vm2117_vm0, %v2115_v38 }
 0x306   : > { %v2077_v27 = vpop.xlane.xlu1 %2076 }
 0x307   : > { %v2116_v63 = vadd.f32 %v3396_v28, %v2077_v27 }
 0x309   : > { %2149 = vst.msk [vmem:[%s3401_s12 + $0xf8] sm:$0xff] %vm2117_vm0, %v2116_v63 }
 0x30a PF: > { %s3568_s23 = smov %s2735_s20  ;;  %p19_p3 = scmp.ge.s32.totalorder %s2735_s20, 4  }
 0x30b   : > { %s3569_s20 = smov %s2611_s21  ;;  %s3570_s21 = smov %s2615_s22 }
 0x30c   : > { %s3571_s22 = smov %s2745_s29  ;;  %21 = sbr.rel (!%p19_p3) target bundleno = 8 (0x8), region = 92 }
 0x311   :  { %2172 = vsyncpa [#allocation4], 1 }
 0x312   :  { %2174 = vsyncpa [#allocation4 + $0x1], 1 }
 0x313   :  { %2175 = vsyncpa [#allocation6], 1 }
 0x314   :  { %2176 = vsyncpa [#allocation9], 1 }

</bundles_post_ra>
